<compile_context>
chip_gen: v6e
topology: v6e:2x2x1
jax: 0.10.0
libtpu: 0.0.40
codegen_flags: <defaults>
</compile_context>

<pallas_src>
import functools
import numpy as np
import jax
import jax.numpy as jnp
from jax.experimental import pallas as pl
from jax.experimental.pallas import tpu as pltpu

BN_EPS = 1e-5


def _make_divisible(ch, divisor=8, min_ch=None):
    if min_ch is None:
        min_ch = divisor
    new_ch = max(min_ch, int(ch + divisor / 2) // divisor * divisor)
    if new_ch < 0.9 * ch:
        new_ch += divisor
    return new_ch


# ---------------- fused Pallas kernel ----------------

def _mbconv_kernel(x_ref, wexp_ref, bexp_ref, wdw_ref, bdw_ref,
                   w1_ref, b1_ref, w2_ref, b2_ref, wp_ref, bp_ref,
                   o_ref, *, H, W):
    # x_ref:   (1, H*W, Cin)  one image, flattened NHWC; also the residual
    # wexp:    (Cin, Cexp)    expand 1x1 weight (BN folded), bf16;  bexp: (1, Cexp) f32
    # wdw:     (9, Cexp)      depthwise 3x3 weight (BN folded), row = kh*3+kw; bdw: (1, Cexp)
    # w1/b1, w2/b2:           SE fc weights (f32)
    # wp:      (Cout, Cexp)   project 1x1 weight (BN folded, NOT transposed); bp: (1, Cout)
    # o_ref:   (1, H*W, Cout)
    HW = H * W
    Cexp = wexp_ref.shape[1]

    x2 = x_ref[0]                                                  # (HW, Cin) f32

    # ---- expand 1x1 conv (+ folded BN) + SiLU (bf16 MXU operands, f32 acc) ----
    y = jnp.dot(x2.astype(jnp.bfloat16), wexp_ref[...],
                preferred_element_type=jnp.float32) + bexp_ref[...]
    y = y * jax.nn.sigmoid(y)                                      # SiLU, (HW, Cexp)
    # TODO(synk): on v6e/v7x keep y/acc/yd in bf16 for the elementwise stages
    # (bf16 VALU/EUP); v5e elementwise must stay f32.

    # ---- in-kernel border-validity masks (no lane-padded mask inputs) ----
    idx = jax.lax.broadcasted_iota(jnp.int32, (HW, 1), 0)          # flat pixel index
    if W & (W - 1) == 0:
        wpos = jnp.bitwise_and(idx, W - 1)                         # w coordinate
    else:
        wpos = idx % W
    m_lft = wpos > 0                                               # has left neighbor
    m_rgt = wpos < (W - 1)                                         # has right neighbor
    m_top = idx >= W                                               # has top neighbor
    m_bot = idx < (HW - W)                                         # has bottom neighbor

    # ---- depthwise 3x3, stride 1, SAME (+ folded BN) + SiLU: 4 shifts / 4 masks ----
    # Column taps are hoisted once; per kernel-row we mix the three column taps
    # with their weights and apply a single +/-W row shift + one border mask.
    # (Static-shift jnp.roll -> two sublane slices + concat; the +/-W shifts are
    # 8-aligned and lower to cheap vreg moves.)
    wdw = wdw_ref[...]                                             # (9, Cexp)
    y_l = jnp.where(m_lft, jnp.roll(y, 1, axis=0), 0.0)            # tap (h, w-1)
    y_r = jnp.where(m_rgt, jnp.roll(y, -1, axis=0), 0.0)           # tap (h, w+1)

    def row_mix(kh):
        return (y   * wdw[3 * kh + 1:3 * kh + 2]
                + y_l * wdw[3 * kh    :3 * kh + 1]
                + y_r * wdw[3 * kh + 2:3 * kh + 3])

    acc = row_mix(1) + bdw_ref[...]                                # center row + folded BN bias
    acc = acc + jnp.where(m_top, jnp.roll(row_mix(0), W, axis=0), 0.0)    # row h-1
    acc = acc + jnp.where(m_bot, jnp.roll(row_mix(2), -W, axis=0), 0.0)   # row h+1
    yd = acc * jax.nn.sigmoid(acc)                                 # SiLU, (HW, Cexp)

    # ---- Squeeze-Excitation (global mean on the MXU, tiny FCs in f32) ----
    ones_row = jnp.full((1, HW), 1.0 / HW, dtype=jnp.float32)
    s = jnp.dot(ones_row, yd, preferred_element_type=jnp.float32)          # (1, Cexp)
    s = jnp.dot(s, w1_ref[...], preferred_element_type=jnp.float32) + b1_ref[...]
    s = s * jax.nn.sigmoid(s)                                      # SiLU
    s = jnp.dot(s, w2_ref[...], preferred_element_type=jnp.float32) + b2_ref[...]
    gate = jax.nn.sigmoid(s)                                       # (1, Cexp)

    # ---- project 1x1 (+ folded BN) with the SE gate folded into the weights ----
    # (yd * gate) @ Wp  ==  yd @ (gate-scaled Wp): scale the tiny weight instead
    # of a full (HW, Cexp) elementwise pass.  wp is (Cout, Cexp), so the scaled
    # weight multiplies with a plain lane broadcast and the dot contracts the
    # last dims of both operands (no in-kernel transpose).
    wp_g = (wp_ref[...] * gate).astype(jnp.bfloat16)               # (Cout, Cexp)
    p = jax.lax.dot_general(yd.astype(jnp.bfloat16), wp_g,
                            dimension_numbers=(((1,), (1,)), ((), ())),
                            preferred_element_type=jnp.float32) + bp_ref[...]
    o_ref[0] = p + x2                                              # use_res_connect
    # TODO(synk): v5e store path is lane-sparse (Cout=16 of 128 lanes); a
    # lane-dense output packing would need an in-kernel relayout, so it is left
    # to a dedicated variant.


# ---------------- wrapper ----------------

def _fold_bn(gamma, beta, mean, var):
    s = gamma / jnp.sqrt(var + BN_EPS)
    return s, beta - mean * s


def inverted_residual(x_nchw, params):
    """x_nchw: (N, Cin, H, W) float32.  Returns (N, Cout, H, W)."""
    N, Cin, H, W = x_nchw.shape
    HW = H * W
    x = jnp.transpose(x_nchw, (0, 2, 3, 1)).astype(jnp.float32)    # NHWC
    x3d = x.reshape(N, HW, Cin)

    # --- fold eval-mode BatchNorm into the convs ---
    w_exp = params["exp_w"][:, :, 0, 0]                     # (Cexp, Cin)
    s, b = _fold_bn(*params["exp_bn"])
    w_exp_mm = ((w_exp * s[:, None]).T).astype(jnp.bfloat16)  # (Cin, Cexp), bf16 MXU operand
    b_exp = b.reshape(1, -1)
    Cexp = w_exp.shape[0]

    w_dw = params["dw_w"][:, 0, :, :]                        # (Cexp, 3, 3)
    s, b = _fold_bn(*params["dw_bn"])
    w_dw_f = jnp.transpose(w_dw * s[:, None, None], (1, 2, 0)).reshape(9, Cexp)  # row = kh*3+kw
    b_dw = b.reshape(1, -1)

    w1 = params["se_fc1_w"][:, :, 0, 0].T                    # (Cexp, Csq)
    b1 = params["se_fc1_b"].reshape(1, -1)
    w2 = params["se_fc2_w"][:, :, 0, 0].T                    # (Csq, Cexp)
    b2 = params["se_fc2_b"].reshape(1, -1)
    Csq = w1.shape[1]

    w_p = params["proj_w"][:, :, 0, 0]                       # (Cout, Cexp)
    s, b = _fold_bn(*params["proj_bn"])
    w_p_bn = w_p * s[:, None]                                # (Cout, Cexp), f32; SE gate folded in-kernel
    b_p = b.reshape(1, -1)
    Cout = w_p.shape[0]
    assert Cout == Cin, "residual path requires in_c == out_c (stride 1)"

    # Explicit scoped-VMEM budget sized to the working set, with headroom and a
    # cap that stays inside every generation's physical VMEM.
    act_bytes = HW * max(Cexp, 128) * 4                      # one lane-padded f32 activation slab
    io_bytes = 4 * HW * 128 * 4                              # double-buffered x / out blocks
    vmem_limit = int(min(max(8 * act_bytes + io_bytes + (2 << 20), 8 << 20), 32 << 20))

    kernel = functools.partial(_mbconv_kernel, H=H, W=W)

    out3d = pl.pallas_call(
        kernel,
        out_shape=jax.ShapeDtypeStruct((N, HW, Cout), jnp.float32),
        grid=(N,),
        in_specs=[
            pl.BlockSpec((1, HW, Cin), lambda n: (n, 0, 0)),   # one image / step
            pl.BlockSpec((Cin, Cexp), lambda n: (0, 0)),       # weights (resident)
            pl.BlockSpec((1, Cexp), lambda n: (0, 0)),
            pl.BlockSpec((9, Cexp), lambda n: (0, 0)),
            pl.BlockSpec((1, Cexp), lambda n: (0, 0)),
            pl.BlockSpec((Cexp, Csq), lambda n: (0, 0)),
            pl.BlockSpec((1, Csq), lambda n: (0, 0)),
            pl.BlockSpec((Csq, Cexp), lambda n: (0, 0)),
            pl.BlockSpec((1, Cexp), lambda n: (0, 0)),
            pl.BlockSpec((Cout, Cexp), lambda n: (0, 0)),
            pl.BlockSpec((1, Cout), lambda n: (0, 0)),
        ],
        out_specs=pl.BlockSpec((1, HW, Cout), lambda n: (n, 0, 0)),
        compiler_params=pltpu.CompilerParams(
            dimension_semantics=("parallel",),
            vmem_limit_bytes=vmem_limit),
    )(x3d, w_exp_mm, b_exp, w_dw_f, b_dw, w1, b1, w2, b2, w_p_bn, b_p)

    # TODO(synk): nn.Dropout2d is train-time only; inference path is identity.
    # TODO(synk): fold a sub-batch of images into the matmul M dimension per
    # grid step (per-image SE mean via a pooling-matrix matmul) to amortize
    # per-step overhead on tiny H*W stages.
    # TODO(synk): for large stages (e.g. 112x112x384 expanded on v7x's 64 MiB
    # VMEM) add a row-tiled two-pass variant (SE needs the global spatial mean).
    out_nhwc = out3d.reshape(N, H, W, Cout)
    return jnp.transpose(out_nhwc, (0, 3, 1, 2))             # back to NCHW


# ---------------- pure-JAX reference (mirrors PyTorch eval forward) ----------------

def ref_forward(x, params):
    def bn(y, gamma, beta, mean, var):
        inv = 1.0 / jnp.sqrt(var + BN_EPS)
        return (y - mean[None, :, None, None]) * inv[None, :, None, None] \
            * gamma[None, :, None, None] + beta[None, :, None, None]

    y = jnp.einsum('nchw,oc->nohw', x, params["exp_w"][:, :, 0, 0])
    y = jax.nn.silu(bn(y, *params["exp_bn"]))
    Cexp = y.shape[1]
    y = jax.lax.conv_general_dilated(
        y, params["dw_w"], window_strides=(1, 1), padding=((1, 1), (1, 1)),
        dimension_numbers=('NCHW', 'OIHW', 'NCHW'), feature_group_count=Cexp)
    y = jax.nn.silu(bn(y, *params["dw_bn"]))
    s = jnp.mean(y, axis=(2, 3), keepdims=True)
    s = jnp.einsum('nchw,oc->nohw', s, params["se_fc1_w"][:, :, 0, 0]) \
        + params["se_fc1_b"][None, :, None, None]
    s = jax.nn.silu(s)
    s = jnp.einsum('nchw,oc->nohw', s, params["se_fc2_w"][:, :, 0, 0]) \
        + params["se_fc2_b"][None, :, None, None]
    y = y * jax.nn.sigmoid(s)
    y = jnp.einsum('nchw,oc->nohw', y, params["proj_w"][:, :, 0, 0])
    y = bn(y, *params["proj_bn"])
    return y + x                                              # use_res_connect


# ---------------- parameter init & demo ----------------

def init_params(key, cin, cexp, csq, cout):
    ks = list(jax.random.split(key, 16))

    def w(k, shape, scale=0.1):
        return scale * jax.random.normal(k, shape, jnp.float32)

    def bn(k, c):
        k1, k2, k3, k4 = jax.random.split(k, 4)
        gamma = 1.0 + 0.1 * jax.random.normal(k1, (c,), jnp.float32)
        beta = 0.1 * jax.random.normal(k2, (c,), jnp.float32)
        mean = 0.1 * jax.random.normal(k3, (c,), jnp.float32)
        var = 0.5 + jax.random.uniform(k4, (c,), jnp.float32)
        return (gamma, beta, mean, var)

    return {
        "exp_w": w(ks[0], (cexp, cin, 1, 1)),
        "exp_bn": bn(ks[1], cexp),
        "dw_w": w(ks[2], (cexp, 1, 3, 3)),
        "dw_bn": bn(ks[3], cexp),
        "se_fc1_w": w(ks[4], (csq, cexp, 1, 1)),
        "se_fc1_b": w(ks[5], (csq,)),
        "se_fc2_w": w(ks[6], (cexp, csq, 1, 1)),
        "se_fc2_b": w(ks[7], (cexp,)),
        "proj_w": w(ks[8], (cout, cexp, 1, 1)),
        "proj_bn": bn(ks[9], cout),
    }


if __name__ == "__main__":
    # InvertedResidualConfig(kernel=3, input_c=16, out_c=16, expanded_ratio=4,
    #                        stride=1, use_se=True, drop_rate=0.2, width_coefficient=1.0)
    width_coefficient = 1.0
    input_c = _make_divisible(16 * width_coefficient, 8)    # 16
    out_c = _make_divisible(16 * width_coefficient, 8)      # 16
    expanded_c = input_c * 4                                 # 64
    squeeze_c = input_c // 4                                 # 4
    N, H, W = 2, 16, 16

    key = jax.random.PRNGKey(0)
    kx, kp = jax.random.split(key)
    x = jax.random.normal(kx, (N, input_c, H, W), jnp.float32)   # NCHW like PyTorch
    params = init_params(kp, input_c, expanded_c, squeeze_c, out_c)

    out = jax.block_until_ready(jax.jit(inverted_residual)(x, params))
    ref = jax.block_until_ready(ref_forward(x, params))
    # bf16 MXU operands in the kernel => ~1e-2-level deviation from the f32 reference.
    np.testing.assert_allclose(np.asarray(out), np.asarray(ref), rtol=2e-2, atol=2e-2)

    print("KERNEL_OK")
</pallas_src>

<mosaic_0001>
module attributes {stable_mosaic.version = 11 : i64} {
  func.func @_mbconv_kernel(%arg0: i32, %arg1: memref<1x256x16xf32, #tpu.memory_space<vmem>>, %arg2: memref<16x64xbf16, #tpu.memory_space<vmem>>, %arg3: memref<1x64xf32, #tpu.memory_space<vmem>>, %arg4: memref<9x64xf32, #tpu.memory_space<vmem>>, %arg5: memref<1x64xf32, #tpu.memory_space<vmem>>, %arg6: memref<64x4xf32, #tpu.memory_space<vmem>>, %arg7: memref<1x4xf32, #tpu.memory_space<vmem>>, %arg8: memref<4x64xf32, #tpu.memory_space<vmem>>, %arg9: memref<1x64xf32, #tpu.memory_space<vmem>>, %arg10: memref<16x64xf32, #tpu.memory_space<vmem>>, %arg11: memref<1x16xf32, #tpu.memory_space<vmem>>, %arg12: memref<1x256x16xf32, #tpu.memory_space<vmem>>) attributes {dimension_semantics = [#tpu.dimension_semantics<parallel>], iteration_bounds = array<i64: 2>, scalar_prefetch = 0 : i64, scratch_operands = 0 : i64, tpu.core_type = #tpu.core_type<tc>, window_params = [{transform_indices = @transform_0, window_bounds = array<i64: 1, 256, 16>}, {pipeline_mode = #tpu.pipeline_mode<synchronous>, transform_indices = @transform_1, window_bounds = array<i64: 16, 64>}, {pipeline_mode = #tpu.pipeline_mode<synchronous>, transform_indices = @transform_2, window_bounds = array<i64: 1, 64>}, {pipeline_mode = #tpu.pipeline_mode<synchronous>, transform_indices = @transform_3, window_bounds = array<i64: 9, 64>}, {pipeline_mode = #tpu.pipeline_mode<synchronous>, transform_indices = @transform_4, window_bounds = array<i64: 1, 64>}, {pipeline_mode = #tpu.pipeline_mode<synchronous>, transform_indices = @transform_5, window_bounds = array<i64: 64, 4>}, {pipeline_mode = #tpu.pipeline_mode<synchronous>, transform_indices = @transform_6, window_bounds = array<i64: 1, 4>}, {pipeline_mode = #tpu.pipeline_mode<synchronous>, transform_indices = @transform_7, window_bounds = array<i64: 4, 64>}, {pipeline_mode = #tpu.pipeline_mode<synchronous>, transform_indices = @transform_8, window_bounds = array<i64: 1, 64>}, {pipeline_mode = #tpu.pipeline_mode<synchronous>, transform_indices = @transform_9, window_bounds = array<i64: 16, 64>}, {pipeline_mode = #tpu.pipeline_mode<synchronous>, transform_indices = @transform_10, window_bounds = array<i64: 1, 16>}, {transform_indices = @transform_11, window_bounds = array<i64: 1, 256, 16>}]} {
    %c0 = arith.constant 0 : index
    %c0_0 = arith.constant 0 : index
    %c0_1 = arith.constant 0 : index
    %0 = vector.load %arg1[%c0, %c0_0, %c0_1] : memref<1x256x16xf32, #tpu.memory_space<vmem>>, vector<1x256x16xf32>
    %1 = vector.shape_cast %0 : vector<1x256x16xf32> to vector<256x16xf32>
    %2 = arith.truncf %1 : vector<256x16xf32> to vector<256x16xbf16>
    %c0_2 = arith.constant 0 : index
    %c0_3 = arith.constant 0 : index
    %3 = vector.load %arg2[%c0_2, %c0_3] : memref<16x64xbf16, #tpu.memory_space<vmem>>, vector<16x64xbf16>
    %cst = arith.constant dense<0.000000e+00> : vector<256x64xf32>
    %4 = tpu.matmul %2, %3, %cst {dimension_numbers = #tpu.dot_dimension_numbers<[1], [0], [0], [1], [0, 0, 1, 1], [], []>} : vector<256x16xbf16>, vector<16x64xbf16>, vector<256x64xf32> -> vector<256x64xf32>
    %c0_4 = arith.constant 0 : index
    %c0_5 = arith.constant 0 : index
    %5 = vector.load %arg3[%c0_4, %c0_5] : memref<1x64xf32, #tpu.memory_space<vmem>>, vector<1x64xf32>
    %6 = vector.broadcast %5 : vector<1x64xf32> to vector<256x64xf32>
    %7 = arith.addf %4, %6 : vector<256x64xf32>
    %8 = arith.negf %7 : vector<256x64xf32>
    %9 = math.exp %8 : vector<256x64xf32>
    %cst_6 = arith.constant 1.000000e+00 : f32
    %10 = vector.broadcast %cst_6 : f32 to vector<256x64xf32>
    %11 = arith.addf %10, %9 : vector<256x64xf32>
    %12 = arith.divf %10, %11 : vector<256x64xf32>
    %13 = arith.mulf %7, %12 : vector<256x64xf32>
    %14 = tpu.iota {dimensions = array<i32: 0>} : vector<256x1xi32>
    %c15_i32 = arith.constant 15 : i32
    %15 = vector.broadcast %c15_i32 : i32 to vector<256x1xi32>
    %16 = arith.andi %14, %15 : vector<256x1xi32>
    %c0_i32 = arith.constant 0 : i32
    %17 = vector.broadcast %c0_i32 : i32 to vector<256x1xi32>
    %18 = arith.cmpi sgt, %16, %17 : vector<256x1xi32>
    %c15_i32_7 = arith.constant 15 : i32
    %19 = vector.broadcast %c15_i32_7 : i32 to vector<256x1xi32>
    %20 = arith.cmpi slt, %16, %19 : vector<256x1xi32>
    %c16_i32 = arith.constant 16 : i32
    %21 = vector.broadcast %c16_i32 : i32 to vector<256x1xi32>
    %22 = arith.cmpi sge, %14, %21 : vector<256x1xi32>
    %c240_i32 = arith.constant 240 : i32
    %23 = vector.broadcast %c240_i32 : i32 to vector<256x1xi32>
    %24 = arith.cmpi slt, %14, %23 : vector<256x1xi32>
    %c0_8 = arith.constant 0 : index
    %c0_9 = arith.constant 0 : index
    %25 = vector.load %arg4[%c0_8, %c0_9] : memref<9x64xf32, #tpu.memory_space<vmem>>, vector<9x64xf32>
    %26 = vector.extract_strided_slice %13 {offsets = [255, 0], sizes = [1, 64], strides = [1, 1]} : vector<256x64xf32> to vector<1x64xf32>
    %27 = vector.extract_strided_slice %13 {offsets = [0, 0], sizes = [255, 64], strides = [1, 1]} : vector<256x64xf32> to vector<255x64xf32>
    %28 = tpu.concatenate %26, %27 in 0 : vector<1x64xf32>, vector<255x64xf32> -> vector<256x64xf32>
    %cst_10 = arith.constant 0.000000e+00 : f32
    %29 = vector.shape_cast %18 : vector<256x1xi1> to vector<256x1xi1>
    %30 = vector.broadcast %29 : vector<256x1xi1> to vector<256x64xi1>
    %31 = vector.broadcast %cst_10 : f32 to vector<256x64xf32>
    %32 = arith.select %30, %28, %31 : vector<256x64xi1>, vector<256x64xf32>
    %33 = vector.extract_strided_slice %13 {offsets = [1, 0], sizes = [255, 64], strides = [1, 1]} : vector<256x64xf32> to vector<255x64xf32>
    %34 = vector.extract_strided_slice %13 {offsets = [0, 0], sizes = [1, 64], strides = [1, 1]} : vector<256x64xf32> to vector<1x64xf32>
    %35 = tpu.concatenate %33, %34 in 0 : vector<255x64xf32>, vector<1x64xf32> -> vector<256x64xf32>
    %cst_11 = arith.constant 0.000000e+00 : f32
    %36 = vector.shape_cast %20 : vector<256x1xi1> to vector<256x1xi1>
    %37 = vector.broadcast %36 : vector<256x1xi1> to vector<256x64xi1>
    %38 = vector.broadcast %cst_11 : f32 to vector<256x64xf32>
    %39 = arith.select %37, %35, %38 : vector<256x64xi1>, vector<256x64xf32>
    %40 = vector.extract_strided_slice %25 {offsets = [4, 0], sizes = [1, 64], strides = [1, 1]} : vector<9x64xf32> to vector<1x64xf32>
    %41 = vector.broadcast %40 : vector<1x64xf32> to vector<256x64xf32>
    %42 = arith.mulf %13, %41 : vector<256x64xf32>
    %43 = vector.extract_strided_slice %25 {offsets = [3, 0], sizes = [1, 64], strides = [1, 1]} : vector<9x64xf32> to vector<1x64xf32>
    %44 = vector.broadcast %43 : vector<1x64xf32> to vector<256x64xf32>
    %45 = arith.mulf %32, %44 : vector<256x64xf32>
    %46 = arith.addf %42, %45 : vector<256x64xf32>
    %47 = vector.extract_strided_slice %25 {offsets = [5, 0], sizes = [1, 64], strides = [1, 1]} : vector<9x64xf32> to vector<1x64xf32>
    %48 = vector.broadcast %47 : vector<1x64xf32> to vector<256x64xf32>
    %49 = arith.mulf %39, %48 : vector<256x64xf32>
    %50 = arith.addf %46, %49 : vector<256x64xf32>
    %c0_12 = arith.constant 0 : index
    %c0_13 = arith.constant 0 : index
    %51 = vector.load %arg5[%c0_12, %c0_13] : memref<1x64xf32, #tpu.memory_space<vmem>>, vector<1x64xf32>
    %52 = vector.broadcast %51 : vector<1x64xf32> to vector<256x64xf32>
    %53 = arith.addf %50, %52 : vector<256x64xf32>
    %54 = vector.extract_strided_slice %25 {offsets = [1, 0], sizes = [1, 64], strides = [1, 1]} : vector<9x64xf32> to vector<1x64xf32>
    %55 = vector.broadcast %54 : vector<1x64xf32> to vector<256x64xf32>
    %56 = arith.mulf %13, %55 : vector<256x64xf32>
    %57 = vector.extract_strided_slice %25 {offsets = [0, 0], sizes = [1, 64], strides = [1, 1]} : vector<9x64xf32> to vector<1x64xf32>
    %58 = vector.broadcast %57 : vector<1x64xf32> to vector<256x64xf32>
    %59 = arith.mulf %32, %58 : vector<256x64xf32>
    %60 = arith.addf %56, %59 : vector<256x64xf32>
    %61 = vector.extract_strided_slice %25 {offsets = [2, 0], sizes = [1, 64], strides = [1, 1]} : vector<9x64xf32> to vector<1x64xf32>
    %62 = vector.broadcast %61 : vector<1x64xf32> to vector<256x64xf32>
    %63 = arith.mulf %39, %62 : vector<256x64xf32>
    %64 = arith.addf %60, %63 : vector<256x64xf32>
    %65 = vector.extract_strided_slice %64 {offsets = [240, 0], sizes = [16, 64], strides = [1, 1]} : vector<256x64xf32> to vector<16x64xf32>
    %66 = vector.extract_strided_slice %64 {offsets = [0, 0], sizes = [240, 64], strides = [1, 1]} : vector<256x64xf32> to vector<240x64xf32>
    %67 = tpu.concatenate %65, %66 in 0 : vector<16x64xf32>, vector<240x64xf32> -> vector<256x64xf32>
    %cst_14 = arith.constant 0.000000e+00 : f32
    %68 = vector.shape_cast %22 : vector<256x1xi1> to vector<256x1xi1>
    %69 = vector.broadcast %68 : vector<256x1xi1> to vector<256x64xi1>
    %70 = vector.broadcast %cst_14 : f32 to vector<256x64xf32>
    %71 = arith.select %69, %67, %70 : vector<256x64xi1>, vector<256x64xf32>
    %72 = arith.addf %53, %71 : vector<256x64xf32>
    %73 = vector.extract_strided_slice %25 {offsets = [7, 0], sizes = [1, 64], strides = [1, 1]} : vector<9x64xf32> to vector<1x64xf32>
    %74 = vector.broadcast %73 : vector<1x64xf32> to vector<256x64xf32>
    %75 = arith.mulf %13, %74 : vector<256x64xf32>
    %76 = vector.extract_strided_slice %25 {offsets = [6, 0], sizes = [1, 64], strides = [1, 1]} : vector<9x64xf32> to vector<1x64xf32>
    %77 = vector.broadcast %76 : vector<1x64xf32> to vector<256x64xf32>
    %78 = arith.mulf %32, %77 : vector<256x64xf32>
    %79 = arith.addf %75, %78 : vector<256x64xf32>
    %80 = vector.extract_strided_slice %25 {offsets = [8, 0], sizes = [1, 64], strides = [1, 1]} : vector<9x64xf32> to vector<1x64xf32>
    %81 = vector.broadcast %80 : vector<1x64xf32> to vector<256x64xf32>
    %82 = arith.mulf %39, %81 : vector<256x64xf32>
    %83 = arith.addf %79, %82 : vector<256x64xf32>
    %84 = vector.extract_strided_slice %83 {offsets = [16, 0], sizes = [240, 64], strides = [1, 1]} : vector<256x64xf32> to vector<240x64xf32>
    %85 = vector.extract_strided_slice %83 {offsets = [0, 0], sizes = [16, 64], strides = [1, 1]} : vector<256x64xf32> to vector<16x64xf32>
    %86 = tpu.concatenate %84, %85 in 0 : vector<240x64xf32>, vector<16x64xf32> -> vector<256x64xf32>
    %cst_15 = arith.constant 0.000000e+00 : f32
    %87 = vector.shape_cast %24 : vector<256x1xi1> to vector<256x1xi1>
    %88 = vector.broadcast %87 : vector<256x1xi1> to vector<256x64xi1>
    %89 = vector.broadcast %cst_15 : f32 to vector<256x64xf32>
    %90 = arith.select %88, %86, %89 : vector<256x64xi1>, vector<256x64xf32>
    %91 = arith.addf %72, %90 : vector<256x64xf32>
    %92 = arith.negf %91 : vector<256x64xf32>
    %93 = math.exp %92 : vector<256x64xf32>
    %cst_16 = arith.constant 1.000000e+00 : f32
    %94 = vector.broadcast %cst_16 : f32 to vector<256x64xf32>
    %95 = arith.addf %94, %93 : vector<256x64xf32>
    %96 = arith.divf %94, %95 : vector<256x64xf32>
    %97 = arith.mulf %91, %96 : vector<256x64xf32>
    %cst_17 = arith.constant 3.906250e-03 : f32
    %98 = vector.broadcast %cst_17 : f32 to vector<1x256xf32>
    %cst_18 = arith.constant dense<0.000000e+00> : vector<1x64xf32>
    %99 = tpu.matmul %98, %97, %cst_18 {dimension_numbers = #tpu.dot_dimension_numbers<[1], [0], [0], [1], [0, 0, 1, 1], [], []>} : vector<1x256xf32>, vector<256x64xf32>, vector<1x64xf32> -> vector<1x64xf32>
    %c0_19 = arith.constant 0 : index
    %c0_20 = arith.constant 0 : index
    %100 = vector.load %arg6[%c0_19, %c0_20] : memref<64x4xf32, #tpu.memory_space<vmem>>, vector<64x4xf32>
    %cst_21 = arith.constant dense<0.000000e+00> : vector<1x4xf32>
    %101 = tpu.matmul %99, %100, %cst_21 {dimension_numbers = #tpu.dot_dimension_numbers<[1], [0], [0], [1], [0, 0, 1, 1], [], []>} : vector<1x64xf32>, vector<64x4xf32>, vector<1x4xf32> -> vector<1x4xf32>
    %c0_22 = arith.constant 0 : index
    %c0_23 = arith.constant 0 : index
    %102 = vector.load %arg7[%c0_22, %c0_23] : memref<1x4xf32, #tpu.memory_space<vmem>>, vector<1x4xf32>
    %103 = arith.addf %101, %102 : vector<1x4xf32>
    %104 = arith.negf %103 : vector<1x4xf32>
    %105 = math.exp %104 : vector<1x4xf32>
    %cst_24 = arith.constant 1.000000e+00 : f32
    %106 = vector.broadcast %cst_24 : f32 to vector<1x4xf32>
    %107 = arith.addf %106, %105 : vector<1x4xf32>
    %108 = arith.divf %106, %107 : vector<1x4xf32>
    %109 = arith.mulf %103, %108 : vector<1x4xf32>
    %c0_25 = arith.constant 0 : index
    %c0_26 = arith.constant 0 : index
    %110 = vector.load %arg8[%c0_25, %c0_26] : memref<4x64xf32, #tpu.memory_space<vmem>>, vector<4x64xf32>
    %cst_27 = arith.constant dense<0.000000e+00> : vector<1x64xf32>
    %111 = tpu.matmul %109, %110, %cst_27 {dimension_numbers = #tpu.dot_dimension_numbers<[1], [0], [0], [1], [0, 0, 1, 1], [], []>} : vector<1x4xf32>, vector<4x64xf32>, vector<1x64xf32> -> vector<1x64xf32>
    %c0_28 = arith.constant 0 : index
    %c0_29 = arith.constant 0 : index
    %112 = vector.load %arg9[%c0_28, %c0_29] : memref<1x64xf32, #tpu.memory_space<vmem>>, vector<1x64xf32>
    %113 = arith.addf %111, %112 : vector<1x64xf32>
    %114 = arith.negf %113 : vector<1x64xf32>
    %115 = math.exp %114 : vector<1x64xf32>
    %cst_30 = arith.constant 1.000000e+00 : f32
    %116 = vector.broadcast %cst_30 : f32 to vector<1x64xf32>
    %117 = arith.addf %116, %115 : vector<1x64xf32>
    %118 = arith.divf %116, %117 : vector<1x64xf32>
    %c0_31 = arith.constant 0 : index
    %c0_32 = arith.constant 0 : index
    %119 = vector.load %arg10[%c0_31, %c0_32] : memref<16x64xf32, #tpu.memory_space<vmem>>, vector<16x64xf32>
    %120 = vector.broadcast %118 : vector<1x64xf32> to vector<16x64xf32>
    %121 = arith.mulf %119, %120 : vector<16x64xf32>
    %122 = arith.truncf %121 : vector<16x64xf32> to vector<16x64xbf16>
    %123 = arith.truncf %97 : vector<256x64xf32> to vector<256x64xbf16>
    %cst_33 = arith.constant dense<0.000000e+00> : vector<256x16xf32>
    %124 = tpu.matmul %123, %122, %cst_33 {dimension_numbers = #tpu.dot_dimension_numbers<[1], [1], [0], [0], [0, 0, 1, 0], [], []>} : vector<256x64xbf16>, vector<16x64xbf16>, vector<256x16xf32> -> vector<256x16xf32>
    %c0_34 = arith.constant 0 : index
    %c0_35 = arith.constant 0 : index
    %125 = vector.load %arg11[%c0_34, %c0_35] : memref<1x16xf32, #tpu.memory_space<vmem>>, vector<1x16xf32>
    %126 = vector.broadcast %125 : vector<1x16xf32> to vector<256x16xf32>
    %127 = arith.addf %124, %126 : vector<256x16xf32>
    %128 = arith.addf %127, %1 : vector<256x16xf32>
    %c0_36 = arith.constant 0 : index
    %c0_37 = arith.constant 0 : index
    %c0_38 = arith.constant 0 : index
    %129 = vector.load %arg12[%c0_36, %c0_37, %c0_38] : memref<1x256x16xf32, #tpu.memory_space<vmem>>, vector<1x256x16xf32>
    %130 = vector.shape_cast %129 : vector<1x256x16xf32> to vector<256x16xf32>
    %131 = vector.shape_cast %128 : vector<256x16xf32> to vector<1x256x16xf32>
    tpu.vector_store %arg12[%c0_36, %c0_37, %c0_38], %131 {strides = array<i32>} : memref<1x256x16xf32, #tpu.memory_space<vmem>>, vector<1x256x16xf32>,
    return
  }
  func.func @transform_0(%arg0: i32) -> (i32, i32, i32) {
    %c0_i32 = arith.constant 0 : i32
    %c0_i32_0 = arith.constant 0 : i32
    %c0_i32_1 = arith.constant 0 : i32
    return %arg0, %c0_i32, %c0_i32_0 : i32, i32, i32
  }
  func.func @transform_1(%arg0: i32) -> (i32, i32) {
    %c0_i32 = arith.constant 0 : i32
    %c0_i32_0 = arith.constant 0 : i32
    %c0_i32_1 = arith.constant 0 : i32
    return %c0_i32, %c0_i32_0 : i32, i32
  }
  func.func @transform_2(%arg0: i32) -> (i32, i32) {
    %c0_i32 = arith.constant 0 : i32
    %c0_i32_0 = arith.constant 0 : i32
    %c0_i32_1 = arith.constant 0 : i32
    return %c0_i32, %c0_i32_0 : i32, i32
  }
  func.func @transform_3(%arg0: i32) -> (i32, i32) {
    %c0_i32 = arith.constant 0 : i32
    %c0_i32_0 = arith.constant 0 : i32
    %c0_i32_1 = arith.constant 0 : i32
    return %c0_i32, %c0_i32_0 : i32, i32
  }
  func.func @transform_4(%arg0: i32) -> (i32, i32) {
    %c0_i32 = arith.constant 0 : i32
    %c0_i32_0 = arith.constant 0 : i32
    %c0_i32_1 = arith.constant 0 : i32
    return %c0_i32, %c0_i32_0 : i32, i32
  }
  func.func @transform_5(%arg0: i32) -> (i32, i32) {
    %c0_i32 = arith.constant 0 : i32
    %c0_i32_0 = arith.constant 0 : i32
    %c0_i32_1 = arith.constant 0 : i32
    return %c0_i32, %c0_i32_0 : i32, i32
  }
  func.func @transform_6(%arg0: i32) -> (i32, i32) {
    %c0_i32 = arith.constant 0 : i32
    %c0_i32_0 = arith.constant 0 : i32
    %c0_i32_1 = arith.constant 0 : i32
    return %c0_i32, %c0_i32_0 : i32, i32
  }
  func.func @transform_7(%arg0: i32) -> (i32, i32) {
    %c0_i32 = arith.constant 0 : i32
    %c0_i32_0 = arith.constant 0 : i32
    %c0_i32_1 = arith.constant 0 : i32
    return %c0_i32, %c0_i32_0 : i32, i32
  }
  func.func @transform_8(%arg0: i32) -> (i32, i32) {
    %c0_i32 = arith.constant 0 : i32
    %c0_i32_0 = arith.constant 0 : i32
    %c0_i32_1 = arith.constant 0 : i32
    return %c0_i32, %c0_i32_0 : i32, i32
  }
  func.func @transform_9(%arg0: i32) -> (i32, i32) {
    %c0_i32 = arith.constant 0 : i32
    %c0_i32_0 = arith.constant 0 : i32
    %c0_i32_1 = arith.constant 0 : i32
    return %c0_i32, %c0_i32_0 : i32, i32
  }
  func.func @transform_10(%arg0: i32) -> (i32, i32) {
    %c0_i32 = arith.constant 0 : i32
    %c0_i32_0 = arith.constant 0 : i32
    %c0_i32_1 = arith.constant 0 : i32
    return %c0_i32, %c0_i32_0 : i32, i32
  }
  func.func @transform_11(%arg0: i32) -> (i32, i32, i32) {
    %c0_i32 = arith.constant 0 : i32
    %c0_i32_0 = arith.constant 0 : i32
    %c0_i32_1 = arith.constant 0 : i32
    return %arg0, %c0_i32, %c0_i32_0 : i32, i32, i32
  }
}

</mosaic_0001>

<bundles_post_ra>
// kernel: inverted_residual.1
= control target key start
LH: loop header
LB: loop body
LE: loop exit
PB: predicated region body
PF: predicated region fallthrough
CT: control target
= control target key end

     0   :  { %s3820_s17 = smov 0   ;;  %s6150_s0 = inlined_call_operand.vmem [shape: f32[2,256,16], index: 0, kind: input, shape index: {}]   ;;  %s6151_s1 = inlined_call_operand.vmem [shape: bf16[16,64], index: 1, kind: input, shape index: {}]   ;;  %s6152_s2 = inlined_call_operand.vmem [shape: f32[1,64], index: 2, kind: input, shape index: {}]   ;;  %s6153_s3 = inlined_call_operand.vmem [shape: f32[9,64], index: 3, kind: input, shape index: {}]   ;;  %s6154_s4 = inlined_call_operand.vmem [shape: f32[1,64], index: 4, kind: input, shape index: {}]   ;;  %s6155_s5 = inlined_call_operand.vmem [shape: f32[64,4], index: 5, kind: input, shape index: {}]   ;;  %s6156_s6 = inlined_call_operand.vmem [shape: f32[1,4], index: 6, kind: input, shape index: {}]   ;;  %s6157_s7 = inlined_call_operand.vmem [shape: f32[4,64], index: 7, kind: input, shape index: {}]   ;;  %s6158_s8 = inlined_call_operand.vmem [shape: f32[1,64], index: 8, kind: input, shape index: {}]   ;;  %s6159_s9 = inlined_call_operand.vmem [shape: f32[16,64], index: 9, kind: input, shape index: {}]   ;;  %s6160_s10 = inlined_call_operand.vmem [shape: f32[1,16], index: 10, kind: input, shape index: {}]   ;;  %s6161_s11 = inlined_call_operand.vmem [shape: f32[2,256,16], index: 11, kind: output, shape index: {}]  }
   0x1 LB: > { %s3144_s18 = sadd.s32 4294967295, %s3755_s17   ;;  %p3148_p0 = scmp.ge.s32.totalorder %s3755_s17, 1  ;;  %s3755_s17 = sphi %s3820_s17, %s21_s17  }
   0x2   : > { %p337_p1 = scmp.lt.s32.totalorder %s3755_s17, 3 }
   0x4   : > { %p338_p2 = pnand %p3148_p0, %p337_p1 }
   0x6   : > { %341 = sbr.rel (%p338_p2) target bundleno = 1479 (0x5c7), region = 64 }
   0xb   : > { %v3450_v0 = vld [vmem:[%s6151_s1] sm:$0xff]   ;;  %p377_p3 = scmp.lt.s32.totalorder %s3144_s18, 1  ;;  %vm451_vm0 = vcmask 130048   ;;  %v885_v50 = vlaneseq  ;;  %vm1114_vm1 = vcmask 1040384   ;;  %vm1306_vm4 = vcmask 1046528  }
   0xc   : > { %3343 = vmatprep.subr.bf16.mxu0 %v3450_v0  ;;  %v3892_v49 = vld [vmem:[%s6152_s2] ss:$0 sm:$0xff] }
   0xd   : > { %s6681_s18 = smov (!%p377_p3, %s3144_s18), 1  ;;  %3344 = vmatpush3.bf16.msra.mxu0 %v3450_v0  ;;  %v3897_v53 = vshrl.u32 %v885_v50, 7  ;;  %v1078_v0 = vld [vmem:[%s6153_s3] sm:$0xff] }
   0xe   : > { %s3261_s21 = sshll.u32 %s6681_s18, 8 }
   0xf   : > { %s3839_s24 = scalar_lea.vmem %s6150_s0, %s3261_s21  ;;  %6276 = vst [vmem:[#allocation2_spill] sm:$0xff] %v3897_v53  ;;  %v1502_v60 = vsub.s32 4, %v3897_v53  ;;  %v1713_v61 = vsub.s32 1, %v3897_v53  ;;  %v2013_v62 = vsub.s32 7, %v3897_v53  ;;  %s6019_s20 = scalar_lea.vmem %s6161_s11, %s3261_s21 }
  0x10   : > { %v388_v1 = vld [vmem:[%s3839_s24] sm:$0xff]  ;;  %v389_v2 = vld [vmem:[%s3839_s24 + $0x8] sm:$0xff]  ;;  %v390_v3 = vld [vmem:[%s3839_s24 + $0x10] sm:$0xff] }
  0x11   : > { %v420_v4 = vpack.c.bf16 %v389_v2, %v388_v1  ;;  %v391_v5 = vld [vmem:[%s3839_s24 + $0x18] sm:$0xff]  ;;  %v392_v6 = vld [vmem:[%s3839_s24 + $0x20] sm:$0xff]  ;;  %v393_v7 = vld [vmem:[%s3839_s24 + $0x28] sm:$0xff] }
  0x12   : > { %v421_v8 = vpack.c.bf16 %v391_v5, %v390_v3  ;;  %v422_v9 = vpack.c.bf16 %v393_v7, %v392_v6  ;;  %v394_v10 = vld [vmem:[%s3839_s24 + $0x30] sm:$0xff]  ;;  %v395_v11 = vld [vmem:[%s3839_s24 + $0x38] sm:$0xff]  ;;  %v396_v12 = vld [vmem:[%s3839_s24 + $0x40] sm:$0xff]  ;;  %v1538_v3 = vsub.s32 3, %v3897_v53 }
  0x13   : > { %3345 = vmatprep.mubr.msk.bf16.mxu0 %vm451_vm0, %v420_v4  ;;  %v397_v13 = vld [vmem:[%s3839_s24 + $0x48] sm:$0xff]  ;;  %v423_v14 = vpack.c.bf16 %v395_v11, %v394_v10  ;;  %v398_v16 = vld [vmem:[%s3839_s24 + $0x50] sm:$0xff]  ;;  %v399_v17 = vld [vmem:[%s3839_s24 + $0x58] sm:$0xff]  ;;  %v1606_v4 = vsub.s32 5, %v3897_v53  ;;  %v3927_v10 = vrot.slane %v1078_v0, %v2013_v62  ;;  %v3930_v11 = vadd.s32 8, %v3897_v53 }
  0x14   : > { %3346 = vmatmul.mubr.msk.bf16.vlgmr.msra.gmra.mxu0 %vm451_vm0, %v421_v8  ;;  %v424_v15 = vpack.c.bf16 %v397_v13, %v396_v12  ;;  %v400_v18 = vld [vmem:[%s3839_s24 + $0x60] sm:$0xff]  ;;  %v401_v19 = vld [vmem:[%s3839_s24 + $0x68] sm:$0xff]  ;;  %v425_v20 = vpack.c.bf16 %v399_v17, %v398_v16  ;;  %v402_v22 = vld [vmem:[%s3839_s24 + $0x70] sm:$0xff]  ;;  %v3923_v8 = vrot.slane %v1078_v0, %v1502_v60  ;;  %v3933_v13 = vadd.s32 16, %v3897_v53 }
  0x15   : > { %3349 = vmatprep.mubr.msk.bf16.mxu0 %vm451_vm0, %v422_v9  ;;  %v426_v21 = vpack.c.bf16 %v401_v19, %v400_v18  ;;  %v403_v23 = vld [vmem:[%s3839_s24 + $0x78] sm:$0xff]  ;;  %v404_v24 = vld [vmem:[%s3839_s24 + $0x80] sm:$0xff]  ;;  %v405_v25 = vld [vmem:[%s3839_s24 + $0x88] sm:$0xff]  ;;  %v3925_v9 = vrot.slane %v1078_v0, %v1713_v61  ;;  %v3939_v16 = vrot.slane %v1078_v0, %v1538_v3  ;;  %v3941_v17 = vrot.slane %v1078_v0, %v1606_v4 }
  0x16   : > { %v427_v26 = vpack.c.bf16 %v403_v23, %v402_v22  ;;  %v428_v27 = vpack.c.bf16 %v405_v25, %v404_v24  ;;  %v406_v28 = vld [vmem:[%s3839_s24 + $0x90] sm:$0xff]  ;;  %v407_v29 = vld [vmem:[%s3839_s24 + $0x98] sm:$0xff]  ;;  %v408_v30 = vld [vmem:[%s3839_s24 + $0xa0] sm:$0xff]  ;;  %v6162_v18 = vsub.s32 0, %v3897_v53  ;;  %v3945_v19 = vadd.s32 32, %v3897_v53 }
  0x17   : > { %v409_v31 = vld [vmem:[%s3839_s24 + $0xa8] sm:$0xff]  ;;  %v429_v32 = vpack.c.bf16 %v407_v29, %v406_v28  ;;  %v410_v34 = vld [vmem:[%s3839_s24 + $0xb0] sm:$0xff]  ;;  %v411_v35 = vld [vmem:[%s3839_s24 + $0xb8] sm:$0xff]  ;;  %6277 = vst [vmem:[#allocation3_spill] sm:$0xff] %v3925_v9  ;;  %v3952_v23 = vadd.s32 64, %v3897_v53  ;;  %v919_v24 = vand.u32 15, %v3930_v11 }
  0x18   : > { %v430_v33 = vpack.c.bf16 %v409_v31, %v408_v30  ;;  %v412_v36 = vld [vmem:[%s3839_s24 + $0xc0] sm:$0xff]  ;;  %v413_v37 = vld [vmem:[%s3839_s24 + $0xc8] sm:$0xff]  ;;  %v431_v38 = vpack.c.bf16 %v411_v35, %v410_v34  ;;  %v414_v40 = vld [vmem:[%s3839_s24 + $0xd0] sm:$0xff]  ;;  %v2049_v28 = vsub.s32 6, %v3897_v53  ;;  %v920_v29 = vand.u32 15, %v3933_v13 }
  0x19   : > { %v432_v39 = vpack.c.bf16 %v413_v37, %v412_v36  ;;  %v415_v41 = vld [vmem:[%s3839_s24 + $0xd8] sm:$0xff]  ;;  %v416_v42 = vld [vmem:[%s3839_s24 + $0xe0] sm:$0xff]  ;;  %v417_v43 = vld [vmem:[%s3839_s24 + $0xe8] sm:$0xff]  ;;  %v3971_v35 = vadd.s32 112, %v3897_v53  ;;  %v3974_v36 = vadd.s32 104, %v3897_v53  ;;  %v4007_v3 = vadd.s32 88, %v3897_v53 }
  0x1a   : > { %v433_v44 = vpack.c.bf16 %v415_v41, %v414_v40  ;;  %v434_v45 = vpack.c.bf16 %v417_v43, %v416_v42  ;;  %v418_v46 = vld [vmem:[%s3839_s24 + $0xf0] sm:$0xff]  ;;  %v419_v47 = vld [vmem:[%s3839_s24 + $0xf8] sm:$0xff]  ;;  %v4010_v4 = vadd.s32 80, %v3897_v53  ;;  %vm4079_vm2 = vcmp.gt.s32.totalorder %v920_v29, 0 }
  0x1b   : > { %v435_v48 = vpack.c.bf16 %v419_v47, %v418_v46  ;;  %vm4093_vm3 = vcmp.lt.s32.totalorder %v919_v24, 15 }
  0x1c   : > { %3350 = vmatmul.mubr.msk.bf16.gmra.mxu0 %vm451_vm0, %v423_v14 }
  0x1d   : > { %3353 = vmatprep.mubr.msk.bf16.mxu0 %vm451_vm0, %v424_v15 }
  0x24   : > { %3354 = vmatmul.mubr.msk.bf16.gmra.mxu0 %vm451_vm0, %v425_v20 }
  0x25   : > { %3357 = vmatprep.mubr.msk.bf16.mxu0 %vm451_vm0, %v426_v21 }
  0x2c   : > { %3358 = vmatmul.mubr.msk.bf16.gmra.mxu0 %vm451_vm0, %v427_v26  ;;  %v3956_v26 = vadd.s32 96, %v3897_v53 }
  0x2d   : > { %3361 = vmatprep.mubr.msk.bf16.mxu0 %vm451_vm0, %v428_v27  ;;  %v1817_v27 = vsub.s32 2, %v3897_v53 }
  0x2f   : > { %v3982_v43 = vrot.slane %v1078_v0, %v1817_v27  ;;  %v4019_v27 = vadd.s32 72, %v3897_v53 }
  0x31   : > { %6279 = vst [vmem:[#allocation5_spill] sm:$0xff] %v4019_v27 }
  0x34   : > { %3362 = vmatmul.mubr.msk.bf16.gmra.mxu0 %vm451_vm0, %v429_v32  ;;  %v3967_v32 = vrot.slane %v1078_v0, %v6162_v18  ;;  %v4059_v18 = vadd.s32 208, %v3897_v53 }
  0x35   : > { %3365 = vmatprep.mubr.msk.bf16.mxu0 %vm451_vm0, %v430_v33 }
  0x36   : > { %6285 = vst [vmem:[#allocation11_spill] sm:$0xff] %v4059_v18 }
  0x3c   : > { %3366 = vmatmul.mubr.msk.bf16.gmra.mxu0 %vm451_vm0, %v431_v38 }
  0x3d   : > { %3369 = vmatprep.mubr.msk.bf16.mxu0 %vm451_vm0, %v432_v39 }
  0x44   : > { %3370 = vmatmul.mubr.msk.bf16.gmra.mxu0 %vm451_vm0, %v433_v44  ;;  %v3985_v44 = vadd.s32 120, %v3897_v53 }
  0x45   : > { %3373 = vmatprep.mubr.msk.bf16.mxu0 %vm451_vm0, %v434_v45  ;;  %v3987_v45 = vrot.slane %v1078_v0, %v2049_v28 }
  0x4c   : > { %3374 = vmatmul.mubr.msk.bf16.gmra.mxu0 %vm451_vm0, %v435_v48 }
  0xd4   : > { %v3347_v51 = vpop.f32.mrf.mxu0 }
  0xd5   : > { %v3895_v52 = vadd.f32 %v3347_v51, %v3892_v49 }
  0xd6   : > { %v534_v54 = vpop.f32.mrf.mxu0 }
  0xd7   : > { %v3173_v55 = vmul.f32 -1.442695, %v3895_v52  ;;  %v3901_v56 = vadd.f32 %v3892_v49, %v534_v54 }
  0xd8   : > { %v3348_v57 = vpop.f32.mrf.mxu0 }
  0xd9   : > { %3451 = vpow2.f32 %v3173_v55  ;;  %v3171_v58 = vmul.f32 -1.442695, %v3901_v56  ;;  %v3905_v59 = vadd.f32 %v3348_v57, %v3892_v49  ;;  %v3995_v55 = vadd.s32 136, %v3897_v53 }
  0xda   : > { %v537_v63 = vpop.f32.mrf.mxu0 }
  0xdb   : > { %3453 = vpow2.f32 %v3171_v58  ;;  %v3174_v1 = vmul.f32 -1.442695, %v3905_v59  ;;  %v3915_v2 = vadd.f32 %v3892_v49, %v537_v63  ;;  %6278 = vst [vmem:[#allocation4_spill] sm:$0xff] %v3995_v55  ;;  %v3999_v58 = vadd.s32 128, %v3897_v53 }
  0xdc   : > { %v3351_v5 = vpop.f32.mrf.mxu0 }
  0xdd   : > { %3455 = vpow2.f32 %v3174_v1  ;;  %v3172_v6 = vmul.f32 -1.442695, %v3915_v2  ;;  %v3921_v7 = vadd.f32 %v3351_v5, %v3892_v49  ;;  %v4068_v1 = vadd.s32 200, %v3897_v53 }
  0xde   : > { %v550_v12 = vpop.f32.mrf.mxu0 }
  0xdf   : > { %3457 = vpow2.f32 %v3172_v6  ;;  %v3177_v14 = vmul.f32 -1.442695, %v3921_v7  ;;  %v3937_v15 = vadd.f32 %v3892_v49, %v550_v12  ;;  %6286 = vst [vmem:[#allocation12_spill] sm:$0xff] %v4068_v1 }
  0xe0   : > { %v3352_v20 = vpop.f32.mrf.mxu0 }
  0xe1   : > { %3459 = vpow2.f32 %v3177_v14  ;;  %v3175_v21 = vmul.f32 -1.442695, %v3937_v15  ;;  %v3949_v22 = vadd.f32 %v3352_v20, %v3892_v49 }
  0xe2   : > { %v553_v25 = vpop.f32.mrf.mxu0 }
  0xe3   : > { %3461 = vpow2.f32 %v3175_v21  ;;  %v3178_v30 = vmul.f32 -1.442695, %v3949_v22  ;;  %v3963_v31 = vadd.f32 %v3892_v49, %v553_v25 }
  0xe4   : > { %v3355_v34 = vpop.f32.mrf.mxu0 }
  0xe5   : > { %3463 = vpow2.f32 %v3178_v30  ;;  %v3176_v37 = vmul.f32 -1.442695, %v3963_v31  ;;  %v3978_v38 = vadd.f32 %v3355_v34, %v3892_v49 }
  0xe6   : > { %v3452_v40 = vpop.eup %3451  ;;  %v566_v41 = vpop.f32.mrf.mxu0 }
  0xe7   : > { %v759_v46 = vadd.f32 1.0, %v3452_v40  ;;  %3465 = vpow2.f32 %v3176_v37  ;;  %v3181_v47 = vmul.f32 -1.442695, %v3978_v38  ;;  %v3991_v48 = vadd.f32 %v3892_v49, %v566_v41 }
  0xe8   : > { %v3454_v50 = vpop.eup %3453  ;;  %v3356_v51 = vpop.f32.mrf.mxu0  ;;  %v4026_v41 = vadd.s32 224, %v3897_v53 }
  0xe9   : > { %3467 = vrcp.f32 %v759_v46  ;;  %v757_v60 = vadd.f32 1.0, %v3454_v50  ;;  %v3179_v61 = vmul.f32 -1.442695, %v3991_v48  ;;  %v4003_v62 = vadd.f32 %v3356_v51, %v3892_v49 }
  0xea   : > { %v3456_v63 = vpop.eup %3455  ;;  %3469 = vpow2.f32 %v3181_v47  ;;  %v569_v0 = vpop.f32.mrf.mxu0  ;;  %6280 = vst [vmem:[#allocation6_spill] sm:$0xff] %v4026_v41  ;;  %v4056_v47 = vadd.s32 240, %v3897_v53 }
  0xeb   : > { %3471 = vrcp.f32 %v757_v60  ;;  %v760_v5 = vadd.f32 1.0, %v3456_v63  ;;  %v3182_v6 = vmul.f32 -1.442695, %v4003_v62  ;;  %v4014_v12 = vadd.f32 %v3892_v49, %v569_v0 }
  0xec   : > { %v3458_v14 = vpop.eup %3457  ;;  %3473 = vpow2.f32 %v3179_v61  ;;  %v3359_v20 = vpop.f32.mrf.mxu0  ;;  %v4048_v0 = vadd.s32 216, %v3897_v53  ;;  %6284 = vst [vmem:[#allocation10_spill] sm:$0xff] %v4056_v47 }
  0xed   : > { %3475 = vrcp.f32 %v760_v5  ;;  %v758_v28 = vadd.f32 1.0, %v3458_v14  ;;  %v3180_v30 = vmul.f32 -1.442695, %v4014_v12  ;;  %v4023_v34 = vadd.f32 %v3359_v20, %v3892_v49 }
  0xee   : > { %v3460_v37 = vpop.eup %3459  ;;  %3477 = vpow2.f32 %v3182_v6  ;;  %v582_v40 = vpop.f32.mrf.mxu0  ;;  %v4036_v5 = vadd.s32 248, %v3897_v53  ;;  %6283 = vst [vmem:[#allocation9_spill] sm:$0xff] %v4048_v0 }
  0xef   : > { %3479 = vrcp.f32 %v758_v28  ;;  %v763_v50 = vadd.f32 1.0, %v3460_v37  ;;  %v3185_v51 = vmul.f32 -1.442695, %v4023_v34  ;;  %v4032_v60 = vadd.f32 %v3892_v49, %v582_v40 }
  0xf0   : > { %v3462_v61 = vpop.eup %3461  ;;  %3481 = vpow2.f32 %v3180_v30  ;;  %v3360_v63 = vpop.f32.mrf.mxu0  ;;  %6281 = vst [vmem:[#allocation7_spill] sm:$0xff] %v4036_v5  ;;  %v4044_v30 = vadd.s32 232, %v3897_v53 }
  0xf1   : > { %3483 = vrcp.f32 %v763_v50  ;;  %v761_v14 = vadd.f32 1.0, %v3462_v61  ;;  %v3183_v20 = vmul.f32 -1.442695, %v4032_v60  ;;  %v4041_v28 = vadd.f32 %v3360_v63, %v3892_v49 }
  0xf2   : > { %v3464_v37 = vpop.eup %3463  ;;  %3485 = vpow2.f32 %v3185_v51  ;;  %v585_v40 = vpop.f32.mrf.mxu0  ;;  %6282 = vst [vmem:[#allocation8_spill] sm:$0xff] %v4044_v30 }
  0xf3   : > { %3487 = vrcp.f32 %v761_v14  ;;  %v764_v6 = vadd.f32 1.0, %v3464_v37  ;;  %v3186_v50 = vmul.f32 -1.442695, %v4041_v28  ;;  %v4052_v61 = vadd.f32 %v3892_v49, %v585_v40 }
  0xf4   : > { %v3466_v63 = vpop.eup %3465  ;;  %3489 = vpow2.f32 %v3183_v20  ;;  %v3363_v51 = vpop.f32.mrf.mxu0 }
  0xf5   : > { %3491 = vrcp.f32 %v764_v6  ;;  %v762_v14 = vadd.f32 1.0, %v3466_v63  ;;  %v3184_v37 = vmul.f32 -1.442695, %v4052_v61  ;;  %v4063_v46 = vadd.f32 %v3363_v51, %v3892_v49 }
  0xf6   : > { %v3468_v40 = vpop.eup %3467  ;;  %3493 = vpow2.f32 %v3186_v50  ;;  %v598_v25 = vpop.f32.mrf.mxu0 }
  0xf7   : > { %v3470_v57 = vpop.eup %3469  ;;  %v4071_v54 = vmul.f32 %v3468_v40, %v3895_v52  ;;  %3495 = vrcp.f32 %v762_v14  ;;  %v3189_v6 = vmul.f32 -1.442695, %v4063_v46  ;;  %v4075_v63 = vadd.f32 %v3892_v49, %v598_v25 }
  0xf8   : > { %v3472_v51 = vpop.eup %3471  ;;  %v767_v21 = vadd.f32 1.0, %v3470_v57  ;;  %3497 = vpow2.f32 %v3184_v37  ;;  %v3364_v20 = vpop.f32.mrf.mxu0 }
  0xf9   : > { %6287 = vst [vmem:[#allocation13_spill] sm:$0xff] %v4071_v54  ;;  %v3474_v14 = vpop.eup %3473  ;;  %v1118_v40 = vrot.slane %v4071_v54, 7  ;;  %v4089_v39 = vmul.f32 %v3923_v8, %v4071_v54  ;;  %v4100_v37 = vmul.f32 %v3925_v9, %v4071_v54  ;;  %v4103_v52 = vmul.f32 %v3472_v51, %v3901_v56 }
  0xfa   : > { %v3476_v57 = vpop.eup %3475  ;;  %3499 = vrcp.f32 %v767_v21  ;;  %v765_v42 = vadd.f32 1.0, %v3474_v14  ;;  %v4105_v25 = vpop.f32.mrf.mxu0  ;;  %v4109_v24 = vmul.f32 %v3927_v10, %v4071_v54  ;;  %v3187_v33 = vmul.f32 -1.442695, %v4075_v63 }
  0xfb   : > { %6290 = vst [vmem:[#allocation14_spill] sm:$0xff] %v4089_v39  ;;  %6293 = vst [vmem:[#allocation15_spill] sm:$0xff] %v4100_v37  ;;  %v3478_v11 = vpop.eup %3477  ;;  %v4112_v29 = vmul.f32 %v3476_v57, %v3905_v59  ;;  %3501 = vpow2.f32 %v3189_v6  ;;  %v4119_v21 = vmul.f32 %v3923_v8, %v4103_v52  ;;  %v4122_v14 = vadd.f32 %v3364_v20, %v3892_v49 }
  0xfc   : > { %6294 = vst [vmem:[#allocation16_spill] sm:$0xff] %v4103_v52  ;;  %6295 = vst [vmem:[#allocation17_spill] sm:$0xff] %v4109_v24  ;;  %v3480_v39 = vpop.eup %3479  ;;  %v4124_v37 = vpop.f32.mrf.mxu0  ;;  %v4128_v59 = vmul.f32 %v3925_v9, %v4103_v52  ;;  %3503 = vrcp.f32 %v765_v42  ;;  %v6308_v53 = vrot.slane %v4103_v52, 7  ;;  %v6311_v55 = vrot.slane %v4071_v54, 1 }
  0xfd   : > { %6296 = vst [vmem:[#allocation18_spill] sm:$0xff] %v4112_v29  ;;  %6297 = vst [vmem:[#allocation19_spill] sm:$0xff] %v4119_v21  ;;  %v3482_v24 = vpop.eup %3481  ;;  %v1507_v51 = vmul.f32 %v3923_v8, %v4112_v29  ;;  %v4136_v21 = vmul.f32 %v3925_v9, %v4112_v29  ;;  %v4140_v20 = vmul.f32 %v3927_v10, %v4112_v29  ;;  %v6301_v57 = vrot.slane %v4112_v29, 7 }
  0xfe   : > { %6298 = vst [vmem:[#allocation20_spill] sm:$0xff] %v4128_v59  ;;  %v3484_v56 = vpop.eup %3483  ;;  %v854_v1 = vmul.f32 %v3480_v39, %v3915_v2  ;;  %v4143_v59 = vpop.f32.mrf.mxu0  ;;  %v4159_v2 = vadd.f32 1.0, %v3482_v24  ;;  %3505 = vpow2.f32 %v3187_v33 }
  0xff   : > { %6299 = vst [vmem:[#allocation21_spill] sm:$0xff] %v4136_v21  ;;  %6300 = vst [vmem:[#allocation22_spill] sm:$0xff] %v4140_v20  ;;  %v3486_v6 = vpop.eup %3485  ;;  %v4148_v18 = vsel %vm1114_vm1, %v1118_v40, %v6301_v57  ;;  %v4151_v0 = vmul.f32 %v3484_v56, %v3921_v7  ;;  %v6304_v21 = vand.u32 15, %v3945_v19  ;;  %v768_v20 = vadd.f32 1.0, %v3478_v11 }
 0x100   : > { %6302 = vst [vmem:[#allocation23_spill] sm:$0xff] %v4148_v18  ;;  %v3488_v39 = vpop.eup %3487  ;;  %v1543_v42 = vmul.f32 %v3939_v16, %v4148_v18  ;;  %v1116_v41 = vrot.slane %v854_v1, 7  ;;  %v1308_v30 = vrot.slane %v854_v1, 1  ;;  %v1505_v7 = vmul.f32 %v3923_v8, %v854_v1  ;;  %v4167_v5 = vpop.f32.mrf.mxu0 }
 0x101   : > { %6303 = vst [vmem:[#allocation24_spill] sm:$0xff] %v4151_v0  ;;  %vm4155_vm5 = vcmp.gt.s32.totalorder %v6304_v21, 0  ;;  %v3490_v57 = vpop.eup %3489  ;;  %v1716_v56 = vmul.f32 %v3925_v9, %v854_v1  ;;  %v1126_v19 = vrot.slane %v4151_v0, 7  ;;  %v4177_v27 = vmul.f32 %v3923_v8, %v4151_v0 }
 0x102   : > { %v3492_v11 = vpop.eup %3491  ;;  %v4169_v24 = vadd.f32 %v1543_v42, %v1507_v51  ;;  %v1117_v18 = vsel %vm1114_vm1, %v6308_v53, %v1116_v41  ;;  %v1119_v33 = vsel %vm1114_vm1, %v1116_v41, %v1118_v40  ;;  %v1311_v51 = vsel %vm1306_vm4, %v1308_v30, %v6311_v55 }
 0x103   : > { %6309 = vst [vmem:[#allocation26_spill] sm:$0xff] %v4177_v27  ;;  %v4179_v1 = vpop.eup %3493  ;;  %v4183_v21 = vsel %vm4079_vm2, %v1119_v33, 0.0  ;;  %v1541_v42 = vmul.f32 %v3939_v16, %v1117_v18  ;;  %v1752_v53 = vmul.f32 %v3967_v32, %v1117_v18  ;;  %v6312_v41 = vrot.slane %v4103_v52, 1 }
 0x104   : > { %6307 = vst [vmem:[#allocation25_spill] sm:$0xff] %v4169_v24  ;;  %6310 = vst [vmem:[#allocation27_spill] sm:$0xff] %v4183_v21  ;;  %v3496_v24 = vpop.eup %3495  ;;  %v4197_v27 = vsel %vm4093_vm3, %v1311_v51, 0.0  ;;  %v4201_v50 = vmul.f32 %v3939_v16, %v4183_v21  ;;  %v4205_v55 = vmul.f32 %v3925_v9, %v4151_v0  ;;  %v4215_v13 = vmul.f32 %v3492_v11, %v3949_v22  ;;  %v4217_v51 = vpop.f32.mrf.mxu0 }
 0x105   : > { %v4193_v40 = vsel %vm1306_vm4, %v6312_v41, %v1308_v30  ;;  %6314 = vst [vmem:[#allocation29_spill] sm:$0xff] %v4197_v27  ;;  %v3498_v33 = vpop.eup %3497  ;;  %v4207_v18 = vadd.f32 %v1541_v42, %v1505_v7  ;;  %v4209_v54 = vadd.f32 %v1752_v53, %v1716_v56  ;;  %v4212_v30 = vmul.f32 %v3488_v39, %v3937_v15 }
 0x106   : > { %6313 = vst [vmem:[#allocation28_spill] sm:$0xff] %v4193_v40  ;;  %6315 = vst [vmem:[#allocation30_spill] sm:$0xff] %v4201_v50  ;;  %v4221_v41 = vmul.f32 %v3927_v10, %v4151_v0  ;;  %v4224_v40 = vmul.f32 %v3496_v24, %v3963_v31  ;;  %3507 = vrcp.f32 %v768_v20  ;;  %v771_v7 = vadd.f32 1.0, %v3486_v6 }
 0x107   : > { %6316 = vst [vmem:[#allocation31_spill] sm:$0xff] %v4205_v55  ;;  %6317 = vst [vmem:[#allocation32_spill] sm:$0xff] %v4207_v18  ;;  %v3500_v42 = vpop.eup %3499  ;;  %v1122_v56 = vrot.slane %v4212_v30, 7  ;;  %v1508_v22 = vmul.f32 %v3923_v8, %v4212_v30  ;;  %v6323_v39 = vand.u32 15, %v3952_v23  ;;  %v769_v53 = vadd.f32 1.0, %v3490_v57 }
 0x108   : > { %6318 = vst [vmem:[#allocation33_spill] sm:$0xff] %v4209_v54  ;;  %6319 = vst [vmem:[#allocation34_spill] sm:$0xff] %v4212_v30  ;;  %v3502_v18 = vpop.eup %3501  ;;  %v4238_v31 = vmul.f32 %v3925_v9, %v4212_v30  ;;  %v4242_v6 = vmul.f32 %v3927_v10, %v4212_v30  ;;  %v1128_v20 = vrot.slane %v4215_v13, 7  ;;  %v6328_v23 = vrot.slane %v4112_v29, 7  ;;  %v4256_v54 = vpop.f32.mrf.mxu0 }
 0x109   : > { %6320 = vst [vmem:[#allocation35_spill] sm:$0xff] %v4215_v13  ;;  %6321 = vst [vmem:[#allocation36_spill] sm:$0xff] %v4221_v41  ;;  %vm4232_vm6 = vcmp.gt.s32.totalorder %v6323_v39, 0  ;;  %v1511_v57 = vmul.f32 %v3923_v8, %v4215_v13  ;;  %v4253_v15 = vmul.f32 %v3925_v9, %v4215_v13  ;;  %v1124_v50 = vrot.slane %v4224_v40, 7  ;;  %v3504_v41 = vpop.eup %3503 }
 0x10a   : > { %6322 = vst [vmem:[#allocation37_spill] sm:$0xff] %v4224_v40  ;;  %6326 = vst [vmem:[#allocation38_spill] sm:$0xff] %v4238_v31  ;;  %v1123_v39 = vsel %vm1114_vm1, %v6328_v23, %v1122_v56  ;;  %v4263_v24 = vsel %vm1114_vm1, %v1126_v19, %v1128_v20  ;;  %v4267_v23 = vmul.f32 %v3927_v10, %v4215_v13  ;;  %3509 = vrcp.f32 %v4159_v2 }
 0x10b   : > { %6327 = vst [vmem:[#allocation39_spill] sm:$0xff] %v4242_v6  ;;  %6329 = vst [vmem:[#allocation40_spill] sm:$0xff] %v4253_v15  ;;  %v4260_v6 = vsel %vm4155_vm5, %v1123_v39, 0.0  ;;  %v1547_v29 = vmul.f32 %v3939_v16, %v4263_v24  ;;  %v4275_v47 = vsel %vm1114_vm1, %v1122_v56, %v1124_v50  ;;  %v4278_v39 = vsel %vm1114_vm1, %v1124_v50, %v1126_v19  ;;  %v3506_v30 = vpop.eup %3505  ;;  %v630_v50 = vpop.f32.mrf.mxu0 }
 0x10c   : > { %6330 = vst [vmem:[#allocation41_spill] sm:$0xff] %v4260_v6  ;;  %6331 = vst [vmem:[#allocation42_spill] sm:$0xff] %v4263_v24  ;;  %v1544_v21 = vmul.f32 %v3939_v16, %v4260_v6  ;;  %v1509_v31 = vmul.f32 %v3923_v8, %v4224_v40  ;;  %v4286_v27 = vmul.f32 %v3925_v9, %v4224_v40  ;;  %3511 = vrcp.f32 %v771_v7 }
 0x10d   : > { %6332 = vst [vmem:[#allocation43_spill] sm:$0xff] %v4267_v23  ;;  %6333 = vst [vmem:[#allocation44_spill] sm:$0xff] %v4275_v47  ;;  %v1545_v23 = vmul.f32 %v3939_v16, %v4275_v47  ;;  %v4289_v6 = vmul.f32 %v3500_v42, %v3978_v38  ;;  %v4293_v56 = vadd.f32 %v1547_v29, %v1511_v57  ;;  %3513 = vrcp.f32 %v769_v53  ;;  %v3372_v38 = vpop.f32.mrf.mxu0 }
 0x10e   : > { %6334 = vst [vmem:[#allocation45_spill] sm:$0xff] %v4278_v39  ;;  %6335 = vst [vmem:[#allocation46_spill] sm:$0xff] %v4286_v27  ;;  %v4291_v55 = vadd.f32 %v1544_v21, %v1508_v22  ;;  %v4296_v19 = vmul.f32 %v3504_v41, %v3991_v48  ;;  %v4303_v47 = vmul.f32 %v3927_v10, %v4224_v40  ;;  %v770_v42 = vadd.f32 1.0, %v3498_v33 }
 0x10f   : > { %6336 = vst [vmem:[#allocation47_spill] sm:$0xff] %v4289_v6  ;;  %6338 = vst [vmem:[#allocation49_spill] sm:$0xff] %v4293_v56  ;;  %v4299_v39 = vadd.f32 %v1545_v23, %v1509_v31  ;;  %v4309_v29 = vmul.f32 %v3923_v8, %v4289_v6  ;;  %v4313_v48 = vmul.f32 %v3925_v9, %v4289_v6  ;;  %v772_v23 = vadd.f32 1.0, %v4179_v1 }
 0x110   : > { %6337 = vst [vmem:[#allocation48_spill] sm:$0xff] %v4291_v55  ;;  %6339 = vst [vmem:[#allocation50_spill] sm:$0xff] %v4296_v19  ;;  %v4317_v2 = vmul.f32 %v3927_v10, %v4289_v6  ;;  %v6189_v21 = vrot.slane %v4296_v19, 7  ;;  %v1512_v22 = vmul.f32 %v3923_v8, %v4296_v19  ;;  %v4325_v31 = vmul.f32 %v3925_v9, %v4296_v19 }
 0x111   : > { %6340 = vst [vmem:[#allocation51_spill] sm:$0xff] %v4299_v39  ;;  %6341 = vst [vmem:[#allocation52_spill] sm:$0xff] %v4303_v47  ;;  %v775_v47 = vadd.f32 1.0, %v3502_v18  ;;  %v773_v55 = vadd.f32 1.0, %v3506_v30  ;;  %v3190_v39 = vmul.f32 -1.442695, %v4122_v14  ;;  %3515 = vrcp.f32 %v772_v23 }
 0x112   : > { %6342 = vst [vmem:[#allocation53_spill] sm:$0xff] %v4309_v29  ;;  %6343 = vst [vmem:[#allocation54_spill] sm:$0xff] %v4313_v48  ;;  %v1131_v57 = vsel %vm1114_vm1, %v1128_v20, %v6189_v21  ;;  %v4340_v53 = vadd.f32 %v3892_v49, %v4105_v25  ;;  %v4344_v1 = vadd.f32 %v4124_v37, %v3892_v49  ;;  %3517 = vrcp.f32 %v770_v42 }
 0x113   : > { %6344 = vst [vmem:[#allocation55_spill] sm:$0xff] %v4317_v2  ;;  %6345 = vst [vmem:[#allocation56_spill] sm:$0xff] %v4325_v31  ;;  %v4333_v41 = vsel %vm4232_vm6, %v1131_v57, 0.0  ;;  %v3508_v27 = vpop.eup %3507  ;;  %v4351_v18 = vadd.f32 %v3892_v49, %v4143_v59  ;;  %v4355_v30 = vadd.f32 %v4167_v5, %v3892_v49  ;;  %v4361_v25 = vmul.f32 %v3927_v10, %v4296_v19 }
 0x114   : > { %6346 = vst [vmem:[#allocation57_spill] sm:$0xff] %v4333_v41  ;;  %v1548_v7 = vmul.f32 %v3939_v16, %v4333_v41  ;;  %v4347_v33 = vmul.f32 %v3508_v27, %v4003_v62  ;;  %3519 = vrcp.f32 %v775_v47  ;;  %v3188_v37 = vmul.f32 -1.442695, %v4340_v53  ;;  %v633_v62 = vpop.f32.mrf.mxu0 }
 0x115   : > { %6348 = vst [vmem:[#allocation59_spill] sm:$0xff] %v4361_v25  ;;  %v3193_v5 = vmul.f32 -1.442695, %v4344_v1  ;;  %3521 = vrcp.f32 %v773_v55  ;;  %v3194_v47 = vmul.f32 -1.442695, %v4355_v30  ;;  %v6349_v57 = vrot.slane %v4289_v6, 7 }
 0x116   : > { %v4357_v11 = vadd.f32 %v1548_v7, %v1512_v22  ;;  %v1136_v27 = vrot.slane %v4347_v33, 7  ;;  %v1515_v59 = vmul.f32 %v3923_v8, %v4347_v33  ;;  %v4371_v42 = vmul.f32 %v3925_v9, %v4347_v33 }
 0x117   : > { %v3191_v22 = vmul.f32 -1.442695, %v4351_v18  ;;  %3523 = vpow2.f32 %v3190_v39  ;;  %v4382_v7 = vadd.f32 %v3892_v49, %v4217_v51  ;;  %v4386_v20 = vadd.f32 %v4256_v54, %v3892_v49  ;;  %v3510_v56 = vpop.eup %3509 }
 0x118   : > { %6347 = vst [vmem:[#allocation58_spill] sm:$0xff] %v4357_v11  ;;  %v4378_v23 = vsel %vm1114_vm1, %v6349_v57, %v1136_v27  ;;  %v6352_v21 = vand.u32 15, %v3956_v26  ;;  %3525 = vpow2.f32 %v3188_v37  ;;  %v4397_v39 = vadd.f32 %v3892_v49, %v630_v50  ;;  %v3375_v57 = vpop.f32.mrf.mxu0 }
 0x119   : > { %6350 = vst [vmem:[#allocation60_spill] sm:$0xff] %v4378_v23  ;;  %6351 = vst [vmem:[#allocation61_spill] sm:$0xff] %v4386_v20  ;;  %v1551_v55 = vmul.f32 %v3939_v16, %v4378_v23  ;;  %v4400_v51 = vadd.f32 %v3372_v38, %v3892_v49  ;;  %v4404_v54 = vmul.f32 %v3927_v10, %v4347_v33  ;;  %3527 = vpow2.f32 %v3193_v5  ;;  %v3512_v11 = vpop.eup %3511 }
 0x11a   : > { %vm4392_vm7 = vcmp.gt.s32.totalorder %v6352_v21, 0  ;;  %6355 = vst [vmem:[#allocation62_spill] sm:$0xff] %v4397_v39  ;;  %v3192_v26 = vmul.f32 -1.442695, %v4382_v7  ;;  %v4408_v21 = vadd.f32 %v3892_v49, %v633_v62  ;;  %v4413_v50 = vmul.f32 %v3510_v56, %v4014_v12 }
 0x11b   : > { %6356 = vst [vmem:[#allocation63_spill] sm:$0xff] %v4400_v51  ;;  %6357 = vst [vmem:[#allocation64_spill] sm:$0xff] %v4404_v54  ;;  %v4410_v40 = vadd.f32 %v1551_v55, %v1515_v59  ;;  %3529 = vpow2.f32 %v3191_v22  ;;  %v3197_v38 = vmul.f32 -1.442695, %v4386_v20  ;;  %v3195_v37 = vmul.f32 -1.442695, %v4397_v39  ;;  %v3514_v55 = vpop.eup %3513 }
 0x11c   : > { %6358 = vst [vmem:[#allocation65_spill] sm:$0xff] %v4408_v21  ;;  %6360 = vst [vmem:[#allocation67_spill] sm:$0xff] %v4413_v50  ;;  %3531 = vpow2.f32 %v3194_v47  ;;  %v4418_v2 = vmul.f32 -1.442695, %v4400_v51  ;;  %v4421_v5 = vadd.f32 %v3375_v57, %v3892_v49  ;;  %v1132_v62 = vrot.slane %v4413_v50, 7 }
 0x11d   : > { %6359 = vst [vmem:[#allocation66_spill] sm:$0xff] %v4410_v40  ;;  %v1513_v12 = vmul.f32 %v3923_v8, %v4413_v50  ;;  %v6362_v56 = vand.u32 15, %v3971_v35  ;;  %v4434_v47 = vmul.f32 -1.442695, %v4408_v21  ;;  %v4438_v57 = vmul.f32 %v3925_v9, %v4413_v50 }
 0x11e   : > { %6361 = vst [vmem:[#allocation68_spill] sm:$0xff] %v4421_v5  ;;  %v4442_v59 = vmul.f32 %v3927_v10, %v4413_v50  ;;  %v4445_v0 = vmul.f32 %v3512_v11, %v4023_v34  ;;  %3533 = vpow2.f32 %v3192_v26  ;;  %v6368_v35 = vrot.slane %v4296_v19, 7  ;;  %v3516_v24 = vpop.eup %3515 }
 0x11f   : > { %vm4429_vm8 = vcmp.gt.s32.totalorder %v6362_v56, 0  ;;  %6365 = vst [vmem:[#allocation69_spill] sm:$0xff] %v4438_v57  ;;  %v4453_v54 = vmul.f32 %v3514_v55, %v4032_v60  ;;  %3535 = vpow2.f32 %v3197_v38  ;;  %v4456_v15 = vmul.f32 -1.442695, %v4421_v5 }
 0x120   : > { %6366 = vst [vmem:[#allocation70_spill] sm:$0xff] %v4442_v59  ;;  %6367 = vst [vmem:[#allocation71_spill] sm:$0xff] %v4445_v0  ;;  %v4450_v56 = vsel %vm1114_vm1, %v6368_v35, %v1132_v62  ;;  %v6370_v13 = vrot.slane %v4289_v6, 7  ;;  %v1142_v11 = vrot.slane %v4445_v0, 7  ;;  %v3518_v35 = vpop.eup %3517  ;;  %v4469_v60 = vmul.f32 %v3923_v8, %v4445_v0 }
 0x121   : > { %6369 = vst [vmem:[#allocation72_spill] sm:$0xff] %v4450_v56  ;;  %v1549_v34 = vmul.f32 %v3939_v16, %v4450_v56  ;;  %v4473_v38 = vmul.f32 %v3927_v10, %v4445_v0  ;;  %v1138_v55 = vrot.slane %v4453_v54, 7  ;;  %v1516_v29 = vmul.f32 %v3923_v8, %v4453_v54 }
 0x122   : > { %v4461_v59 = vsel %vm1114_vm1, %v1132_v62, %v6370_v13  ;;  %v3520_v62 = vpop.eup %3519  ;;  %v4483_v26 = vmul.f32 %v3925_v9, %v4453_v54  ;;  %v4486_v41 = vmul.f32 %v3516_v24, %v4041_v28  ;;  %v4491_v52 = vmul.f32 %v3927_v10, %v4453_v54 }
 0x123   : > { %6371 = vst [vmem:[#allocation73_spill] sm:$0xff] %v4473_v38  ;;  %v4477_v31 = vadd.f32 %v1549_v34, %v1513_v12  ;;  %v1139_v19 = vsel %vm1114_vm1, %v1136_v27, %v1138_v55  ;;  %v4494_v13 = vmul.f32 %v3518_v35, %v4052_v61  ;;  %3537 = vpow2.f32 %v3195_v37  ;;  %v646_v12 = vpop.f32.mrf.mxu0  ;;  %v3522_v34 = vpop.eup %3521 }
 0x124   : > { %6373 = vst [vmem:[#allocation75_spill] sm:$0xff] %v4486_v41  ;;  %6374 = vst [vmem:[#allocation76_spill] sm:$0xff] %v4491_v52  ;;  %v6209_v5 = vrot.slane %v4486_v41, 7  ;;  %v1336_v28 = vrot.slane %v4486_v41, 1  ;;  %v4503_v24 = vmul.f32 %v3520_v62, %v4063_v46  ;;  %v6377_v27 = vand.u32 15, %v3974_v36 }
 0x125   : > { %6372 = vst [vmem:[#allocation74_spill] sm:$0xff] %v4477_v31  ;;  %v4498_v31 = vsel %vm4392_vm7, %v1139_v19, 0.0  ;;  %v6380_v61 = vand.u32 15, %v3985_v44  ;;  %v3524_v19 = vpop.eup %3523  ;;  %v1519_v46 = vmul.f32 %v3923_v8, %v4486_v41  ;;  %v4523_v36 = vmul.f32 %v3927_v10, %v4486_v41  ;;  %v3376_v38 = vpop.f32.mrf.mxu0 }
 0x126   : > { %6375 = vst [vmem:[#allocation77_spill] sm:$0xff] %v4498_v31  ;;  %6376 = vst [vmem:[#allocation78_spill] sm:$0xff] %v4503_v24  ;;  %vm4507_vm9 = vcmp.lt.s32.totalorder %v6377_v27, 15  ;;  %v1552_v25 = vmul.f32 %v3939_v16, %v4498_v31  ;;  %v1140_v35 = vrot.slane %v4494_v13, 7  ;;  %v3526_v62 = vpop.eup %3525  ;;  %v4529_v44 = vsel %vm1114_vm1, %v1142_v11, %v6209_v5 }
 0x127   : > { %vm4513_vm10 = vcmp.lt.s32.totalorder %v6380_v61, 15  ;;  %6383 = vst [vmem:[#allocation79_spill] sm:$0xff] %v4523_v36  ;;  %6384 = vst [vmem:[#allocation80_spill] sm:$0xff] %v4529_v44  ;;  %v6385_v27 = vrot.slane %v4445_v0, 1  ;;  %v1332_v21 = vrot.slane %v4494_v13, 1  ;;  %v1517_v51 = vmul.f32 %v3923_v8, %v4494_v13  ;;  %v3528_v57 = vpop.eup %3527 }
 0x128   : > { %v1555_v40 = vmul.f32 %v3939_v16, %v4529_v44  ;;  %v4542_v56 = vsel %vm1114_vm1, %v1138_v55, %v1140_v35  ;;  %v1143_v5 = vsel %vm1114_vm1, %v1140_v35, %v1142_v11  ;;  %v1728_v50 = vmul.f32 %v3925_v9, %v4494_v13 }
 0x129   : > { %v4534_v61 = vsel %vm1306_vm4, %v6385_v27, %v1336_v28  ;;  %v3530_v27 = vpop.eup %3529  ;;  %v4547_v48 = vadd.f32 %v1552_v25, %v1516_v29  ;;  %v4551_v6 = vsel %vm4429_vm8, %v1143_v5, 0.0  ;;  %v1553_v36 = vmul.f32 %v3939_v16, %v4542_v56 }
 0x12a   : > { %6386 = vst [vmem:[#allocation81_spill] sm:$0xff] %v4534_v61  ;;  %6388 = vst [vmem:[#allocation83_spill] sm:$0xff] %v4551_v6  ;;  %v4557_v55 = vmul.f32 %v3927_v10, %v4494_v13  ;;  %v6390_v11 = vand.u32 15, %v3999_v58  ;;  %v3532_v9 = vpop.eup %3531  ;;  %v1587_v29 = vadd.f32 %v1555_v40, %v1519_v46  ;;  %v4568_v22 = vmul.f32 %v3522_v34, %v4075_v63  ;;  %v649_v63 = vpop.f32.mrf.mxu0 }
 0x12b   : > { %6387 = vst [vmem:[#allocation82_spill] sm:$0xff] %v4547_v48  ;;  %v4572_v48 = vmul.f32 %v3923_v8, %v4503_v24  ;;  %v776_v13 = vadd.f32 1.0, %v3524_v19  ;;  %v779_v58 = vadd.f32 1.0, %v3528_v57  ;;  %v4574_v39 = vadd.f32 %v1553_v36, %v1517_v51 }
 0x12c   : > { %6389 = vst [vmem:[#allocation84_spill] sm:$0xff] %v4557_v55  ;;  %vm4561_vm11 = vcmp.gt.s32.totalorder %v6390_v11, 0  ;;  %6393 = vst [vmem:[#allocation85_spill] sm:$0xff] %v4568_v22  ;;  %v774_v55 = vadd.f32 1.0, %v3526_v62  ;;  %v3534_v11 = vpop.eup %3533  ;;  %v1146_v20 = vrot.slane %v4568_v22, 7  ;;  %v6219_v40 = vrot.slane %v4568_v22, 1 }
 0x12d   : > { %6394 = vst [vmem:[#allocation86_spill] sm:$0xff] %v4572_v48  ;;  %v4580_v46 = vmul.f32 %v3923_v8, %v4568_v22  ;;  %v3536_v34 = vpop.eup %3535  ;;  %3539 = vrcp.f32 %v776_v13  ;;  %v777_v25 = vadd.f32 1.0, %v3530_v27  ;;  %v780_v5 = vadd.f32 1.0, %v3532_v9 }
 0x12e   : > { %v778_v48 = vadd.f32 1.0, %v3534_v11  ;;  %v6396_v19 = vand.u32 15, %v4007_v3  ;;  %v1339_v51 = vsel %vm1306_vm4, %v1336_v28, %v6219_v40  ;;  %3541 = vrcp.f32 %v774_v55 }
 0x12f   : > { %6395 = vst [vmem:[#allocation87_spill] sm:$0xff] %v4580_v46  ;;  %v783_v36 = vadd.f32 1.0, %v3536_v34  ;;  %v4592_v62 = vadd.f32 %v3892_v49, %v646_v12  ;;  %3543 = vrcp.f32 %v779_v58  ;;  %v4595_v27 = vadd.f32 %v3376_v38, %v3892_v49  ;;  %v6426_v34 = vld [vmem:[#allocation61_spill] sm:$0xff]  ;;  %v6431_v46 = vld [vmem:[#allocation62_spill] sm:$0xff] }
 0x130   : > { %vm4584_vm12 = vcmp.lt.s32.totalorder %v6396_v19, 15  ;;  %v4598_v9 = vadd.f32 %v3892_v49, %v649_v63  ;;  %v6399_v3 = vrot.slane %v4445_v0, 1  ;;  %3545 = vrcp.f32 %v777_v25  ;;  %v3538_v38 = vpop.eup %3537 }
 0x131   : > { %v3199_v11 = vmul.f32 -1.442695, %v4592_v62  ;;  %v4610_v12 = vsel %vm4513_vm10, %v1339_v51, 0.0  ;;  %3547 = vrcp.f32 %v780_v5  ;;  %v3202_v49 = vmul.f32 -1.442695, %v4595_v27 }
 0x132   : > { %v1335_v13 = vsel %vm1306_vm4, %v1332_v21, %v6399_v3  ;;  %6400 = vst [vmem:[#allocation88_spill] sm:$0xff] %v4610_v12  ;;  %v3200_v55 = vmul.f32 -1.442695, %v4598_v9  ;;  %v1623_v58 = vmul.f32 %v3941_v17, %v4610_v12  ;;  %3549 = vrcp.f32 %v778_v48 }
 0x133   : > { %v4606_v28 = vsel %vm4507_vm9, %v1335_v13, 0.0  ;;  %v781_v25 = vadd.f32 1.0, %v3538_v38  ;;  %v1764_v52 = vmul.f32 %v3967_v32, %v4542_v56  ;;  %v6401_v37 = vand.u32 15, %v4010_v4  ;;  %v4639_v4 = vld [vmem:[%s6154_s4] ss:$0 sm:$0xff] }
 0x134   : > { %v1832_v63 = vmul.f32 %v3982_v43, %v4606_v28  ;;  %3551 = vrcp.f32 %v783_v36  ;;  %v1655_v5 = vadd.f32 %v1623_v58, %v1587_v29  ;;  %v6404_v19 = vrot.slane %v4486_v41, 7 }
 0x135   : > { %vm4622_vm13 = vcmp.gt.s32.totalorder %v6401_v37, 0  ;;  %v6405_v51 = vrot.slane %v4453_v54, 1  ;;  %3553 = vrcp.f32 %v781_v25  ;;  %v1796_v13 = vadd.f32 %v1764_v52, %v1728_v50 }
 0x136   : > { %v1147_v48 = vsel %vm1114_vm1, %v6404_v19, %v1146_v20  ;;  %v1554_v36 = vmul.f32 %v3939_v16, %v4551_v6  ;;  %3555 = vpow2.f32 %v4418_v2  ;;  %v1694_v38 = vadd.f32 %v4639_v4, %v1655_v5 }
 0x137   : > { %v4634_v3 = vsel %vm1306_vm4, %v6405_v51, %v1332_v21  ;;  %v4643_v29 = vsel %vm4561_vm11, %v1147_v48, 0.0  ;;  %v1622_v21 = vmul.f32 %v3941_v17, %v4534_v61  ;;  %v1763_v58 = vmul.f32 %v3967_v32, %v4498_v31 }
 0x138   : > { %6406 = vst [vmem:[#allocation89_spill] sm:$0xff] %v4634_v3  ;;  %6407 = vst [vmem:[#allocation90_spill] sm:$0xff] %v4643_v29  ;;  %3557 = vpow2.f32 %v4434_v47  ;;  %v1864_v50 = vadd.f32 %v1832_v63, %v1796_v13  ;;  %v1586_v35 = vadd.f32 %v1554_v36, %v4469_v60  ;;  %v1831_v25 = vmul.f32 %v3982_v43, %v4634_v3 }
 0x139   : > { %3559 = vpow2.f32 %v4456_v15  ;;  %v1795_v2 = vadd.f32 %v1763_v58, %v4483_v26  ;;  %v2067_v52 = vmul.f32 %v3987_v45, %v4643_v29  ;;  %v6408_v37 = vmov %v6405_v51  ;;  %v6411_v51 = vld [vmem:[#allocation4_spill] sm:$0xff] }
 0x13a   : > { %v6409_v5 = vrot.slane %v4347_v33, 1  ;;  %v2031_v47 = vmul.f32 %v3927_v10, %v4568_v22  ;;  %3561 = vpow2.f32 %v3199_v11  ;;  %v1654_v60 = vadd.f32 %v1622_v21, %v1586_v35  ;;  %v3540_v48 = vpop.eup %3539 }
 0x13b   : > { %3563 = vpow2.f32 %v3202_v49  ;;  %v4672_v15 = vadd.f32 %v1864_v50, %v1694_v38  ;;  %v1863_v26 = vadd.f32 %v1831_v25, %v1795_v2  ;;  %v1621_v54 = vmul.f32 %v3941_v17, %v4606_v28  ;;  %v3542_v38 = vpop.eup %3541 }
 0x13c   : > { %v1331_v19 = vsel %vm1306_vm4, %v6409_v5, %v6408_v37  ;;  %3565 = vpow2.f32 %v3200_v55  ;;  %v6412_v13 = vand.u32 15, %v6411_v51  ;;  %v1693_v11 = vadd.f32 %v4639_v4, %v1654_v60  ;;  %v4693_v55 = vld [vmem:[%s6153_s3 + $0x8] ss:$0 sm:$0xff]  ;;  %v3544_v25 = vpop.eup %3543 }
 0x13d   : > { %v4670_v63 = vsel %vm4584_vm12, %v1331_v19, 0.0  ;;  %v4683_v57 = vadd.f32 %v2067_v52, %v2031_v47  ;;  %v1762_v49 = vmul.f32 %v3967_v32, %v4378_v23  ;;  %v4688_v21 = vmul.f32 %v3540_v48, %v4122_v14  ;;  %v3546_v37 = vpop.eup %3545 }
 0x13e   : > { %6410 = vst [vmem:[#allocation91_spill] sm:$0xff] %v4670_v63  ;;  %vm4678_vm14 = vcmp.lt.s32.totalorder %v6412_v13, 15  ;;  %v4696_v58 = vadd.f32 %v1621_v54, %v4574_v39  ;;  %v4700_v50 = vmul.f32 %v3982_v43, %v4670_v63  ;;  %v4704_v35 = vmul.f32 %v3987_v45, %v4529_v44  ;;  %v3548_v60 = vpop.eup %3547 }
 0x13f   : > { %6415 = vst [vmem:[#allocation4_spill] sm:$0xff] %v4688_v21  ;;  %v4707_v14 = vmul.f32 %v3542_v38, %v4340_v53  ;;  %v4709_v2 = vadd.f32 %v1863_v26, %v1693_v11  ;;  %v4712_v52 = vadd.f32 %v1762_v49, %v4371_v42  ;;  %v4716_v39 = vmul.f32 %v4693_v55, %v4610_v12 }
 0x140   : > { %v4721_v47 = vmul.f32 %v3544_v25, %v4344_v1  ;;  %v4726_v53 = vsel %vm4622_vm13, %v4461_v59, 0.0  ;;  %v4730_v42 = vmul.f32 %v3923_v8, %v4688_v21  ;;  %v3550_v1 = vpop.eup %3549  ;;  %v4743_v13 = vmul.f32 %v3546_v37, %v4351_v18 }
 0x141   : > { %6416 = vst [vmem:[#allocation92_spill] sm:$0xff] %v4707_v14  ;;  %6418 = vst [vmem:[#allocation94_spill] sm:$0xff] %v4726_v53  ;;  %v6218_v26 = vrot.slane %v4707_v14, 7  ;;  %v1340_v54 = vrot.slane %v4707_v14, 1  ;;  %v4736_v48 = vmul.f32 %v3923_v8, %v4707_v14  ;;  %v2032_v51 = vmul.f32 %v3927_v10, %v4707_v14  ;;  %v3552_v11 = vpop.eup %3551 }
 0x142   : > { %6417 = vst [vmem:[#allocation93_spill] sm:$0xff] %v4721_v47  ;;  %6419 = vst [vmem:[#allocation95_spill] sm:$0xff] %v4730_v42  ;;  %v4747_v49 = vmul.f32 %v3923_v8, %v4721_v47  ;;  %v4750_v38 = vmul.f32 %v3548_v60, %v4355_v30  ;;  %v4753_v25 = vmul.f32 %v3550_v1, %v4382_v7  ;;  %v3554_v18 = vpop.eup %3553  ;;  %v6427_v30 = vrot.slane %v4503_v24, 1  ;;  %v6493_v47 = vld [vmem:[#allocation16_spill] sm:$0xff] }
 0x143   : > { %6420 = vst [vmem:[#allocation96_spill] sm:$0xff] %v4736_v48  ;;  %6421 = vst [vmem:[#allocation97_spill] sm:$0xff] %v4743_v13  ;;  %v4760_v19 = vsel %vm1114_vm1, %v1146_v20, %v6218_v26  ;;  %v4765_v59 = vmul.f32 %v3552_v11, %v6426_v34  ;;  %v3556_v60 = vpop.eup %3555  ;;  %v4772_v1 = vmul.f32 %v3923_v8, %v4743_v13  ;;  %v6433_v29 = vrot.slane %v4568_v22, 1  ;;  %v6435_v20 = vld [vmem:[#allocation5_spill] sm:$0xff] }
 0x144   : > { %6422 = vst [vmem:[#allocation98_spill] sm:$0xff] %v4747_v49  ;;  %6423 = vst [vmem:[#allocation99_spill] sm:$0xff] %v4750_v38  ;;  %v1343_v7 = vsel %vm1306_vm4, %v1340_v54, %v6427_v30  ;;  %v4778_v37 = vmul.f32 %v3923_v8, %v4750_v38  ;;  %v4784_v30 = vmul.f32 %v3923_v8, %v4753_v25  ;;  %v784_v12 = vadd.f32 1.0, %v3556_v60  ;;  %v6484_v49 = vld [vmem:[#allocation10_spill] sm:$0xff]  ;;  %v6488_v13 = vld [vmem:[#allocation9_spill] sm:$0xff] }
 0x145   : > { %6424 = vst [vmem:[#allocation100_spill] sm:$0xff] %v4753_v25  ;;  %6425 = vst [vmem:[#allocation101_spill] sm:$0xff] %v4760_v19  ;;  %v3558_v5 = vpop.eup %3557  ;;  %v4789_v26 = vmul.f32 %v3554_v18, %v6431_v46  ;;  %v4793_v34 = vsel %vm4678_vm14, %v1343_v7, 0.0  ;;  %v2068_v11 = vmul.f32 %v3987_v45, %v4760_v19  ;;  %v4800_v40 = vsel %vm1306_vm4, %v6433_v29, %v1340_v54  ;;  %v6440_v18 = vld [vmem:[#allocation79_spill] sm:$0xff]  ;;  %v6456_v46 = vld [vmem:[#allocation2_spill] sm:$0xff] }
 0x146   : > { %6428 = vst [vmem:[#allocation61_spill] sm:$0xff] %v4772_v1  ;;  %6429 = vst [vmem:[#allocation102_spill] sm:$0xff] %v4778_v37  ;;  %v3560_v0 = vpop.eup %3559  ;;  %v782_v44 = vadd.f32 1.0, %v3558_v5  ;;  %v6436_v42 = vand.u32 15, %v6435_v20  ;;  %3567 = vrcp.f32 %v784_v12  ;;  %v2136_v20 = vmul.f32 %v4693_v55, %v4793_v34 }
 0x147   : > { %6430 = vst [vmem:[#allocation103_spill] sm:$0xff] %v4784_v30  ;;  %v3562_v48 = vpop.eup %3561  ;;  %v787_v41 = vadd.f32 1.0, %v3560_v0  ;;  %6432 = vst [vmem:[#allocation62_spill] sm:$0xff] %v4793_v34  ;;  %v4810_v0 = vmul.f32 %v3923_v8, %v4765_v59  ;;  %v2100_v60 = vadd.f32 %v2068_v11, %v2032_v51  ;;  %v2135_v22 = vmul.f32 %v4693_v55, %v4800_v40 }
 0x148   : > { %6434 = vst [vmem:[#allocation104_spill] sm:$0xff] %v4800_v40  ;;  %vm4804_vm15 = vcmp.lt.s32.totalorder %v6436_v42, 15  ;;  %v3564_v5 = vpop.eup %3563  ;;  %3569 = vrcp.f32 %v782_v44  ;;  %v785_v29 = vadd.f32 1.0, %v3562_v48  ;;  %v1692_v36 = vadd.f32 %v4639_v4, %v4696_v58 }
 0x149   : > { %6439 = vst [vmem:[#allocation5_spill] sm:$0xff] %v4810_v0  ;;  %v3566_v7 = vpop.eup %3565  ;;  %v788_v54 = vadd.f32 1.0, %v3564_v5  ;;  %3571 = vrcp.f32 %v787_v41  ;;  %v1862_v12 = vadd.f32 %v4700_v50, %v4712_v52  ;;  %v2098_v44 = vadd.f32 %v4704_v35, %v6440_v18 }
 0x14a   : > { %v786_v42 = vadd.f32 1.0, %v3566_v7  ;;  %3573 = vrcp.f32 %v785_v29  ;;  %v4826_v41 = vmul.f32 %v3923_v8, %v4789_v26  ;;  %v2168_v48 = vadd.f32 %v2136_v20, %v2100_v60  ;;  %v6443_v7 = vld [vmem:[#allocation47_spill] sm:$0xff]  ;;  %v6448_v60 = vld [vmem:[#allocation82_spill] sm:$0xff] }
 0x14b   : > { %3575 = vrcp.f32 %v788_v54  ;;  %v2167_v51 = vadd.f32 %v2135_v22, %v4683_v57  ;;  %v1992_v11 = vadd.f32 %v1862_v12, %v1692_v36  ;;  %v2166_v5 = vadd.f32 %v4716_v39, %v2098_v44  ;;  %v6449_v20 = vld [vmem:[#allocation54_spill] sm:$0xff] }
 0x14c   : > { %6441 = vst [vmem:[#allocation79_spill] sm:$0xff] %v4826_v41  ;;  %3577 = vrcp.f32 %v786_v42  ;;  %v6442_v58 = vrot.slane %v4347_v33, 1  ;;  %v6444_v29 = vrot.slane %v6443_v7, 1  ;;  %v4838_v35 = vadd.f32 %v2168_v48, %v4672_v15  ;;  %v6447_v33 = vld [vmem:[#allocation3_spill] sm:$0xff]  ;;  %v6450_v48 = vld [vmem:[#allocation73_spill] sm:$0xff] }
 0x14d   : > { %v4841_v52 = vadd.f32 %v2167_v51, %v4709_v2  ;;  %v1620_v22 = vmul.f32 %v3941_v17, %v4634_v3  ;;  %v1761_v57 = vmul.f32 %v3967_v32, %v4726_v53  ;;  %v4847_v39 = vadd.f32 %v2166_v5, %v1992_v11 }
 0x14e   : > { %v4835_v50 = vsel %vm1306_vm4, %v6444_v29, %v6442_v58  ;;  %v4851_v36 = vmul.f32 %v6447_v33, %v4765_v59  ;;  %v2065_v15 = vmul.f32 %v3987_v45, %v4551_v6  ;;  %v3220_v2 = vmul.f32 -1.442695, %v4838_v35  ;;  %v6452_v58 = vld [vmem:[#allocation67_spill] sm:$0xff] }
 0x14f   : > { %6445 = vst [vmem:[#allocation47_spill] sm:$0xff] %v4835_v50  ;;  %6446 = vst [vmem:[#allocation105_spill] sm:$0xff] %v4847_v39  ;;  %v1829_v18 = vmul.f32 %v3982_v43, %v4835_v50  ;;  %v3219_v54 = vmul.f32 -1.442695, %v4841_v52  ;;  %v1652_v42 = vadd.f32 %v1620_v22, %v6448_v60  ;;  %v1793_v12 = vadd.f32 %v1761_v57, %v6449_v20  ;;  %v6455_v60 = vld [vmem:[#allocation72_spill] sm:$0xff] }
 0x150   : > { %v3218_v44 = vmul.f32 -1.442695, %v4847_v39  ;;  %v2097_v51 = vadd.f32 %v2065_v15, %v6450_v48  ;;  %v2133_v11 = vmul.f32 %v4693_v55, %v4534_v61  ;;  %v6451_v5 = vmov %v6444_v29 }
 0x151   : > { %v6453_v29 = vrot.slane %v6452_v58, 1  ;;  %3579 = vpow2.f32 %v3220_v2  ;;  %v1691_v40 = vadd.f32 %v4639_v4, %v1652_v42  ;;  %v1861_v34 = vadd.f32 %v1829_v18, %v1793_v12  ;;  %v6460_v12 = vld [vmem:[#allocation7_spill] sm:$0xff] }
 0x152   : > { %3581 = vpow2.f32 %v3219_v54  ;;  %v2165_v57 = vadd.f32 %v2133_v11, %v2097_v51  ;;  %v1619_v15 = vmul.f32 %v3941_v17, %v4670_v63  ;;  %v1760_v7 = vmul.f32 %v3967_v32, %v6455_v60 }
 0x153   : > { %v1327_v6 = vsel %vm1306_vm4, %v6453_v29, %v6451_v5  ;;  %3583 = vpow2.f32 %v3218_v44  ;;  %v1991_v20 = vadd.f32 %v1861_v34, %v1691_v40  ;;  %v2064_v18 = vmul.f32 %v3987_v45, %v4542_v56  ;;  %v3568_v42 = vpop.eup %3567  ;;  %v6464_v40 = vld [vmem:[#allocation66_spill] sm:$0xff]  ;;  %v6465_v44 = vld [vmem:[#allocation69_spill] sm:$0xff] }
 0x154   : > { %v4873_v22 = vsel %vm4804_vm15, %v1327_v6, 0.0  ;;  %v6457_v6 = vand.u32 15, %v6456_v46  ;;  %v6461_v48 = vand.u32 15, %v6460_v12  ;;  %v1651_v34 = vadd.f32 %v1619_v15, %v6464_v40  ;;  %v6468_v12 = vld [vmem:[#allocation8_spill] sm:$0xff] }
 0x155   : > { %6454 = vst [vmem:[#allocation3_spill] sm:$0xff] %v4873_v22  ;;  %v1828_v2 = vmul.f32 %v3982_v43, %v4873_v22  ;;  %v1792_v11 = vadd.f32 %v1760_v7, %v6465_v44  ;;  %v4899_v56 = vmul.f32 %v4693_v55, %v4606_v28  ;;  %v4902_v5 = vadd.s32 192, %v6456_v46  ;;  %v3570_v29 = vpop.eup %3569  ;;  %v6472_v7 = vld [vmem:[#allocation84_spill] sm:$0xff] }
 0x156   : > { %vm4885_vm2 = vcmp.gt.s32.totalorder %v6457_v6, 0  ;;  %vm4891_vm3 = vcmp.lt.s32.totalorder %v6461_v48, 15  ;;  %v6467_v6 = vld [vmem:[#allocation63_spill] sm:$0xff]  ;;  %v6469_v48 = vand.u32 15, %v6468_v12  ;;  %v4913_v15 = vadd.f32 %v2165_v57, %v1991_v20 }
 0x157   : > { %6466 = vst [vmem:[#allocation82_spill] sm:$0xff] %v4902_v5  ;;  %v4905_v61 = vmul.f32 %v3568_v42, %v6467_v6  ;;  %v4916_v40 = vadd.f32 %v2064_v18, %v6472_v7  ;;  %v6473_v28 = vrot.slane %v4789_v26, 7  ;;  %v6474_v44 = vrot.slane %v4750_v38, 7  ;;  %v3572_v42 = vpop.eup %3571  ;;  %v6476_v6 = vld [vmem:[#allocation65_spill] sm:$0xff] }
 0x158   : > { %vm4909_vm5 = vcmp.lt.s32.totalorder %v6469_v48, 15  ;;  %v4926_v14 = vmul.f32 %v3570_v29, %v6476_v6  ;;  %v4929_v12 = vadd.f32 %v4639_v4, %v1651_v34  ;;  %v4931_v48 = vadd.f32 %v1828_v2, %v1792_v11  ;;  %v3574_v20 = vpop.eup %3573  ;;  %v6478_v29 = vld [vmem:[#allocation6_spill] sm:$0xff] }
 0x159   : > { %v4923_v1 = vsel %vm1114_vm1, %v6474_v44, %v6473_v28  ;;  %v1168_v18 = vrot.slane %v4905_v61, 7  ;;  %v4938_v28 = vmul.f32 %v3923_v8, %v4905_v61  ;;  %v6477_v44 = vld [vmem:[#allocation68_spill] sm:$0xff]  ;;  %v6479_v6 = vand.u32 15, %v6478_v29  ;;  %v3576_v2 = vpop.eup %3575 }
 0x15a   : > { %6475 = vst [vmem:[#allocation54_spill] sm:$0xff] %v4923_v1  ;;  %v883_v30 = vmul.f32 %v3572_v42, %v6477_v44  ;;  %v4951_v7 = vmul.f32 %v3923_v8, %v4926_v14  ;;  %v4954_v24 = vmul.f32 %v3574_v20, %v4592_v62  ;;  %v6485_v42 = vand.u32 15, %v6484_v49  ;;  %v3578_v29 = vpop.eup %3577 }
 0x15b   : > { %vm4943_vm6 = vcmp.gt.s32.totalorder %v6479_v6, 0  ;;  %v884_v49 = vmul.f32 %v3576_v2, %v4595_v27  ;;  %v4974_v20 = vmul.f32 %v3578_v29, %v4598_v9  ;;  %v6489_v41 = vand.u32 15, %v6488_v13 }
 0x15c   : > { %6482 = vst [vmem:[#allocation73_spill] sm:$0xff] %v4951_v7  ;;  %6483 = vst [vmem:[#allocation7_spill] sm:$0xff] %v4954_v24  ;;  %vm4958_vm7 = vcmp.gt.s32.totalorder %v6485_v42, 0  ;;  %v1174_v6 = vrot.slane %v883_v30, 7  ;;  %v1366_v21 = vrot.slane %v883_v30, 1  ;;  %v1534_v11 = vmul.f32 %v3923_v8, %v883_v30 }
 0x15d   : > { %v4964_v57 = vmul.f32 %v3927_v10, %v883_v30  ;;  %v1170_v60 = vrot.slane %v4954_v24, 7  ;;  %v1362_v37 = vrot.slane %v4954_v24, 1  ;;  %v4970_v62 = vmul.f32 %v3923_v8, %v4954_v24 }
 0x15e   : > { %v1743_v42 = vmul.f32 %v6447_v33, %v4954_v24  ;;  %vm4980_vm8 = vcmp.lt.s32.totalorder %v6489_v41, 15  ;;  %v6492_v25 = vrot.slane %v4765_v59, 7  ;;  %v1742_v27 = vmul.f32 %v6447_v33, %v4905_v61  ;;  %v3580_v7 = vpop.eup %3579 }
 0x15f   : > { %v1081_v2 = vrot.slane %v884_v49, 7  ;;  %v1368_v9 = vrot.slane %v884_v49, 1  ;;  %v1535_v29 = vmul.f32 %v3923_v8, %v884_v49  ;;  %v4993_v23 = vmul.f32 %v3927_v10, %v884_v49  ;;  %v3582_v53 = vpop.eup %3581 }
 0x160   : > { %v4987_v63 = vsel %vm1114_vm1, %v6492_v25, %v1168_v18  ;;  %v1172_v13 = vrot.slane %v4974_v20, 7  ;;  %v1364_v41 = vrot.slane %v4974_v20, 1  ;;  %v1533_v22 = vmul.f32 %v3923_v8, %v4974_v20  ;;  %v3584_v0 = vpop.eup %3583 }
 0x161   : > { %v1744_v25 = vmul.f32 %v6447_v33, %v4974_v20  ;;  %v6494_v38 = vrot.slane %v6493_v47, 7  ;;  %v1176_v3 = vsel %vm1114_vm1, %v1174_v6, %v1081_v2  ;;  %v6495_v49 = vrot.slane %v6493_v47, 1 }
 0x162   : > { %v1171_v50 = vsel %vm1114_vm1, %v1168_v18, %v1170_v60  ;;  %v5012_v58 = vsel %vm1114_vm1, %v1170_v60, %v1172_v13  ;;  %v1367_v24 = vsel %vm1306_vm4, %v1364_v41, %v1366_v21  ;;  %v6498_v60 = vld [vmem:[#allocation11_spill] sm:$0xff]  ;;  %v1369_v1 = vsel %vm1306_vm4, %v1366_v21, %v1368_v9 }
 0x163   : > { %v1209_v46 = vsel %vm1114_vm1, %v1081_v2, %v6494_v38  ;;  %v1403_v31 = vsel %vm1306_vm4, %v1368_v9, %v6495_v49  ;;  %v5025_v18 = vsel %vm4909_vm5, %v1367_v24, 0.0  ;;  %v6499_v54 = vand.u32 15, %v6498_v60 }
 0x164   : > { %v1274_v8 = vsel %vm4885_vm2, %v1209_v46, 0.0  ;;  %v1499_v38 = vsel %vm4891_vm3, %v1403_v31, 0.0  ;;  %v1571_v46 = vmul.f32 %v3939_v16, %v1176_v3  ;;  %v1780_v51 = vmul.f32 %v3967_v32, %v5012_v58 }
 0x165   : > { %v5018_v2 = vmul.f32 %v3939_v16, %v1274_v8  ;;  %v5021_v47 = vmul.f32 %v3967_v32, %v1274_v8  ;;  %vm5030_vm9 = vcmp.gt.s32.totalorder %v6499_v54, 0  ;;  %v1639_v31 = vmul.f32 %v3941_v17, %v1499_v38 }
 0x166   : > { %v1848_v8 = vmul.f32 %v3982_v43, %v5025_v18  ;;  %v1603_v19 = vadd.f32 %v1571_v46, %v1535_v29  ;;  %v1175_v24 = vsel %vm1114_vm1, %v1172_v13, %v1174_v6  ;;  %v5045_v60 = vsel %vm1306_vm4, %v1362_v37, %v1364_v41 }
 0x167   : > { %6496 = vst [vmem:[#allocation66_spill] sm:$0xff] %v5018_v2  ;;  %6497 = vst [vmem:[#allocation69_spill] sm:$0xff] %v5021_v47  ;;  %v2422_v2 = vadd.f32 1.0, %v3580_v7  ;;  %v5042_v47 = vsel %vm4943_vm6, %v1171_v50, 0.0  ;;  %v1812_v54 = vadd.f32 %v1780_v51, %v1744_v25  ;;  %v1304_v39 = vsel %vm4958_vm7, %v1175_v24, 0.0 }
 0x168   : > { %v1671_v5 = vadd.f32 %v1639_v31, %v1603_v19  ;;  %v1570_v7 = vmul.f32 %v3939_v16, %v1304_v39  ;;  %v1638_v29 = vmul.f32 %v3941_v17, %v1369_v1  ;;  %v1779_v34 = vmul.f32 %v3967_v32, %v5042_v47 }
 0x169   : > { %3585 = vrcp.f32 %v2422_v2  ;;  %v1880_v50 = vadd.f32 %v1848_v8, %v1812_v54  ;;  %v1847_v6 = vmul.f32 %v3982_v43, %v5045_v60  ;;  %v2421_v13 = vadd.f32 1.0, %v3582_v53 }
 0x16a   : > { %v6502_v41 = vrot.slane %v4905_v61, 1  ;;  %v1710_v25 = vadd.f32 %v4639_v4, %v1671_v5  ;;  %v1602_v21 = vadd.f32 %v1570_v7, %v1534_v11  ;;  %v1811_v9 = vadd.f32 %v1779_v34, %v1743_v42  ;;  %v6503_v42 = vld [vmem:[#allocation12_spill] sm:$0xff] }
 0x16b   : > { %3587 = vrcp.f32 %v2421_v13  ;;  %v1569_v46 = vmul.f32 %v3939_v16, %v5012_v58  ;;  %v1637_v31 = vmul.f32 %v3941_v17, %v5025_v18  ;;  %v1778_v53 = vmul.f32 %v3967_v32, %v4987_v63 }
 0x16c   : > { %v1363_v44 = vsel %vm1306_vm4, %v6502_v41, %v1362_v37  ;;  %v5070_v51 = vadd.f32 %v1880_v50, %v1710_v25  ;;  %v1670_v37 = vadd.f32 %v1638_v29, %v1602_v21  ;;  %v1879_v5 = vadd.f32 %v1847_v6, %v1811_v9 }
 0x16d   : > { %v5062_v2 = vsel %vm4980_vm8, %v1363_v44, 0.0  ;;  %v6504_v30 = vand.u32 15, %v6503_v42  ;;  %v1601_v19 = vadd.f32 %v1569_v46, %v1533_v22  ;;  %v1810_v24 = vadd.f32 %v1778_v53, %v1742_v27 }
 0x16e   : > { %v1846_v11 = vmul.f32 %v3982_v43, %v5062_v2  ;;  %v2082_v54 = vmul.f32 %v3987_v45, %v1176_v3  ;;  %v2150_v7 = vmul.f32 %v4693_v55, %v1499_v38  ;;  %v3236_v34 = vmul.f32 -1.442695, %v5070_v51 }
 0x16f   : > { %vm5076_vm10 = vcmp.lt.s32.totalorder %v6504_v30, 15  ;;  %v1709_v29 = vadd.f32 %v4639_v4, %v1670_v37  ;;  %v2420_v50 = vadd.f32 1.0, %v3584_v0  ;;  %v6507_v6 = vrot.slane %v4765_v59, 7 }
 0x170   : > { %v6508_v13 = vrot.slane %v4926_v14, 7  ;;  %v1669_v44 = vadd.f32 %v1637_v31, %v1601_v19  ;;  %v1878_v25 = vadd.f32 %v1846_v11, %v1810_v24  ;;  %v2114_v22 = vadd.f32 %v2082_v54, %v4993_v23 }
 0x171   : > { %3589 = vpow2.f32 %v3236_v34  ;;  %v5094_v27 = vadd.f32 %v1879_v5, %v1709_v29  ;;  %v6509_v38 = vrot.slane %v4905_v61, 1  ;;  %v6510_v0 = vrot.slane %v4765_v59, 1 }
 0x172   : > { %v1167_v41 = vsel %vm1114_vm1, %v6508_v13, %v6507_v6  ;;  %v1568_v9 = vmul.f32 %v3939_v16, %v5042_v47  ;;  %v1708_v46 = vadd.f32 %v4639_v4, %v1669_v44  ;;  %v2182_v23 = vadd.f32 %v2150_v7, %v2114_v22 }
 0x173   : > { %v5092_v3 = vsel %vm5030_vm9, %v1167_v41, 0.0  ;;  %v5101_v21 = vsel %vm1306_vm4, %v6510_v0, %v6509_v38  ;;  %3591 = vrcp.f32 %v2420_v50  ;;  %v1636_v49 = vmul.f32 %v3941_v17, %v5045_v60 }
 0x174   : > { %v3235_v31 = vmul.f32 -1.442695, %v5094_v27  ;;  %v1600_v53 = vadd.f32 %v1568_v9, %v4970_v62  ;;  %v1777_v37 = vmul.f32 %v3967_v32, %v5092_v3  ;;  %v1845_v5 = vmul.f32 %v3982_v43, %v5101_v21 }
 0x175   : > { %v2008_v11 = vadd.f32 %v1878_v25, %v1708_v46  ;;  %v2081_v42 = vmul.f32 %v3987_v45, %v1304_v39  ;;  %v2149_v30 = vmul.f32 %v4693_v55, %v1369_v1  ;;  %v3217_v19 = vmul.f32 -1.442695, %v4913_v15 }
 0x176   : > { %v3586_v24 = vpop.eup %3585  ;;  %3593 = vpow2.f32 %v3235_v31  ;;  %v1668_v54 = vadd.f32 %v1636_v49, %v1600_v53  ;;  %v1809_v7 = vadd.f32 %v1777_v37, %v4851_v36  ;;  %v6511_v62 = vmov %v6508_v13 }
 0x177   : > { %v6512_v34 = vrot.slane %v4789_v26, 7  ;;  %v5126_v50 = vmul.f32 %v3586_v24, %v4838_v35  ;;  %v5128_v39 = vadd.f32 %v2182_v23, %v2008_v11  ;;  %v2113_v1 = vadd.f32 %v2081_v42, %v4964_v57 }
 0x178   : > { %3595 = vpow2.f32 %v3217_v19  ;;  %v1707_v6 = vadd.f32 %v4639_v4, %v1668_v54  ;;  %v1877_v13 = vadd.f32 %v1845_v5, %v1809_v7  ;;  %v6514_v36 = vmov %v6510_v0  ;;  %v3588_v0 = vpop.eup %3587  ;;  %v6517_v19 = vld [vmem:[#allocation82_spill] sm:$0xff] }
 0x179   : > { %v5123_v29 = vsel %vm1114_vm1, %v6512_v34, %v6511_v62  ;;  %6513 = vst [vmem:[#allocation63_spill] sm:$0xff] %v5126_v50  ;;  %v6515_v41 = vrot.slane %v4926_v14, 1  ;;  %v1567_v25 = vmul.f32 %v3939_v16, %v4987_v63  ;;  %v3234_v35 = vmul.f32 -1.442695, %v5128_v39 }
 0x17a   : > { %v2181_v22 = vadd.f32 %v2149_v30, %v2113_v1  ;;  %v1635_v57 = vmul.f32 %v3941_v17, %v5062_v2  ;;  %v2007_v9 = vadd.f32 %v1877_v13, %v1707_v6  ;;  %v1740_v23 = vmul.f32 %v6447_v33, %v4926_v14  ;;  %v6519_v1 = vld [vmem:[#allocation54_spill] sm:$0xff] }
 0x17b   : > { %v1359_v44 = vsel %vm1306_vm4, %v6515_v41, %v6514_v36  ;;  %v1599_v46 = vadd.f32 %v1567_v25, %v4938_v28  ;;  %v1776_v49 = vmul.f32 %v3967_v32, %v5123_v29  ;;  %v5152_v31 = vmul.f32 %v3588_v0, %v4841_v52 }
 0x17c   : > { %v5142_v38 = vsel %vm5076_vm10, %v1359_v44, 0.0  ;;  %3597 = vpow2.f32 %v3234_v35  ;;  %v2044_v53 = vmul.f32 %v3927_v10, %v4974_v20  ;;  %v5158_v37 = vadd.f32 %v2181_v22, %v2007_v9  ;;  %v6522_v44 = vld [vmem:[#allocation105_spill] sm:$0xff] }
 0x17d   : > { %6516 = vst [vmem:[#allocation8_spill] sm:$0xff] %v5152_v31  ;;  %v1844_v8 = vmul.f32 %v3982_v43, %v5142_v38  ;;  %v1667_v5 = vadd.f32 %v1635_v57, %v1599_v46  ;;  %v1808_v28 = vadd.f32 %v1776_v49, %v1740_v23  ;;  %v2080_v11 = vmul.f32 %v3987_v45, %v5012_v58  ;;  %v6524_v22 = vld [vmem:[#allocation5_spill] sm:$0xff] }
 0x17e   : > { %v2148_v42 = vmul.f32 %v4693_v55, %v5025_v18  ;;  %v1990_v52 = vadd.f32 %v4931_v48, %v4929_v12  ;;  %v2164_v30 = vadd.f32 %v4899_v56, %v4916_v40  ;;  %v6518_v24 = vand.u32 15, %v6517_v19  ;;  %v3590_v34 = vpop.eup %3589 }
 0x17f   : > { %v3233_v20 = vmul.f32 -1.442695, %v5158_v37  ;;  %v1706_v54 = vadd.f32 %v4639_v4, %v1667_v5  ;;  %v1876_v7 = vadd.f32 %v1844_v8, %v1808_v28  ;;  %v2112_v62 = vadd.f32 %v2080_v11, %v2044_v53  ;;  %v6525_v5 = vld [vmem:[#allocation7_spill] sm:$0xff] }
 0x180   : > { %vm974_vm11 = vcmp.gt.s32.totalorder %v6518_v24, 0  ;;  %v5172_v58 = vadd.f32 %v2164_v30, %v1990_v52  ;;  %v6520_v12 = vmov %v6515_v41  ;;  %v6521_v48 = vrot.slane %v4789_v26, 1  ;;  %v3592_v6 = vpop.eup %3591 }
 0x181   : > { %v5175_v18 = vsel %vm974_vm11, %v6519_v1, 0.0  ;;  %v1566_v40 = vmul.f32 %v3939_v16, %v5092_v3  ;;  %v2438_v13 = vadd.f32 1.0, %v3590_v34  ;;  %3599 = vpow2.f32 %v3233_v20  ;;  %v6528_v34 = vld [vmem:[#allocation50_spill] sm:$0xff] }
 0x182   : > { %v5182_v56 = vsel %vm1306_vm4, %v6521_v48, %v6520_v12  ;;  %v2006_v36 = vadd.f32 %v1876_v7, %v1706_v54  ;;  %v2180_v41 = vadd.f32 %v2148_v42, %v2112_v62  ;;  %v5187_v25 = vmul.f32 %v3592_v6, %v6522_v44  ;;  %v6526_v7 = vld [vmem:[#allocation67_spill] sm:$0xff]  ;;  %v6530_v6 = vld [vmem:[#allocation94_spill] sm:$0xff] }
 0x183   : > { %v3216_v35 = vmul.f32 -1.442695, %v5172_v58  ;;  %v1598_v57 = vadd.f32 %v1566_v40, %v6524_v22  ;;  %v1634_v0 = vmul.f32 %v3941_v17, %v5101_v21  ;;  %3601 = vrcp.f32 %v2438_v13  ;;  %v3594_v49 = vpop.eup %3593 }
 0x184   : > { %6523 = vst [vmem:[#allocation84_spill] sm:$0xff] %v5187_v25  ;;  %v5193_v9 = vadd.f32 %v2180_v41, %v2006_v36  ;;  %v1739_v46 = vmul.f32 %v6447_v33, %v4789_v26  ;;  %v1775_v23 = vmul.f32 %v3967_v32, %v5175_v18  ;;  %v1843_v53 = vmul.f32 %v3982_v43, %v5182_v56  ;;  %v6532_v41 = vld [vmem:[#allocation57_spill] sm:$0xff] }
 0x185   : > { %3603 = vpow2.f32 %v3216_v35  ;;  %v1666_v8 = vadd.f32 %v1634_v0, %v1598_v57  ;;  %v2043_v28 = vmul.f32 %v3927_v10, %v6525_v5  ;;  %v3596_v11 = vpop.eup %3595  ;;  %v2437_v42 = vadd.f32 1.0, %v3594_v49  ;;  %v6533_v0 = vld [vmem:[#allocation53_spill] sm:$0xff]  ;;  %v6534_v49 = vld [vmem:[#allocation56_spill] sm:$0xff] }
 0x186   : > { %v3232_v52 = vmul.f32 -1.442695, %v5193_v9  ;;  %v1807_v30 = vadd.f32 %v1775_v23, %v1739_v46  ;;  %v2079_v19 = vmul.f32 %v3987_v45, %v5042_v47  ;;  %v2419_v24 = vadd.f32 1.0, %v3596_v11  ;;  %v6531_v47 = vld [vmem:[#allocation47_spill] sm:$0xff] }
 0x187   : > { %v1705_v20 = vadd.f32 %v4639_v4, %v1666_v8  ;;  %v2147_v54 = vmul.f32 %v4693_v55, %v5045_v60  ;;  %v6527_v62 = vrot.slane %v6526_v7, 1  ;;  %v6529_v1 = vrot.slane %v6528_v34, 1  ;;  %v6538_v7 = vld [vmem:[#allocation99_spill] sm:$0xff] }
 0x188   : > { %3605 = vrcp.f32 %v2437_v42  ;;  %v1875_v48 = vadd.f32 %v1843_v53, %v1807_v30  ;;  %v2111_v40 = vadd.f32 %v2079_v19, %v2043_v28  ;;  %v1550_v13 = vmul.f32 %v3939_v16, %v6530_v6  ;;  %v6535_v53 = vld [vmem:[#allocation77_spill] sm:$0xff]  ;;  %v6537_v19 = vld [vmem:[#allocation2_spill] sm:$0xff] }
 0x189   : > { %v5214_v12 = vsel %vm1306_vm4, %v6529_v1, %v6527_v62  ;;  %3607 = vrcp.f32 %v2419_v24  ;;  %v1618_v36 = vmul.f32 %v3941_v17, %v6531_v47  ;;  %v1759_v60 = vmul.f32 %v3967_v32, %v6532_v41  ;;  %v3598_v35 = vpop.eup %3597  ;;  %v6536_v28 = vld [vmem:[#allocation89_spill] sm:$0xff] }
 0x18a   : > { %v1827_v44 = vmul.f32 %v3982_v43, %v5214_v12  ;;  %3609 = vpow2.f32 %v3232_v52  ;;  %v2005_v22 = vadd.f32 %v1875_v48, %v1705_v20  ;;  %v2179_v57 = vadd.f32 %v2147_v54, %v2111_v40  ;;  %v6540_v20 = vld [vmem:[#allocation93_spill] sm:$0xff]  ;;  %v6542_v48 = vld [vmem:[#allocation76_spill] sm:$0xff] }
 0x18b   : > { %v1582_v46 = vadd.f32 %v1550_v13, %v6533_v0  ;;  %v2436_v23 = vadd.f32 1.0, %v3598_v35  ;;  %v1791_v8 = vadd.f32 %v1759_v60, %v6534_v49  ;;  %v2063_v5 = vmul.f32 %v3987_v45, %v6535_v53 }
 0x18c   : > { %v2131_v11 = vmul.f32 %v4693_v55, %v6536_v28  ;;  %v5230_v42 = vadd.f32 %v2179_v57, %v2005_v22  ;;  %v909_v24 = vadd.s32 184, %v6537_v19  ;;  %v6539_v52 = vrot.slane %v6538_v7, 7 }
 0x18d   : > { %v1650_v30 = vadd.f32 %v1618_v36, %v1582_v46  ;;  %v6541_v54 = vrot.slane %v6540_v20, 7  ;;  %3611 = vrcp.f32 %v2436_v23  ;;  %v1859_v1 = vadd.f32 %v1827_v44, %v1791_v8 }
 0x18e   : > { %v2095_v40 = vadd.f32 %v2063_v5, %v6542_v48  ;;  %v6543_v13 = vrot.slane %v4789_v26, 1  ;;  %v6544_v60 = vrot.slane %v6538_v7, 1  ;;  %v3231_v36 = vmul.f32 -1.442695, %v5230_v42  ;;  %v3600_v46 = vpop.eup %3599 }
 0x18f   : > { %v5238_v62 = vsel %vm1114_vm1, %v6541_v54, %v6539_v52  ;;  %v1689_v22 = vadd.f32 %v4639_v4, %v1650_v30  ;;  %v941_v57 = vand.u32 15, %v909_v24  ;;  %v1565_v0 = vmul.f32 %v3939_v16, %v5123_v29  ;;  %v6545_v24 = vld [vmem:[#allocation73_spill] sm:$0xff] }
 0x190   : > { %v1355_v35 = vsel %vm1306_vm4, %v6544_v60, %v6543_v13  ;;  %v2163_v49 = vadd.f32 %v2131_v11, %v2095_v40  ;;  %v1633_v44 = vmul.f32 %v3941_v17, %v5142_v38  ;;  %v1738_v23 = vmul.f32 %v6447_v33, %v6538_v7  ;;  %v3602_v28 = vpop.eup %3601 }
 0x191   : > { %v1774_v8 = vmul.f32 %v3967_v32, %v5238_v62  ;;  %v2435_v53 = vadd.f32 1.0, %v3600_v46  ;;  %3613 = vpow2.f32 %v3231_v36  ;;  %v1989_v5 = vadd.f32 %v1859_v1, %v1689_v22  ;;  %v6548_v46 = vld [vmem:[#allocation35_spill] sm:$0xff] }
 0x192   : > { %vm1005_vm12 = vcmp.lt.s32.totalorder %v941_v57, 15  ;;  %v1597_v52 = vadd.f32 %v1565_v0, %v6545_v24  ;;  %v2042_v11 = vmul.f32 %v3927_v10, %v4905_v61  ;;  %v3604_v48 = vpop.eup %3603  ;;  %v5262_v40 = vmul.f32 %v3602_v28, %v5070_v51  ;;  %v6552_v24 = vld [vmem:[#allocation42_spill] sm:$0xff] }
 0x193   : > { %v5256_v30 = vsel %vm1005_vm12, %v1355_v35, 0.0  ;;  %v1806_v54 = vadd.f32 %v1774_v8, %v1738_v23  ;;  %3615 = vrcp.f32 %v2435_v53  ;;  %v5264_v13 = vadd.f32 %v2163_v49, %v1989_v5  ;;  %v6550_v8 = vld [vmem:[#allocation3_spill] sm:$0xff] }
 0x194   : > { %6546 = vst [vmem:[#allocation65_spill] sm:$0xff] %v5262_v40  ;;  %v1842_v1 = vmul.f32 %v3982_v43, %v5256_v30  ;;  %v2418_v60 = vadd.f32 1.0, %v3604_v48  ;;  %v1665_v36 = vadd.f32 %v1633_v44, %v1597_v52  ;;  %v2078_v35 = vmul.f32 %v3987_v45, %v4987_v63  ;;  %3280 = vmatprep.subr.mxu0 %v5262_v40 }
 0x195   : > { %v2146_v22 = vmul.f32 %v4693_v55, %v5062_v2  ;;  %v3215_v61 = vmul.f32 -1.442695, %v5264_v13  ;;  %v893_v57 = vadd.s32 56, %v6537_v19  ;;  %v6547_v0 = vrot.slane %v6528_v34, 1  ;;  %v3606_v44 = vpop.eup %3605  ;;  %3281 = vmatpush3.msra.mxu0 %v5126_v50 }
 0x196   : > { %v1874_v51 = vadd.f32 %v1842_v1, %v1806_v54  ;;  %v6549_v49 = vrot.slane %v6548_v46, 1  ;;  %3617 = vrcp.f32 %v2418_v60  ;;  %v1704_v63 = vadd.f32 %v4639_v4, %v1665_v36  ;;  %v3608_v5 = vpop.eup %3607  ;;  %v6554_v36 = vld [vmem:[#allocation74_spill] sm:$0xff] }
 0x197   : > { %v2110_v2 = vadd.f32 %v2078_v35, %v2042_v11  ;;  %v1617_v53 = vmul.f32 %v3941_v17, %v6550_v8  ;;  %v5285_v28 = vmul.f32 %v3606_v44, %v5094_v27  ;;  %3619 = vpow2.f32 %v3215_v61  ;;  %v3610_v54 = vpop.eup %3609  ;;  %v6555_v61 = vld [vmem:[#allocation40_spill] sm:$0xff] }
 0x198   : > { %v1323_v23 = vsel %vm1306_vm4, %v6549_v49, %v6547_v0  ;;  %v925_v34 = vand.u32 15, %v893_v57  ;;  %v1758_v52 = vmul.f32 %v3967_v32, %v6552_v24  ;;  %v5290_v48 = vmul.f32 %v3608_v5, %v4913_v15 }
 0x199   : > { %6551 = vst [vmem:[#allocation68_spill] sm:$0xff] %v5285_v28  ;;  %v2004_v1 = vadd.f32 %v1874_v51, %v1704_v63  ;;  %v2178_v60 = vadd.f32 %v2146_v22, %v2110_v2  ;;  %v1649_v11 = vadd.f32 %v1617_v53, %v6554_v36  ;;  %3282 = vmatprep.subr.mxu0 %v5285_v28  ;;  %v2434_v27 = vadd.f32 1.0, %v3610_v54  ;;  %v6556_v22 = vld [vmem:[#allocation60_spill] sm:$0xff]  ;;  %v6557_v2 = vld [vmem:[#allocation91_spill] sm:$0xff] }
 0x19a   : > { %6553 = vst [vmem:[#allocation6_spill] sm:$0xff] %v5290_v48  ;;  %vm989_vm13 = vcmp.lt.s32.totalorder %v925_v34, 15  ;;  %v1790_v57 = vadd.f32 %v1758_v52, %v6555_v61  ;;  %3283 = vmatpush3.msra.mxu0 %v5152_v31  ;;  %v2062_v51 = vmul.f32 %v3987_v45, %v6556_v22  ;;  %v3612_v44 = vpop.eup %3611  ;;  %v2130_v53 = vmul.f32 %v4693_v55, %v6557_v2  ;;  %v6559_v52 = vld [vmem:[#allocation64_spill] sm:$0xff] }
 0x19b   : > { %v5298_v0 = vadd.f32 %v2178_v60, %v2004_v1  ;;  %v5300_v49 = vsel %vm989_vm13, %v1323_v23, 0.0  ;;  %v1688_v15 = vadd.f32 %v4639_v4, %v1649_v11  ;;  %3621 = vrcp.f32 %v2434_v27  ;;  %v6561_v60 = vld [vmem:[#allocation100_spill] sm:$0xff] }
 0x19c   : > { %v1826_v63 = vmul.f32 %v3982_v43, %v5300_v49  ;;  %v908_v5 = vadd.s32 176, %v6537_v19  ;;  %v5311_v34 = vmul.f32 %v3612_v44, %v5128_v39  ;;  %v2094_v54 = vadd.f32 %v2062_v51, %v6559_v52 }
 0x19d   : > { %v3230_v23 = vmul.f32 -1.442695, %v5298_v0  ;;  %v6560_v1 = vrot.slane %v6540_v20, 7  ;;  %v6562_v36 = vrot.slane %v6561_v60, 7  ;;  %v6563_v22 = vrot.slane %v6538_v7, 1 }
 0x19e   : > { %6558 = vst [vmem:[#allocation10_spill] sm:$0xff] %v5311_v34  ;;  %v1858_v27 = vadd.f32 %v1826_v63, %v1790_v57  ;;  %v940_v61 = vand.u32 15, %v908_v5  ;;  %v6564_v2 = vrot.slane %v6540_v20, 1  ;;  %v1564_v39 = vmul.f32 %v3939_v16, %v5175_v18  ;;  %v3614_v44 = vpop.eup %3613  ;;  %3284 = vmatprep.subr.mxu0 %v5311_v34 }
 0x19f   : > { %v1159_v11 = vsel %vm1114_vm1, %v6562_v36, %v6560_v1  ;;  %3623 = vpow2.f32 %v3230_v23  ;;  %v2162_v51 = vadd.f32 %v2130_v53, %v2094_v54  ;;  %v1632_v52 = vmul.f32 %v3941_v17, %v5182_v56  ;;  %3285 = vmatpush3.msra.mxu0 %v5187_v25  ;;  %v6565_v1 = vld [vmem:[#allocation79_spill] sm:$0xff] }
 0x1a0   : > { %v5325_v35 = vsel %vm1306_vm4, %v6564_v2, %v6563_v22  ;;  %v1737_v57 = vmul.f32 %v6447_v33, %v6540_v20  ;;  %v2433_v63 = vadd.f32 1.0, %v3614_v44  ;;  %v1988_v5 = vadd.f32 %v1858_v27, %v1688_v15  ;;  %v3616_v22 = vpop.eup %3615 }
 0x1a1   : > { %vm972_vm14 = vcmp.gt.s32.totalorder %v940_v61, 0  ;;  %v1596_v36 = vadd.f32 %v1564_v39, %v6565_v1  ;;  %v1841_v23 = vmul.f32 %v3982_v43, %v5325_v35  ;;  %v2041_v53 = vmul.f32 %v3927_v10, %v4765_v59 }
 0x1a2   : > { %v5336_v2 = vsel %vm972_vm14, %v1159_v11, 0.0  ;;  %v2077_v54 = vmul.f32 %v3987_v45, %v5092_v3  ;;  %v5345_v28 = vmul.f32 %v3616_v22, %v5158_v37  ;;  %3625 = vrcp.f32 %v2433_v63  ;;  %v6568_v63 = vld [vmem:[#allocation24_spill] sm:$0xff] }
 0x1a3   : > { %v5347_v15 = vadd.f32 %v2162_v51, %v1988_v5  ;;  %v1664_v27 = vadd.f32 %v1632_v52, %v1596_v36  ;;  %v1773_v11 = vmul.f32 %v3967_v32, %v5336_v2  ;;  %v2145_v39 = vmul.f32 %v4693_v55, %v5101_v21  ;;  %v3618_v59 = vpop.eup %3617 }
 0x1a4   : > { %6566 = vst [vmem:[#allocation9_spill] sm:$0xff] %v5345_v28  ;;  %v2109_v61 = vadd.f32 %v2077_v54, %v2041_v53  ;;  %v892_v44 = vadd.s32 48, %v6537_v19  ;;  %3286 = vmatprep.subr.mxu0 %v5345_v28  ;;  %v6567_v52 = vrot.slane %v6548_v46, 1  ;;  %v6569_v5 = vrot.slane %v6568_v63, 1  ;;  %v3620_v21 = vpop.eup %3619 }
 0x1a5   : > { %v3214_v37 = vmul.f32 -1.442695, %v5347_v15  ;;  %v1703_v51 = vadd.f32 %v4639_v4, %v1664_v27  ;;  %3287 = vmatpush3.msra.mxu0 %v5290_v48  ;;  %v5368_v36 = vmul.f32 %v3618_v59, %v5172_v58  ;;  %v1805_v22 = vadd.f32 %v1773_v11, %v1737_v57  ;;  %v6571_v57 = vld [vmem:[#allocation45_spill] sm:$0xff] }
 0x1a6   : > { %v5364_v1 = vsel %vm1306_vm4, %v6569_v5, %v6567_v52  ;;  %v2177_v53 = vadd.f32 %v2145_v39, %v2109_v61  ;;  %v924_v54 = vand.u32 15, %v892_v44  ;;  %v2417_v3 = vadd.f32 1.0, %v3620_v21  ;;  %v6572_v61 = vld [vmem:[#allocation58_spill] sm:$0xff]  ;;  %v6573_v5 = vld [vmem:[#allocation55_spill] sm:$0xff] }
 0x1a7   : > { %6570 = vst [vmem:[#allocation16_spill] sm:$0xff] %v5368_v36  ;;  %3627 = vpow2.f32 %v3214_v37  ;;  %v1616_v27 = vmul.f32 %v3941_v17, %v5214_v12  ;;  %v1825_v46 = vmul.f32 %v3982_v43, %v5364_v1  ;;  %v1873_v40 = vadd.f32 %v1841_v23, %v1805_v22  ;;  %v6575_v22 = vld [vmem:[#allocation97_spill] sm:$0xff] }
 0x1a8   : > { %vm956_vm15 = vcmp.gt.s32.totalorder %v924_v54, 0  ;;  %v2061_v52 = vmul.f32 %v3987_v45, %v6530_v6  ;;  %v2129_v58 = vmul.f32 %v4693_v55, %v6531_v47  ;;  %3629 = vrcp.f32 %v2417_v3  ;;  %v3622_v59 = vpop.eup %3621 }
 0x1a9   : > { %v5379_v11 = vsel %vm956_vm15, %v6571_v57, 0.0  ;;  %v1648_v39 = vadd.f32 %v1616_v27, %v6572_v61  ;;  %v907_v44 = vadd.s32 168, %v6537_v19  ;;  %v2003_v37 = vadd.f32 %v1873_v40, %v1703_v51 }
 0x1aa   : > { %v1757_v23 = vmul.f32 %v3967_v32, %v5379_v11  ;;  %v2093_v21 = vadd.f32 %v2061_v52, %v6573_v5  ;;  %v6574_v6 = vrot.slane %v6561_v60, 7  ;;  %v6576_v54 = vrot.slane %v6575_v22, 7  ;;  %v6580_v5 = vld [vmem:[#allocation31_spill] sm:$0xff] }
 0x1ab   : > { %v5394_v3 = vmul.f32 %v3622_v59, %v5193_v9  ;;  %v1687_v27 = vadd.f32 %v4639_v4, %v1648_v39  ;;  %v939_v57 = vand.u32 15, %v907_v44  ;;  %v6578_v40 = vrot.slane %v6540_v20, 1 }
 0x1ac   : > { %v5391_v47 = vsel %vm1114_vm1, %v6576_v54, %v6574_v6  ;;  %v6579_v51 = vrot.slane %v6561_v60, 1  ;;  %v5402_v52 = vadd.f32 %v2177_v53, %v2003_v37  ;;  %v1789_v28 = vadd.f32 %v1757_v23, %v6580_v5  ;;  %v3624_v54 = vpop.eup %3623  ;;  %v6581_v37 = vld [vmem:[#allocation102_spill] sm:$0xff] }
 0x1ad   : > { %6577 = vst [vmem:[#allocation11_spill] sm:$0xff] %v5394_v3  ;;  %v2161_v34 = vadd.f32 %v2129_v58, %v2093_v21  ;;  %v1563_v6 = vmul.f32 %v3939_v16, %v5238_v62  ;;  %3288 = vmatprep.subr.mxu0 %v5394_v3  ;;  %vm1003_vm2 = vcmp.lt.s32.totalorder %v939_v57, 15  ;;  %v1631_v4 = vmul.f32 %v3941_v17, %v5256_v30  ;;  %v6590_v3 = vld [vmem:[#allocation70_spill] sm:$0xff] }
 0x1ae   : > { %v1351_v61 = vsel %vm1306_vm4, %v6579_v51, %v6578_v40  ;;  %v1736_v9 = vmul.f32 %v6447_v33, %v6561_v60  ;;  %v1772_v53 = vmul.f32 %v3967_v32, %v5391_v47  ;;  %3289 = vmatpush3.msra.mxu0 %v5368_v36  ;;  %v2432_v39 = vadd.f32 1.0, %v3624_v54 }
 0x1af   : > { %v3229_v58 = vmul.f32 -1.442695, %v5402_v52  ;;  %v1857_v44 = vadd.f32 %v1825_v46, %v1789_v28  ;;  %v5416_v59 = vsel %vm1003_vm2, %v1351_v61, 0.0  ;;  %v1595_v23 = vadd.f32 %v1563_v6, %v6581_v37  ;;  %v3626_v51 = vpop.eup %3625 }
 0x1b0   : > { %v1804_v21 = vadd.f32 %v1772_v53, %v1736_v9  ;;  %v1840_v57 = vmul.f32 %v3982_v43, %v5416_v59  ;;  %v2040_v40 = vmul.f32 %v3927_v10, %v4926_v14  ;;  %3631 = vrcp.f32 %v2432_v39 }
 0x1b1   : > { %v1987_v5 = vadd.f32 %v1857_v44, %v1687_v27  ;;  %v2076_v54 = vmul.f32 %v3987_v45, %v5123_v29  ;;  %v2144_v28 = vmul.f32 %v4693_v55, %v5142_v38  ;;  %v5428_v46 = vmul.f32 %v3626_v51, %v5230_v42  ;;  %v6584_v27 = vld [vmem:[#allocation37_spill] sm:$0xff]  ;;  %v5444_v42 = vld [vmem:[%s6154_s4] ss:$0 sm:$0xff] }
 0x1b2   : > { %3633 = vpow2.f32 %v3229_v58  ;;  %v1663_v61 = vadd.f32 %v1631_v4, %v1595_v23  ;;  %v1872_v6 = vadd.f32 %v1840_v57, %v1804_v21  ;;  %v891_v14 = vadd.s32 40, %v6537_v19  ;;  %v6589_v38 = vld [vmem:[#allocation46_spill] sm:$0xff] }
 0x1b3   : > { %6582 = vst [vmem:[#allocation12_spill] sm:$0xff] %v5428_v46  ;;  %v5430_v9 = vadd.f32 %v2161_v34, %v1987_v5  ;;  %v2108_v53 = vadd.f32 %v2076_v54, %v2040_v40  ;;  %v6583_v39 = vrot.slane %v6568_v63, 1  ;;  %v6585_v44 = vrot.slane %v6584_v27, 1  ;;  %3290 = vmatprep.subr.mxu0 %v5428_v46  ;;  %v6586_v63 = vld [vmem:[#allocation44_spill] sm:$0xff] }
 0x1b4   : > { %v1702_v34 = vadd.f32 %v5444_v42, %v1663_v61  ;;  %v1615_v4 = vmul.f32 %v3941_v17, %v5300_v49  ;;  %v1756_v58 = vmul.f32 %v3967_v32, %v6586_v63  ;;  %v3628_v37 = vpop.eup %3627  ;;  %v923_v57 = vand.u32 15, %v891_v14  ;;  %v6587_v40 = vld [vmem:[#allocation72_spill] sm:$0xff] }
 0x1b5   : > { %v1319_v29 = vsel %vm1306_vm4, %v6585_v44, %v6583_v39  ;;  %v3213_v23 = vmul.f32 -1.442695, %v5430_v9  ;;  %v2176_v21 = vadd.f32 %v2144_v28, %v2108_v53  ;;  %v2060_v51 = vmul.f32 %v3987_v45, %v6587_v40  ;;  %v6588_v39 = vld [vmem:[#allocation49_spill] sm:$0xff]  ;;  %v3630_v46 = vpop.eup %3629  ;;  %v6596_v40 = vld [vmem:[#allocation98_spill] sm:$0xff] }
 0x1b6   : > { %v2416_v5 = vadd.f32 1.0, %v3628_v37  ;;  %v2002_v54 = vadd.f32 %v1872_v6, %v1702_v34  ;;  %v1647_v44 = vadd.f32 %v1615_v4, %v6588_v39  ;;  %v1788_v61 = vadd.f32 %v1756_v58, %v6589_v38 }
 0x1b7   : > { %3635 = vpow2.f32 %v3213_v23  ;;  %vm987_vm3 = vcmp.lt.s32.totalorder %v923_v57, 15  ;;  %v2092_v50 = vadd.f32 %v2060_v51, %v6590_v3  ;;  %v2128_v31 = vmul.f32 %v4693_v55, %v6550_v8  ;;  %v6592_v8 = vld [vmem:[#allocation4_spill] sm:$0xff] }
 0x1b8   : > { %v5460_v28 = vmul.f32 %v3630_v46, %v5264_v13  ;;  %3637 = vrcp.f32 %v2416_v5  ;;  %v5462_v53 = vadd.f32 %v2176_v21, %v2002_v54  ;;  %v5464_v14 = vsel %vm987_vm3, %v1319_v29, 0.0 }
 0x1b9   : > { %v1686_v6 = vadd.f32 %v5444_v42, %v1647_v44  ;;  %v1824_v38 = vmul.f32 %v3982_v43, %v5464_v14  ;;  %v2160_v34 = vadd.f32 %v2128_v31, %v2092_v50  ;;  %v906_v4 = vadd.s32 160, %v6537_v19 }
 0x1ba   : > { %3291 = vmatpush3.msra.mxu0 %v5460_v28  ;;  %v3228_v55 = vmul.f32 -1.442695, %v5462_v53  ;;  %v6591_v13 = vrot.slane %v6575_v22, 7  ;;  %v6593_v3 = vrot.slane %v6592_v8, 7  ;;  %v6594_v29 = vrot.slane %v6561_v60, 1 }
 0x1bb   : > { %v6595_v58 = vrot.slane %v6575_v22, 1  ;;  %v1562_v50 = vmul.f32 %v3939_v16, %v5336_v2  ;;  %v1856_v31 = vadd.f32 %v1824_v38, %v1788_v61  ;;  %v938_v23 = vand.u32 15, %v906_v4  ;;  %v5500_v61 = vld [vmem:[%s6153_s3 + $0x8] ss:$0 sm:$0xff] }
 0x1bc   : > { %v1155_v46 = vsel %vm1114_vm1, %v6593_v3, %v6591_v13  ;;  %v1630_v21 = vmul.f32 %v3941_v17, %v5325_v35  ;;  %v1735_v57 = vmul.f32 %v6447_v33, %v6575_v22  ;;  %3639 = vpow2.f32 %v3228_v55 }
 0x1bd   : > { %v5482_v37 = vsel %vm1306_vm4, %v6595_v58, %v6594_v29  ;;  %v1594_v51 = vadd.f32 %v1562_v50, %v6596_v40  ;;  %v2039_v54 = vmul.f32 %v3927_v10, %v4789_v26  ;;  %v1986_v39 = vadd.f32 %v1856_v31, %v1686_v6  ;;  %v3632_v4 = vpop.eup %3631  ;;  %v6598_v26 = vld [vmem:[#allocation34_spill] sm:$0xff] }
 0x1be   : > { %v1839_v5 = vmul.f32 %v3982_v43, %v5482_v37  ;;  %vm970_vm5 = vcmp.gt.s32.totalorder %v938_v23, 0  ;;  %v2075_v44 = vmul.f32 %v3987_v45, %v5175_v18  ;;  %v2143_v38 = vmul.f32 %v5500_v61, %v5182_v56 }
 0x1bf   : > { %v5504_v55 = vsel %vm970_vm5, %v1155_v46, 0.0  ;;  %v1662_v13 = vadd.f32 %v1630_v21, %v1594_v51  ;;  %v6597_v3 = vrot.slane %v6584_v27, 1  ;;  %v6599_v6 = vrot.slane %v6598_v26, 1  ;;  %v3634_v58 = vpop.eup %3633  ;;  %v6601_v21 = vld [vmem:[#allocation26_spill] sm:$0xff] }
 0x1c0   : > { %v1546_v18 = vmul.f32 %v3939_v16, %v5379_v11  ;;  %v5516_v50 = vmul.f32 %v3632_v4, %v5298_v0  ;;  %v5518_v31 = vadd.f32 %v2160_v34, %v1986_v39  ;;  %v1771_v56 = vmul.f32 %v3967_v32, %v5504_v55  ;;  %v6602_v34 = vld [vmem:[#allocation41_spill] sm:$0xff] }
 0x1c1   : > { %v5511_v29 = vsel %vm1306_vm4, %v6599_v6, %v6597_v3  ;;  %v2107_v46 = vadd.f32 %v2075_v44, %v2039_v54  ;;  %v2431_v23 = vadd.f32 1.0, %v3634_v58  ;;  %v1701_v27 = vadd.f32 %v5444_v42, %v1662_v13 }
 0x1c2   : > { %6600 = vst [vmem:[#allocation82_spill] sm:$0xff] %v5516_v50  ;;  %v1578_v40 = vadd.f32 %v1546_v18, %v6601_v21  ;;  %v1614_v51 = vmul.f32 %v3941_v17, %v5364_v1  ;;  %3292 = vmatprep.subr.mxu0 %v5516_v50  ;;  %v3212_v3 = vmul.f32 -1.442695, %v5518_v31  ;;  %v1803_v0 = vadd.f32 %v1771_v56, %v1735_v57  ;;  %v6603_v18 = vld [vmem:[#allocation38_spill] sm:$0xff]  ;;  %v6604_v56 = vld [vmem:[#allocation59_spill] sm:$0xff] }
 0x1c3   : > { %v2175_v4 = vadd.f32 %v2143_v38, %v2107_v46  ;;  %v1755_v39 = vmul.f32 %v3967_v32, %v6602_v34  ;;  %3641 = vrcp.f32 %v2431_v23  ;;  %v1823_v54 = vmul.f32 %v3982_v43, %v5511_v29  ;;  %v6628_v50 = vld [vmem:[#allocation27_spill] sm:$0xff] }
 0x1c4   : > { %v1646_v6 = vadd.f32 %v1614_v51, %v1578_v40  ;;  %v2059_v44 = vmul.f32 %v3987_v45, %v6532_v41  ;;  %3643 = vpow2.f32 %v3212_v3  ;;  %v1871_v13 = vadd.f32 %v1839_v5, %v1803_v0  ;;  %v3636_v57 = vpop.eup %3635  ;;  %v6606_v51 = vld [vmem:[#allocation78_spill] sm:$0xff] }
 0x1c5   : > { %v1787_v58 = vadd.f32 %v1755_v39, %v6603_v18  ;;  %v2127_v21 = vmul.f32 %v5500_v61, %v5214_v12  ;;  %v905_v23 = vadd.s32 152, %v6537_v19  ;;  %v6605_v40 = vrot.slane %v6592_v8, 7  ;;  %v3638_v5 = vpop.eup %3637 }
 0x1c6   : > { %v1685_v38 = vadd.f32 %v5444_v42, %v1646_v6  ;;  %v2091_v46 = vadd.f32 %v2059_v44, %v6604_v56  ;;  %v6607_v25 = vrot.slane %v6606_v51, 7  ;;  %v2415_v3 = vadd.f32 1.0, %v3636_v57 }
 0x1c7   : > { %v2001_v0 = vadd.f32 %v1871_v13, %v1701_v27  ;;  %v1855_v39 = vadd.f32 %v1823_v54, %v1787_v58  ;;  %v6608_v12 = vrot.slane %v6575_v22, 1  ;;  %v6609_v18 = vrot.slane %v6592_v8, 1  ;;  %v6610_v54 = vld [vmem:[#allocation103_spill] sm:$0xff] }
 0x1c8   : > { %v5545_v41 = vsel %vm1114_vm1, %v6607_v25, %v6605_v40  ;;  %v5553_v44 = vmul.f32 %v3638_v5, %v5347_v15  ;;  %v2159_v56 = vadd.f32 %v2127_v21, %v2091_v46  ;;  %v937_v48 = vand.u32 15, %v905_v23 }
 0x1c9   : > { %v1347_v6 = vsel %vm1306_vm4, %v6609_v18, %v6608_v12  ;;  %v1561_v36 = vmul.f32 %v3939_v16, %v5391_v47  ;;  %3645 = vrcp.f32 %v2415_v3  ;;  %v5557_v25 = vadd.f32 %v2175_v4, %v2001_v0  ;;  %v3640_v21 = vpop.eup %3639 }
 0x1ca   : > { %v1985_v57 = vadd.f32 %v1855_v39, %v1685_v38  ;;  %v1629_v27 = vmul.f32 %v3941_v17, %v5416_v59  ;;  %3293 = vmatpush3.msra.mxu0 %v5553_v44  ;;  %vm1001_vm6 = vcmp.lt.s32.totalorder %v937_v48, 15  ;;  %v1734_v15 = vmul.f32 %v6447_v33, %v6592_v8 }
 0x1cb   : > { %v1593_v13 = vadd.f32 %v1561_v36, %v6610_v54  ;;  %v1770_v58 = vmul.f32 %v3967_v32, %v5545_v41  ;;  %v3227_v46 = vmul.f32 -1.442695, %v5557_v25  ;;  %v5570_v38 = vsel %vm1001_vm6, %v1347_v6, 0.0 }
 0x1cc   : > { %v5568_v4 = vadd.f32 %v2159_v56, %v1985_v57  ;;  %v2038_v23 = vmul.f32 %v3927_v10, %v6538_v7  ;;  %v2430_v40 = vadd.f32 1.0, %v3640_v21  ;;  %v1838_v36 = vmul.f32 %v3982_v43, %v5570_v38  ;;  %v6612_v57 = vld [vmem:[#allocation18_spill] sm:$0xff] }
 0x1cd   : > { %v1661_v48 = vadd.f32 %v1629_v27, %v1593_v13  ;;  %v1802_v5 = vadd.f32 %v1770_v58, %v1734_v15  ;;  %3647 = vpow2.f32 %v3227_v46  ;;  %v2074_v0 = vmul.f32 %v3987_v45, %v5238_v62 }
 0x1ce   : > { %v3211_v3 = vmul.f32 -1.442695, %v5568_v4  ;;  %v2142_v39 = vmul.f32 %v5500_v61, %v5256_v30  ;;  %3649 = vrcp.f32 %v2430_v40  ;;  %v889_v7 = vadd.s32 24, %v6537_v19  ;;  %v6614_v30 = vld [vmem:[#allocation23_spill] sm:$0xff] }
 0x1cf   : > { %v1700_v12 = vadd.f32 %v5444_v42, %v1661_v48  ;;  %v1870_v18 = vadd.f32 %v1838_v36, %v1802_v5  ;;  %v2106_v6 = vadd.f32 %v2074_v0, %v2038_v23  ;;  %v6611_v56 = vrot.slane %v6598_v26, 1  ;;  %v6615_v23 = vld [vmem:[#allocation51_spill] sm:$0xff]  ;;  %v6617_v0 = vld [vmem:[#allocation21_spill] sm:$0xff] }
 0x1d0   : > { %3651 = vpow2.f32 %v3211_v3  ;;  %v6613_v27 = vrot.slane %v6612_v57, 1  ;;  %v1613_v62 = vmul.f32 %v3941_v17, %v5464_v14  ;;  %v921_v15 = vand.u32 15, %v889_v7  ;;  %v3642_v46 = vpop.eup %3641 }
 0x1d1   : > { %v2000_v13 = vadd.f32 %v1870_v18, %v1700_v12  ;;  %v1754_v58 = vmul.f32 %v3967_v32, %v6614_v30  ;;  %v2058_v21 = vmul.f32 %v3987_v45, %v6552_v24  ;;  %v2174_v40 = vadd.f32 %v2142_v39, %v2106_v6  ;;  %v3644_v36 = vpop.eup %3643  ;;  %v6618_v18 = vld [vmem:[#allocation43_spill] sm:$0xff] }
 0x1d2   : > { %v1315_v54 = vsel %vm1306_vm4, %v6613_v27, %v6611_v56  ;;  %v1645_v48 = vadd.f32 %v1613_v62, %v6615_v23  ;;  %v2126_v26 = vmul.f32 %v5500_v61, %v5300_v49  ;;  %v904_v5 = vadd.s32 144, %v6537_v19 }
 0x1d3   : > { %v5599_v3 = vmul.f32 %v3642_v46, %v5402_v52  ;;  %vm985_vm7 = vcmp.lt.s32.totalorder %v921_v15, 15  ;;  %v1786_v12 = vadd.f32 %v1754_v58, %v6617_v0  ;;  %v2090_v7 = vadd.f32 %v2058_v21, %v6618_v18  ;;  %v6620_v58 = vld [vmem:[#allocation92_spill] sm:$0xff] }
 0x1d4   : > { %v2414_v56 = vadd.f32 1.0, %v3644_v36  ;;  %v5603_v24 = vadd.f32 %v2174_v40, %v2000_v13  ;;  %v5605_v39 = vsel %vm985_vm7, %v1315_v54, 0.0  ;;  %v1684_v6 = vadd.f32 %v5444_v42, %v1645_v48 }
 0x1d5   : > { %6616 = vst [vmem:[#allocation54_spill] sm:$0xff] %v5599_v3  ;;  %3294 = vmatprep.subr.mxu0 %v5599_v3  ;;  %v1822_v52 = vmul.f32 %v3982_v43, %v5605_v39  ;;  %v2158_v27 = vadd.f32 %v2126_v26, %v2090_v7  ;;  %v936_v62 = vand.u32 15, %v904_v5  ;;  %v6619_v13 = vrot.slane %v6606_v51, 7 }
 0x1d6   : > { %3653 = vrcp.f32 %v2414_v56  ;;  %v3226_v15 = vmul.f32 -1.442695, %v5603_v24  ;;  %v6621_v54 = vrot.slane %v6620_v58, 7  ;;  %v6622_v46 = vrot.slane %v6592_v8, 1  ;;  %v3646_v48 = vpop.eup %3645 }
 0x1d7   : > { %v6623_v40 = vrot.slane %v6606_v51, 1  ;;  %v1854_v36 = vadd.f32 %v1822_v52, %v1786_v12  ;;  %vm968_vm8 = vcmp.gt.s32.totalorder %v936_v62, 0  ;;  %v1560_v26 = vmul.f32 %v3939_v16, %v5504_v55 }
 0x1d8   : > { %v1151_v21 = vsel %vm1114_vm1, %v6621_v54, %v6619_v13  ;;  %v1628_v5 = vmul.f32 %v3941_v17, %v5482_v37  ;;  %v5631_v0 = vmul.f32 %v3646_v48, %v5430_v9  ;;  %3655 = vpow2.f32 %v3226_v15  ;;  %v6624_v13 = vld [vmem:[#allocation61_spill] sm:$0xff] }
 0x1d9   : > { %v5624_v23 = vsel %vm1306_vm4, %v6623_v40, %v6622_v46  ;;  %v5633_v18 = vsel %vm968_vm8, %v1151_v21, 0.0  ;;  %v1733_v7 = vmul.f32 %v6447_v33, %v6606_v51  ;;  %v1984_v56 = vadd.f32 %v1854_v36, %v1684_v6  ;;  %v6626_v21 = vld [vmem:[#allocation13_spill] sm:$0xff] }
 0x1da   : > { %v1592_v54 = vadd.f32 %v1560_v26, %v6624_v13  ;;  %v1769_v12 = vmul.f32 %v3967_v32, %v5633_v18  ;;  %v1837_v52 = vmul.f32 %v3982_v43, %v5624_v23  ;;  %3295 = vmatpush3.msra.mxu0 %v5631_v0  ;;  %v2037_v9 = vmul.f32 %v3927_v10, %v6540_v20  ;;  %v3648_v48 = vpop.eup %3647 }
 0x1db   : > { %v2073_v62 = vmul.f32 %v3987_v45, %v5336_v2  ;;  %v2141_v15 = vmul.f32 %v5500_v61, %v5325_v35  ;;  %v6625_v6 = vrot.slane %v6612_v57, 1  ;;  %v6627_v46 = vrot.slane %v6626_v21, 1  ;;  %v3650_v49 = vpop.eup %3649 }
 0x1dc   : > { %v5656_v36 = vadd.f32 %v2158_v27, %v1984_v56  ;;  %v1660_v26 = vadd.f32 %v1628_v5, %v1592_v54  ;;  %v1801_v13 = vadd.f32 %v1769_v12, %v1733_v7  ;;  %v1612_v20 = vmul.f32 %v3941_v17, %v5511_v29  ;;  %v6629_v12 = vld [vmem:[#allocation48_spill] sm:$0xff] }
 0x1dd   : > { %v5654_v40 = vsel %vm1306_vm4, %v6627_v46, %v6625_v6  ;;  %v2429_v2 = vadd.f32 1.0, %v3648_v48  ;;  %v2105_v3 = vadd.f32 %v2073_v62, %v2037_v9  ;;  %v1753_v35 = vmul.f32 %v3967_v32, %v6628_v50  ;;  %v3652_v21 = vpop.eup %3651  ;;  %v6630_v46 = vld [vmem:[#allocation15_spill] sm:$0xff] }
 0x1de   : > { %v1821_v57 = vmul.f32 %v3982_v43, %v5654_v40  ;;  %v5665_v6 = vmul.f32 %v3650_v49, %v5462_v53  ;;  %v3210_v27 = vmul.f32 -1.442695, %v5656_v36  ;;  %v1699_v5 = vadd.f32 %v5444_v42, %v1660_v26 }
 0x1df   : > { %v1869_v7 = vadd.f32 %v1837_v52, %v1801_v13  ;;  %3657 = vrcp.f32 %v2429_v2  ;;  %v2413_v56 = vadd.f32 1.0, %v3652_v21  ;;  %v2173_v54 = vadd.f32 %v2141_v15, %v2105_v3  ;;  %v6631_v13 = vld [vmem:[#allocation36_spill] sm:$0xff] }
 0x1e0   : > { %v1644_v9 = vadd.f32 %v1612_v20, %v6629_v12  ;;  %3296 = vmatprep.subr.mxu0 %v5665_v6  ;;  %3659 = vpow2.f32 %v3210_v27  ;;  %v1785_v48 = vadd.f32 %v1753_v35, %v6630_v46  ;;  %v2057_v53 = vmul.f32 %v3987_v45, %v5379_v11  ;;  %v6632_v35 = vld [vmem:[#allocation95_spill] sm:$0xff]  ;;  %v6633_v27 = vld [vmem:[#allocation101_spill] sm:$0xff] }
 0x1e1   : > { %v1999_v62 = vadd.f32 %v1869_v7, %v1699_v5  ;;  %3661 = vrcp.f32 %v2413_v56  ;;  %v2125_v52 = vmul.f32 %v5500_v61, %v5364_v1  ;;  %v1559_v3 = vmul.f32 %v3939_v16, %v5545_v41  ;;  %v6634_v1 = vld [vmem:[#allocation62_spill] sm:$0xff] }
 0x1e2   : > { %v1683_v49 = vadd.f32 %v5444_v42, %v1644_v9  ;;  %v1853_v26 = vadd.f32 %v1821_v57, %v1785_v48  ;;  %v2089_v20 = vadd.f32 %v2057_v53, %v6631_v13  ;;  %v1627_v2 = vmul.f32 %v3941_v17, %v5570_v38 }
 0x1e3   : > { %v5679_v15 = vadd.f32 %v2173_v54, %v1999_v62  ;;  %v1591_v21 = vadd.f32 %v1559_v3, %v6632_v35  ;;  %v1732_v11 = vmul.f32 %v6447_v33, %v6620_v58  ;;  %v1768_v5 = vmul.f32 %v3967_v32, %v6633_v27  ;;  %v3654_v56 = vpop.eup %3653  ;;  %v6636_v35 = vld [vmem:[#allocation29_spill] sm:$0xff] }
 0x1e4   : > { %v1836_v7 = vmul.f32 %v3982_v43, %v6634_v1  ;;  %v1983_v57 = vadd.f32 %v1853_v26, %v1683_v49  ;;  %v2157_v12 = vadd.f32 %v2125_v52, %v2089_v20  ;;  %v2036_v9 = vmul.f32 %v3927_v10, %v6561_v60 }
 0x1e5   : > { %v3225_v54 = vmul.f32 -1.442695, %v5679_v15  ;;  %v5695_v62 = vmul.f32 %v3654_v56, %v5518_v31  ;;  %v1659_v46 = vadd.f32 %v1627_v2, %v1591_v21  ;;  %v1800_v48 = vadd.f32 %v1768_v5, %v1732_v11  ;;  %v3656_v53 = vpop.eup %3655 }
 0x1e6   : > { %v2072_v58 = vmul.f32 %v3987_v45, %v5391_v47  ;;  %v5699_v3 = vadd.f32 %v2157_v12, %v1983_v57  ;;  %v2140_v13 = vmul.f32 %v5500_v61, %v5416_v59  ;;  %v1611_v49 = vmul.f32 %v3941_v17, %v5605_v39  ;;  %v6635_v47 = vld [vmem:[#allocation25_spill] sm:$0xff]  ;;  %v6638_v12 = vld [vmem:[#allocation52_spill] sm:$0xff] }
 0x1e7   : > { %3663 = vpow2.f32 %v3225_v54  ;;  %3297 = vmatpush3.msra.mxu0 %v5695_v62  ;;  %v2428_v60 = vadd.f32 1.0, %v3656_v53  ;;  %v1698_v31 = vadd.f32 %v5444_v42, %v1659_v46  ;;  %v1868_v52 = vadd.f32 %v1836_v7, %v1800_v48  ;;  %v6637_v54 = vld [vmem:[#allocation33_spill] sm:$0xff] }
 0x1e8   : > { %v2104_v26 = vadd.f32 %v2072_v58, %v2036_v9  ;;  %v3209_v20 = vmul.f32 -1.442695, %v5699_v3  ;;  %v1643_v2 = vadd.f32 %v1611_v49, %v6635_v47  ;;  %v1820_v21 = vmul.f32 %v3982_v43, %v6636_v35  ;;  %v6639_v58 = vld [vmem:[#allocation85_spill] sm:$0xff] }
 0x1e9   : > { %v2056_v59 = vmul.f32 %v3987_v45, %v6586_v63  ;;  %3665 = vrcp.f32 %v2428_v60  ;;  %v1998_v11 = vadd.f32 %v1868_v52, %v1698_v31  ;;  %v2124_v56 = vmul.f32 %v5500_v61, %v5464_v14  ;;  %v6640_v60 = vld [vmem:[#allocation90_spill] sm:$0xff]  ;;  %v6641_v52 = vld [vmem:[#allocation104_spill] sm:$0xff] }
 0x1ea   : > { %v2172_v5 = vadd.f32 %v2140_v13, %v2104_v26  ;;  %3667 = vpow2.f32 %v3209_v20  ;;  %v1682_v7 = vadd.f32 %v5444_v42, %v1643_v2  ;;  %v1852_v57 = vadd.f32 %v1820_v21, %v6637_v54  ;;  %v6642_v21 = vld [vmem:[#allocation86_spill] sm:$0xff] }
 0x1eb   : > { %v2088_v9 = vadd.f32 %v2056_v59, %v6638_v12  ;;  %v1558_v48 = vmul.f32 %v3939_v16, %v5633_v18  ;;  %v1626_v63 = vmul.f32 %v3941_v17, %v5624_v23  ;;  %v1731_v53 = vmul.f32 %v6447_v33, %v6639_v58 }
 0x1ec   : > { %v5718_v46 = vadd.f32 %v2172_v5, %v1998_v11  ;;  %v3658_v13 = vpop.eup %3657  ;;  %v1982_v14 = vadd.f32 %v1852_v57, %v1682_v7  ;;  %v1767_v31 = vmul.f32 %v3967_v32, %v6640_v60  ;;  %v1835_v26 = vmul.f32 %v3982_v43, %v6641_v52 }
 0x1ed   : > { %v2156_v49 = vadd.f32 %v2124_v56, %v2088_v9  ;;  %v3660_v20 = vpop.eup %3659  ;;  %v5731_v47 = vmul.f32 %v3658_v13, %v5557_v25  ;;  %v1590_v59 = vadd.f32 %v1558_v48, %v6642_v21  ;;  %v2035_v11 = vmul.f32 %v3927_v10, %v6575_v22 }
 0x1ee   : > { %v3224_v2 = vmul.f32 -1.442695, %v5718_v46  ;;  %v3662_v5 = vpop.eup %3661  ;;  %v2412_v7 = vadd.f32 1.0, %v3660_v20  ;;  %v1799_v54 = vadd.f32 %v1767_v31, %v1731_v53  ;;  %v2071_v57 = vmul.f32 %v3987_v45, %v5504_v55  ;;  %v6645_v31 = vld [vmem:[#allocation20_spill] sm:$0xff] }
 0x1ef   : > { %v5737_v56 = vadd.f32 %v2156_v49, %v1982_v14  ;;  %3298 = vmatprep.subr.mxu0 %v5731_v47  ;;  %v2801_v25 = vpack.c.bf16 %v5665_v6, %v5731_v47  ;;  %v5745_v12 = vmul.f32 %v3662_v5, %v5568_v4  ;;  %v1658_v9 = vadd.f32 %v1626_v63, %v1590_v59  ;;  %v6643_v14 = vld [vmem:[#allocation14_spill] sm:$0xff]  ;;  %v6678_v6 = vld [vmem:[#allocation68_spill] sm:$0xff] }
 0x1f0   : > { %3669 = vpow2.f32 %v3224_v2  ;;  %v1867_v48 = vadd.f32 %v1835_v26, %v1799_v54  ;;  %v2103_v58 = vadd.f32 %v2071_v57, %v2035_v11  ;;  %v2139_v13 = vmul.f32 %v5500_v61, %v5482_v37  ;;  %v6644_v4 = vld [vmem:[#allocation30_spill] sm:$0xff]  ;;  %v6646_v26 = vld [vmem:[#allocation69_spill] sm:$0xff]  ;;  %v6647_v2 = vld [vmem:[#allocation28_spill] sm:$0xff] }
 0x1f1   : > { %3671 = vrcp.f32 %v2412_v7  ;;  %v3208_v22 = vmul.f32 -1.442695, %v5737_v56  ;;  %3299 = vmatpush3.msra.mxu0 %v5745_v12  ;;  %v2793_v55 = vpack.c.bf16 %v5695_v62, %v5745_v12  ;;  %v1697_v53 = vadd.f32 %v5444_v42, %v1658_v9  ;;  %v6671_v12 = vld [vmem:[#allocation11_spill] sm:$0xff] }
 0x1f2   : > { %v1574_v49 = vadd.f32 %v6644_v4, %v6643_v14  ;;  %v1610_v63 = vmul.f32 %v3941_v17, %v5654_v40  ;;  %v1783_v20 = vadd.f32 %v6646_v26, %v6645_v31  ;;  %v1819_v21 = vmul.f32 %v3982_v43, %v6647_v2  ;;  %v6648_v4 = vld [vmem:[#allocation39_spill] sm:$0xff] }
 0x1f3   : > { %3673 = vpow2.f32 %v3208_v22  ;;  %v1997_v11 = vadd.f32 %v1867_v48, %v1697_v53  ;;  %v2171_v5 = vadd.f32 %v2139_v13, %v2103_v58  ;;  %v2055_v7 = vmul.f32 %v3987_v45, %v6602_v34  ;;  %v6649_v58 = vld [vmem:[#allocation75_spill] sm:$0xff]  ;;  %v6650_v13 = vld [vmem:[#allocation96_spill] sm:$0xff] }
 0x1f4   : > { %v3664_v59 = vpop.eup %3663  ;;  %v2123_v37 = vmul.f32 %v5500_v61, %v5511_v29  ;;  %v1642_v57 = vadd.f32 %v1610_v63, %v1574_v49  ;;  %v1851_v9 = vadd.f32 %v1819_v21, %v1783_v20  ;;  %v1557_v22 = vmul.f32 %v3939_v16, %v6633_v27  ;;  %v6651_v63 = vld [vmem:[#allocation80_spill] sm:$0xff] }
 0x1f5   : > { %v2427_v54 = vadd.f32 1.0, %v3664_v59  ;;  %v5768_v14 = vadd.f32 %v2171_v5, %v1997_v11  ;;  %v2087_v31 = vadd.f32 %v2055_v7, %v6648_v4  ;;  %v1625_v48 = vmul.f32 %v3941_v17, %v6634_v1  ;;  %v6652_v1 = vld [vmem:[#allocation88_spill] sm:$0xff] }
 0x1f6   : > { %v1730_v53 = vmul.f32 %v6447_v33, %v6649_v58  ;;  %v3666_v34 = vpop.eup %3665  ;;  %v1681_v29 = vadd.f32 %v5444_v42, %v1642_v57  ;;  %v1589_v49 = vadd.f32 %v1557_v22, %v6650_v13  ;;  %v1766_v26 = vmul.f32 %v3967_v32, %v6651_v63 }
 0x1f7   : > { %3675 = vrcp.f32 %v2427_v54  ;;  %v3668_v27 = vpop.eup %3667  ;;  %v5780_v20 = vmul.f32 %v3666_v34, %v5603_v24  ;;  %v3223_v21 = vmul.f32 -1.442695, %v5768_v14  ;;  %v2155_v59 = vadd.f32 %v2123_v37, %v2087_v31 }
 0x1f8   : > { %v1834_v11 = vmul.f32 %v3982_v43, %v6652_v1  ;;  %v2411_v5 = vadd.f32 1.0, %v3668_v27  ;;  %v1981_v7 = vadd.f32 %v1851_v9, %v1681_v29  ;;  %v1657_v54 = vadd.f32 %v1625_v48, %v1589_v49 }
 0x1f9   : > { %v1798_v4 = vadd.f32 %v1766_v26, %v1730_v53  ;;  %3300 = vmatprep.subr.mxu0 %v5780_v20  ;;  %3677 = vpow2.f32 %v3223_v21  ;;  %v2034_v57 = vmul.f32 %v3927_v10, %v6592_v8  ;;  %v2070_v24 = vmul.f32 %v3987_v45, %v5545_v41  ;;  %v6654_v21 = vld [vmem:[#allocation22_spill] sm:$0xff] }
 0x1fa   : > { %v2138_v22 = vmul.f32 %v5500_v61, %v5570_v38  ;;  %3679 = vrcp.f32 %v2411_v5  ;;  %v5792_v37 = vadd.f32 %v2155_v59, %v1981_v7  ;;  %v1696_v31 = vadd.f32 %v5444_v42, %v1657_v54 }
 0x1fb   : > { %v1866_v9 = vadd.f32 %v1834_v11, %v1798_v4  ;;  %v2102_v48 = vadd.f32 %v2070_v24, %v2034_v57  ;;  %v1609_v58 = vmul.f32 %v3941_v17, %v6636_v35  ;;  %v2054_v53 = vmul.f32 %v3987_v45, %v6614_v30  ;;  %v6653_v35 = vld [vmem:[#allocation32_spill] sm:$0xff]  ;;  %v6656_v11 = vld [vmem:[#allocation71_spill] sm:$0xff]  ;;  %v6658_v24 = vld [vmem:[#allocation81_spill] sm:$0xff] }
 0x1fc   : > { %v2122_v8 = vmul.f32 %v5500_v61, %v5605_v39  ;;  %v3207_v34 = vmul.f32 -1.442695, %v5792_v37  ;;  %v1556_v29 = vmul.f32 %v3939_v16, %v6640_v60  ;;  %v1624_v13 = vmul.f32 %v3941_v17, %v6641_v52  ;;  %v6655_v39 = vld [vmem:[#allocation87_spill] sm:$0xff] }
 0x1fd   : > { %v3670_v41 = vpop.eup %3669  ;;  %v1996_v38 = vadd.f32 %v1866_v9, %v1696_v31  ;;  %v2170_v26 = vadd.f32 %v2138_v22, %v2102_v48  ;;  %v1641_v27 = vadd.f32 %v1609_v58, %v6653_v35  ;;  %v2086_v30 = vadd.f32 %v2054_v53, %v6654_v21  ;;  %v6657_v57 = vld [vmem:[#allocation83_spill] sm:$0xff] }
 0x1fe   : > { %v3672_v49 = vpop.eup %3671  ;;  %v2426_v63 = vadd.f32 1.0, %v3670_v41  ;;  %3681 = vpow2.f32 %v3207_v34  ;;  %v1588_v1 = vadd.f32 %v1556_v29, %v6655_v39  ;;  %v1729_v5 = vmul.f32 %v6447_v33, %v6656_v11  ;;  %v6659_v34 = vld [vmem:[#allocation19_spill] sm:$0xff] }
 0x1ff   : > { %v5809_v59 = vmul.f32 %v3672_v49, %v5656_v36  ;;  %v5814_v60 = vadd.f32 %v2170_v26, %v1996_v38  ;;  %v1680_v52 = vadd.f32 %v5444_v42, %v1641_v27  ;;  %v2154_v7 = vadd.f32 %v2122_v8, %v2086_v30  ;;  %v6660_v38 = vld [vmem:[#allocation66_spill] sm:$0xff]  ;;  %v6661_v27 = vld [vmem:[#allocation17_spill] sm:$0xff] }
 0x200   : > { %v3674_v16 = vpop.eup %3673  ;;  %3683 = vrcp.f32 %v2426_v63  ;;  %v1656_v4 = vadd.f32 %v1624_v13, %v1588_v1  ;;  %v1765_v36 = vmul.f32 %v3967_v32, %v6657_v57  ;;  %v1833_v22 = vmul.f32 %v3982_v43, %v6658_v24 }
 0x201   : > { %3301 = vmatpush3.msra.mxu0 %v5809_v59  ;;  %v2410_v54 = vadd.f32 1.0, %v3674_v16  ;;  %v3222_v31 = vmul.f32 -1.442695, %v5814_v60  ;;  %v5823_v33 = vadd.f32 %v2154_v7, %v1680_v52  ;;  %v2033_v9 = vmul.f32 %v3927_v10, %v6606_v51 }
 0x202   : > { %v2069_v48 = vmul.f32 %v3987_v45, %v5633_v18  ;;  %v1695_v58 = vadd.f32 %v5444_v42, %v1656_v4  ;;  %v1797_v53 = vadd.f32 %v1765_v36, %v1729_v5  ;;  %v2137_v32 = vmul.f32 %v5500_v61, %v5624_v23  ;;  %v2611_v5 = vld [vmem:[%s6155_s5 + $0x30] sm:$0xff]  ;;  %v2609_v36 = vld [vmem:[%s6155_s5 + $0x20] sm:$0xff] }
 0x203   : > { %3685 = vrcp.f32 %v2410_v54  ;;  %v3206_v43 = vmul.f32 -1.442695, %v5823_v33  ;;  %v1572_v29 = vadd.f32 %v6660_v38, %v6659_v34  ;;  %v1608_v18 = vmul.f32 %v3941_v17, %v6647_v2  ;;  %v2612_v17 = vld [vmem:[%s6155_s5 + $0x38] sm:$0xff] }
 0x204   : > { %v3676_v8 = vpop.eup %3675  ;;  %3687 = vpow2.f32 %v3222_v31  ;;  %v2101_v41 = vadd.f32 %v2069_v48, %v2033_v9  ;;  %v1865_v51 = vadd.f32 %v1833_v22, %v1797_v53  ;;  %v2053_v13 = vmul.f32 %v3987_v45, %v6628_v50  ;;  %v2608_v22 = vld [vmem:[%s6155_s5 + $0x18] sm:$0xff] }
 0x205   : > { %v5836_v10 = vmul.f32 %v3676_v8, %v5679_v15  ;;  %3689 = vpow2.f32 %v3206_v43  ;;  %v2121_v49 = vmul.f32 %v5500_v61, %v5654_v40  ;;  %v1640_v35 = vadd.f32 %v1608_v18, %v1572_v29 }
 0x206   : > { %v2169_v23 = vadd.f32 %v2137_v32, %v2101_v41  ;;  %v3678_v63 = vpop.eup %3677  ;;  %v1995_v15 = vadd.f32 %v1865_v51, %v1695_v58  ;;  %v2085_v21 = vadd.f32 %v2053_v13, %v6661_v27  ;;  %v3757_v2 = vmov 0.00390625  }
 0x207   : > { %3302 = vmatprep.subr.mxu0 %v5836_v10  ;;  %v2800_v26 = vpack.c.bf16 %v5780_v20, %v5836_v10  ;;  %v3680_v45 = vpop.eup %3679  ;;  %v2425_v50 = vadd.f32 1.0, %v3678_v63  ;;  %2599 = vmatprep.mubr.f32.mxu0 %v3757_v2  ;;  %v2794_v61 = vpack.c.bf16 %v5553_v44, %v5631_v0  ;;  %v1679_v39 = vadd.f32 %v5444_v42, %v1640_v35  ;;  %v2610_v42 = vld [vmem:[%s6155_s5 + $0x28] sm:$0xff]  ;;  %v6669_v44 = vld [vmem:[#allocation54_spill] sm:$0xff]  ;;  %v6675_v20 = vld [vmem:[#allocation9_spill] sm:$0xff] }
 0x208   : > { %v5855_v40 = vmul.f32 %v3680_v45, %v5699_v3  ;;  %v5857_v30 = vadd.f32 %v2169_v23, %v1995_v15  ;;  %v2153_v1 = vadd.f32 %v2121_v49, %v2085_v21  ;;  %v3758_v11 = vmov 0.0   ;;  %v2606_v21 = vld [vmem:[%s6155_s5 + $0x8] sm:$0xff] }
 0x209   : > { %3377 = vmatprep.subr.mxu1 %v3758_v11  ;;  %3691 = vrcp.f32 %v2425_v50  ;;  %vm2614_vm1 = vcmask 523264   ;;  %vm3759_vm4 = vmmov 0   ;;  %vm2701_vm9 = vcmask 1043456  }
 0x20a   : > { %3378 = vmatpush3.msra.mxu1 %v2612_v17  ;;  %3303 = vmatpush3.msra.mxu0 %v5855_v40  ;;  %v3221_v16 = vmul.f32 -1.442695, %v5857_v30  ;;  %v2279_v3 = vadd.f32 %v2153_v1, %v1679_v39  ;;  %v2792_v52 = vpack.c.bf16 %v5809_v59, %v5855_v40  ;;  %v2605_v17 = vld [vmem:[%s6155_s5] sm:$0xff]  ;;  %vm2697_vm10 = vcmask 31744   ;;  %v2782_v59 = vld [vmem:[%s6159_s9 + $0x8] sm:$0xff] }
 0x20b   : > { %3379 = vmatprep.subr.mxu1 %v3758_v11  ;;  %v3682_v7 = vpop.eup %3681  ;;  %3393 = vmatprep.mubr.msk.f32.mxu1 %vm3759_vm4, %v3758_v11  ;;  %v2613_v39 = vld [vmem:[%s6156_s6] sm:$0x1]  ;;  %v6662_v40 = vsub.s32 0, %v6537_v19  ;;  %v6663_v19 = vld [vmem:[#allocation16_spill] sm:$0xff] }
 0x20c   : > { %3380 = vmatpush3.msra.mxu1 %v2611_v5  ;;  %v2409_v4 = vadd.f32 1.0, %v3682_v7  ;;  %3693 = vpow2.f32 %v3221_v16  ;;  %v3205_v57 = vmul.f32 -1.442695, %v2279_v3 }
 0x20d   : > { %v3684_v54 = vpop.eup %3683  ;;  %3381 = vmatprep.subr.mxu1 %v3758_v11 }
 0x20e   : > { %v5877_v24 = vmul.f32 %v3684_v54, %v5718_v46  ;;  %3382 = vmatpush3.msra.mxu1 %v2610_v42  ;;  %3695 = vrcp.f32 %v2409_v4  ;;  %v2696_v4 = vld [vmem:[%s6158_s8] sm:$0x1] }
 0x20f   : > { %3383 = vmatprep.subr.mxu1 %v3758_v11  ;;  %3697 = vpow2.f32 %v3205_v57 }
 0x210   : > { %v3686_v31 = vpop.eup %3685  ;;  %3304 = vmatprep.subr.mxu0 %v5877_v24  ;;  %3384 = vmatpush3.msra.mxu1 %v2609_v36 }
 0x211   : > { %v3688_v9 = vpop.eup %3687  ;;  %v5885_v48 = vmul.f32 %v3686_v31, %v5737_v56  ;;  %3385 = vmatprep.subr.mxu1 %v3758_v11 }
 0x212   : > { %v2424_v46 = vadd.f32 1.0, %v3688_v9  ;;  %3386 = vmatpush3.msra.mxu1 %v2608_v22  ;;  %v3690_v58 = vpop.eup %3689 }
 0x213   : > { %3305 = vmatpush3.msra.mxu0 %v5885_v48  ;;  %3387 = vmatprep.subr.mxu1 %v3758_v11  ;;  %v2408_v53 = vadd.f32 1.0, %v3690_v58 }
 0x214   : > { %3699 = vrcp.f32 %v2424_v46 }
 0x215   : > { %3701 = vrcp.f32 %v2408_v53  ;;  %v2781_v53 = vld [vmem:[%s6159_s9] sm:$0xff] }
 0x216   : > { %v3692_v32 = vpop.eup %3691 }
 0x217   : > { %v5891_v8 = vmul.f32 %v3692_v32, %v5768_v14 }
 0x219   : > { %v3694_v43 = vpop.eup %3693  ;;  %3306 = vmatprep.subr.mxu0 %v5891_v8  ;;  %v2799_v56 = vpack.c.bf16 %v5877_v24, %v5891_v8  ;;  %v6674_v24 = vld [vmem:[#allocation10_spill] sm:$0xff] }
 0x21a   : > { %v2423_v41 = vadd.f32 1.0, %v3694_v43  ;;  %v6676_v10 = vpack.c.bf16 %v6674_v24, %v6675_v20 }
 0x21b   : > { %v3696_v34 = vpop.eup %3695 }
 0x21c   : > { %v3698_v38 = vpop.eup %3697  ;;  %v5897_v29 = vmul.f32 %v3696_v34, %v5792_v37  ;;  %3703 = vrcp.f32 %v2423_v41 }
 0x21d   : > { %v2407_v51 = vadd.f32 1.0, %v3698_v38  ;;  %v2795_v38 = vpack.c.bf16 %v6663_v19, %v5460_v28  ;;  %v6668_v28 = vld [vmem:[#allocation82_spill] sm:$0xff]  ;;  %v3727_v19 = vld [vmem:[%s3839_s24 + $0x58] sm:$0xff] }
 0x21e   : > { %3307 = vmatpush3.msra.mxu0 %v5897_v29  ;;  %v2791_v14 = vpack.c.bf16 %v5885_v48, %v5897_v29  ;;  %v6666_v48 = vld [vmem:[#allocation8_spill] sm:$0xff]  ;;  %v6667_v29 = vld [vmem:[#allocation63_spill] sm:$0xff]  ;;  %v6670_v0 = vpack.c.bf16 %v6668_v28, %v6669_v44 }
 0x21f   : > { %3705 = vrcp.f32 %v2407_v51  ;;  %v6664_v51 = vld [vmem:[#allocation6_spill] sm:$0xff]  ;;  %v2797_v62 = vpack.c.bf16 %v6667_v29, %v6666_v48  ;;  %v3729_v28 = vld [vmem:[%s3839_s24 + $0x70] sm:$0xff] }
 0x221   : > { %v3700_v18 = vpop.eup %3699 }
 0x222   : > { %v5903_v13 = vmul.f32 %v3700_v18, %v5814_v60  ;;  %v3702_v23 = vpop.eup %3701  ;;  %v6665_v18 = vld [vmem:[#allocation84_spill] sm:$0xff] }
 0x223   : > { %v2504_v49 = vmul.f32 %v3702_v23, %v5823_v33  ;;  %v2607_v33 = vld [vmem:[%s6155_s5 + $0x10] sm:$0xff]  ;;  %v2796_v23 = vpack.c.bf16 %v6665_v18, %v6664_v51 }
 0x224   : > { %3308 = vmatprep.subr.mxu0 %v5903_v13  ;;  %3388 = vmatpush3.msra.mxu1 %v2607_v33 }
 0x225   : > { %3309 = vmatpush3.msra.mxu0 %v2504_v49  ;;  %3389 = vmatprep.subr.mxu1 %v3758_v11 }
 0x226   : > { %3390 = vmatpush3.msra.mxu1 %v2606_v21 }
 0x227   : > { %3391 = vmatprep.subr.mxu1 %v3758_v11 }
 0x228   : > { %3392 = vmatpush3.msra.mxu1 %v2605_v17 }
 0x229   : > { %v3704_v37 = vpop.eup %3703  ;;  %3396 = vmatprep.subr.mxu1 %v3758_v11 }
 0x22a   : > { %v5908_v63 = vmul.f32 %v3704_v37, %v5857_v30  ;;  %v2695_v30 = vld [vmem:[%s6157_s7] sm:$0xf] }
 0x22c   : > { %v3706_v15 = vpop.eup %3705  ;;  %3310 = vmatprep.subr.mxu0 %v5908_v63  ;;  %v2798_v35 = vpack.c.bf16 %v5903_v13, %v5908_v63  ;;  %v3717_v63 = vld [vmem:[%s3839_s24 + $0x10] sm:$0xff] }
 0x22d   : > { %v2503_v27 = vmul.f32 %v3706_v15, %v2279_v3 }
 0x22f   : > { %3311 = vmatpush3.msra.mxu0 %v2503_v27  ;;  %v2790_v60 = vpack.c.bf16 %v2504_v49, %v2503_v27 }
 0x230   : > { %2600 = vmatmul.mubr.f32.vlgmr.msra.gmra.mxu0 %v3757_v2 }
 0x231   : > { %3403 = vmatprep.mubr.msk.bf16.mxu0 %vm2614_vm1, %v2790_v60 }
 0x2f0   : > { %v3312_v45 = vpop.f32.mrf.mxu0 }
 0x2f2   : > { %v3313_v50 = vpop.f32.mrf.mxu0 }
 0x2f3   : > { %v3314_v2 = vadd.f32 %v3313_v50, %v3312_v45  ;;  %v3719_v45 = vld [vmem:[%s3839_s24] sm:$0xff] }
 0x2f5   : > { %3394 = vmatmul.mubr.msk.f32.vlgmr.msra.gmra.mxu1 %vm2614_vm1, %v3314_v2  ;;  %v3720_v2 = vld [vmem:[%s3839_s24 + $0x20] sm:$0xff] }
 0x2f6   : > { %3398 = vmatprep.mubr.msk.f32.mxu1 %vm3759_vm4, %v3758_v11  ;;  %3397 = vmatpush3.msk.msra.mxu1 %vm2701_vm9, %v2695_v30 }
 0x3b5   : > { %v2684_v1 = vpop.f32.mrf.mxu1 }
 0x3b6   : > { %v2685_v5 = vadd.f32 %v2684_v1, %v2613_v39 }
 0x3b7   : > { %v3395_v16 = vpop.f32.mrf.mxu1 }
 0x3b8   : > { %v3238_v3 = vmul.f32 -1.442695, %v2685_v5 }
 0x3ba   : > { %3707 = vpow2.f32 %v3238_v3  ;;  %v3721_v3 = vld [vmem:[%s3839_s24 + $0x18] sm:$0xff] }
 0x3c7   : > { %v3708_v42 = vpop.eup %3707 }
 0x3c8   : > { %v2691_v7 = vadd.f32 1.0, %v3708_v42 }
 0x3ca   : > { %3709 = vrcp.f32 %v2691_v7  ;;  %v3722_v7 = vld [vmem:[%s3839_s24 + $0x38] sm:$0xff] }
 0x3d7   : > { %v3710_v54 = vpop.eup %3709 }
 0x3d8   : > { %v2694_v11 = vmul.f32 %v3710_v54, %v2685_v5 }
 0x3da   : > { %3399 = vmatmul.mubr.msk.f32.vlgmr.msra.gmra.mxu1 %vm2697_vm10, %v2694_v11 }
 0x3db   : > { %3407 = vmatprep.mubr.msk.bf16.mxu1 %vm2614_vm1, %v2792_v52 }
 0x49a   : > { %v2771_v57 = vpop.f32.mrf.mxu1 }
 0x49b   : > { %v2772_v36 = vadd.f32 %v2771_v57, %v2696_v4 }
 0x49c   : > { %v3400_v22 = vpop.f32.mrf.mxu1 }
 0x49d   : > { %v3241_v31 = vmul.f32 -1.442695, %v2772_v36  ;;  %v3723_v36 = vld [vmem:[%s3839_s24 + $0x8] sm:$0xff] }
 0x49f   : > { %3711 = vpow2.f32 %v3241_v31  ;;  %v3724_v31 = vld [vmem:[%s3839_s24 + $0x28] sm:$0xff] }
 0x4ac   : > { %v3712_v9 = vpop.eup %3711 }
 0x4ad   : > { %v2778_v46 = vadd.f32 1.0, %v3712_v9 }
 0x4af   : > { %3713 = vrcp.f32 %v2778_v46 }
 0x4bc   : > { %v3714_v58 = vpop.eup %3713 }
 0x4bd   : > { %v2786_v52 = vrot.slane %v3714_v58, %v6662_v40 }
 0x4bf   : > { %v2787_v32 = vmul.f32 %v2786_v52, %v2781_v53  ;;  %v2788_v43 = vmul.f32 %v2786_v52, %v2782_v59  ;;  %v3725_v53 = vld [vmem:[%s3839_s24 + $0x50] sm:$0xff] }
 0x4c1   : > { %v2789_v41 = vpack.c.bf16 %v2788_v43, %v2787_v32  ;;  %v3726_v32 = vld [vmem:[%s3839_s24 + $0x40] sm:$0xff] }
 0x4c3   : > { %3437 = vmatprep.subr.msk.bf16.mxu0 %vm2614_vm1, %v2789_v41  ;;  %3438 = vmatprep.subr.msk.bf16.mxu1 %vm2614_vm1, %v2789_v41  ;;  %v2862_v34 = vsel %vm2614_vm1, %v2789_v41, 0 }
 0x4c4   : > { %3402 = vmatpush3.bf16.xpose.msra.mxu0 %v2862_v34  ;;  %3436 = vmatpush3.bf16.xpose.msra.mxu1 %v2862_v34 }
 0x4cb   : > { %3404 = vmatmul.mubr.msk.bf16.vlgmr.msra.gmra.mxu0 %vm2614_vm1, %v2791_v14  ;;  %3408 = vmatmul.mubr.msk.bf16.vlgmr.msra.gmra.mxu1 %vm2614_vm1, %v2793_v55  ;;  %v6672_v55 = vld [vmem:[#allocation12_spill] sm:$0xff] }
 0x4cc   : > { %3411 = vmatprep.mubr.msk.bf16.mxu1 %vm2614_vm1, %v2794_v61  ;;  %v6673_v61 = vpack.c.bf16 %v6671_v12, %v6672_v55  ;;  %v3730_v55 = vld [vmem:[%s3839_s24 + $0x60] sm:$0xff] }
 0x4d3   : > { %3412 = vmatmul.mubr.msk.bf16.gmra.mxu1 %vm2614_vm1, %v2795_v38 }
 0x4d4   : > { %3415 = vmatprep.mubr.msk.bf16.mxu1 %vm2614_vm1, %v2796_v23  ;;  %v3728_v23 = vld [vmem:[%s3839_s24 + $0x48] sm:$0xff] }
 0x4db   : > { %3416 = vmatmul.mubr.msk.bf16.gmra.mxu1 %vm2614_vm1, %v2797_v62 }
 0x4dc   : > { %3419 = vmatprep.mubr.msk.bf16.mxu1 %vm2614_vm1, %v2798_v35  ;;  %v3718_v35 = vld [vmem:[%s3839_s24 + $0x30] sm:$0xff] }
 0x4e3   : > { %3420 = vmatmul.mubr.msk.bf16.gmra.mxu1 %vm2614_vm1, %v2799_v56 }
 0x4e4   : > { %3423 = vmatprep.mubr.msk.bf16.mxu1 %vm2614_vm1, %v2800_v26  ;;  %v6677_v26 = vld [vmem:[#allocation65_spill] sm:$0xff] }
 0x4e5   : > { %v6679_v47 = vpack.c.bf16 %v6677_v26, %v6678_v6 }
 0x4eb   : > { %3424 = vmatmul.mubr.msk.bf16.gmra.mxu1 %vm2614_vm1, %v2801_v25  ;;  %v6010_v25 = vld [vmem:[%s6160_s10] ss:$0 sm:$0xff] }
 0x4ec   : > { %3427 = vmatprep.mubr.msk.bf16.mxu1 %vm2614_vm1, %v6670_v0 }
 0x4f3   : > { %3428 = vmatmul.mubr.msk.bf16.gmra.mxu1 %vm2614_vm1, %v6673_v61 }
 0x4f4   : > { %3431 = vmatprep.mubr.msk.bf16.mxu1 %vm2614_vm1, %v6676_v10  ;;  %v3731_v10 = vld [vmem:[%s3839_s24 + $0x78] sm:$0xff] }
 0x4fb   : > { %3432 = vmatmul.mubr.msk.bf16.gmra.mxu1 %vm2614_vm1, %v6679_v47 }
 0x58b   : > { %v3405_v8 = vpop.f32.mrf.mxu0  ;;  %v3409_v56 = vpop.f32.mrf.mxu1 }
 0x58c   : > { %v2907_v14 = vadd.f32 %v3405_v8, %v6010_v25  ;;  %v2923_v13 = vadd.f32 %v3409_v56, %v6010_v25  ;;  %v3732_v8 = vld [vmem:[%s3839_s24 + $0x68] sm:$0xff] }
 0x58d   : > { %v2898_v49 = vpop.f32.mrf.mxu0  ;;  %v2914_v37 = vpop.f32.mrf.mxu1 }
 0x58e   : > { %v3027_v15 = vadd.f32 %v3717_v63, %v2907_v14  ;;  %v3031_v27 = vadd.f32 %v3718_v35, %v2923_v13  ;;  %v2899_v60 = vadd.f32 %v6010_v25, %v2898_v49  ;;  %v2915_v33 = vadd.f32 %v6010_v25, %v2914_v37  ;;  %v3733_v49 = vld [vmem:[%s3839_s24 + $0x90] sm:$0xff]  ;;  %v3734_v35 = vld [vmem:[%s3839_s24 + $0x80] sm:$0xff] }
 0x58f   : > { %v3406_v21 = vpop.f32.mrf.mxu0  ;;  %v3410_v17 = vpop.f32.mrf.mxu1 }
 0x590   : > { %3059 = vst.msk [vmem:[%s6019_s20 + $0x10] sm:$0xff] %vm451_vm0, %v3027_v15  ;;  %3063 = vst.msk [vmem:[%s6019_s20 + $0x30] sm:$0xff] %vm451_vm0, %v3031_v27  ;;  %v3025_v50 = vadd.f32 %v3719_v45, %v2899_v60  ;;  %v3029_v30 = vadd.f32 %v3720_v2, %v2915_v33  ;;  %v2910_v39 = vadd.f32 %v3406_v21, %v6010_v25  ;;  %v3735_v21 = vld [vmem:[%s3839_s24 + $0x98] sm:$0xff]  ;;  %v3736_v2 = vld [vmem:[%s3839_s24 + $0x88] sm:$0xff] }
 0x591   : > { %v2926_v1 = vadd.f32 %v3410_v17, %v6010_v25  ;;  %v2901_v5 = vpop.f32.mrf.mxu0  ;;  %v2917_v16 = vpop.f32.mrf.mxu1 }
 0x592   : > { %3057 = vst.msk [vmem:[%s6019_s20] sm:$0xff] %vm451_vm0, %v3025_v50  ;;  %3061 = vst.msk [vmem:[%s6019_s20 + $0x20] sm:$0xff] %vm451_vm0, %v3029_v30  ;;  %v3028_v42 = vadd.f32 %v3721_v3, %v2910_v39  ;;  %v2902_v11 = vadd.f32 %v6010_v25, %v2901_v5  ;;  %v2918_v4 = vadd.f32 %v6010_v25, %v2917_v16  ;;  %v3737_v5 = vld [vmem:[%s3839_s24 + $0xb0] sm:$0xff] }
 0x593   : > { %v3032_v54 = vadd.f32 %v3722_v7, %v2926_v1  ;;  %v3413_v57 = vpop.f32.mrf.mxu1  ;;  %v3738_v7 = vld [vmem:[%s3839_s24 + $0xa0] sm:$0xff] }
 0x594   : > { %3060 = vst.msk [vmem:[%s6019_s20 + $0x18] sm:$0xff] %vm451_vm0, %v3028_v42  ;;  %v3026_v22 = vadd.f32 %v3723_v36, %v2902_v11  ;;  %v3030_v9 = vadd.f32 %v3724_v31, %v2918_v4  ;;  %v2939_v46 = vadd.f32 %v3413_v57, %v6010_v25  ;;  %v3739_v57 = vld [vmem:[%s3839_s24 + $0xb8] sm:$0xff] }
 0x595   : > { %3064 = vst.msk [vmem:[%s6019_s20 + $0x38] sm:$0xff] %vm451_vm0, %v3032_v54  ;;  %v2930_v58 = vpop.f32.mrf.mxu1 }
 0x596   : > { %3058 = vst.msk [vmem:[%s6019_s20 + $0x8] sm:$0xff] %vm451_vm0, %v3026_v22  ;;  %3062 = vst.msk [vmem:[%s6019_s20 + $0x28] sm:$0xff] %vm451_vm0, %v3030_v9  ;;  %v3035_v59 = vadd.f32 %v3725_v53, %v2939_v46  ;;  %v2931_v40 = vadd.f32 %v6010_v25, %v2930_v58  ;;  %v3740_v9 = vld [vmem:[%s3839_s24 + $0xa8] sm:$0xff] }
 0x597   : > { %v3414_v52 = vpop.f32.mrf.mxu1 }
 0x598   : > { %3067 = vst.msk [vmem:[%s6019_s20 + $0x50] sm:$0xff] %vm451_vm0, %v3035_v59  ;;  %v3033_v43 = vadd.f32 %v3726_v32, %v2931_v40  ;;  %v2942_v41 = vadd.f32 %v3414_v52, %v6010_v25  ;;  %v3741_v59 = vld [vmem:[%s3839_s24 + $0xd0] sm:$0xff] }
 0x599   : > { %v2933_v34 = vpop.f32.mrf.mxu1 }
 0x59a   : > { %3065 = vst.msk [vmem:[%s6019_s20 + $0x40] sm:$0xff] %vm451_vm0, %v3033_v43  ;;  %v3036_v38 = vadd.f32 %v3727_v19, %v2942_v41  ;;  %v2934_v51 = vadd.f32 %v6010_v25, %v2933_v34  ;;  %v3742_v43 = vld [vmem:[%s3839_s24 + $0xc0] sm:$0xff] }
 0x59b   : > { %v3417_v18 = vpop.f32.mrf.mxu1 }
 0x59c   : > { %3068 = vst.msk [vmem:[%s6019_s20 + $0x58] sm:$0xff] %vm451_vm0, %v3036_v38  ;;  %v3034_v48 = vadd.f32 %v3728_v23, %v2934_v51  ;;  %v2955_v29 = vadd.f32 %v3417_v18, %v6010_v25  ;;  %v3743_v38 = vld [vmem:[%s3839_s24 + $0xd8] sm:$0xff] }
 0x59d   : > { %v2946_v62 = vpop.f32.mrf.mxu1 }
 0x59e   : > { %3066 = vst.msk [vmem:[%s6019_s20 + $0x48] sm:$0xff] %vm451_vm0, %v3034_v48  ;;  %v3039_v44 = vadd.f32 %v3729_v28, %v2955_v29  ;;  %v2947_v0 = vadd.f32 %v6010_v25, %v2946_v62  ;;  %v3744_v48 = vld [vmem:[%s3839_s24 + $0xc8] sm:$0xff] }
 0x59f   : > { %v3418_v12 = vpop.f32.mrf.mxu1 }
 0x5a0   : > { %3071 = vst.msk [vmem:[%s6019_s20 + $0x70] sm:$0xff] %vm451_vm0, %v3039_v44  ;;  %v3037_v61 = vadd.f32 %v3730_v55, %v2947_v0  ;;  %v2958_v24 = vadd.f32 %v3418_v12, %v6010_v25  ;;  %v3745_v44 = vld [vmem:[%s3839_s24 + $0xf0] sm:$0xff] }
 0x5a1   : > { %v2949_v20 = vpop.f32.mrf.mxu1 }
 0x5a2   : > { %3069 = vst.msk [vmem:[%s6019_s20 + $0x60] sm:$0xff] %vm451_vm0, %v3037_v61  ;;  %v3040_v26 = vadd.f32 %v3731_v10, %v2958_v24  ;;  %v2950_v6 = vadd.f32 %v6010_v25, %v2949_v20  ;;  %v3746_v61 = vld [vmem:[%s3839_s24 + $0xe0] sm:$0xff] }
 0x5a3   : > { %v3421_v47 = vpop.f32.mrf.mxu1 }
 0x5a4   : > { %3072 = vst.msk [vmem:[%s6019_s20 + $0x78] sm:$0xff] %vm451_vm0, %v3040_v26  ;;  %v3038_v56 = vadd.f32 %v3732_v8, %v2950_v6  ;;  %v2971_v14 = vadd.f32 %v3421_v47, %v6010_v25  ;;  %v3747_v26 = vld [vmem:[%s3839_s24 + $0xf8] sm:$0xff]  ;;  %v3748_v8 = vld [vmem:[%s3839_s24 + $0xe8] sm:$0xff] }
 0x5a5   : > { %v2962_v13 = vpop.f32.mrf.mxu1 }
 0x5a6   : > { %3070 = vst.msk [vmem:[%s6019_s20 + $0x68] sm:$0xff] %vm451_vm0, %v3038_v56  ;;  %v3043_v37 = vadd.f32 %v3733_v49, %v2971_v14  ;;  %v2963_v63 = vadd.f32 %v6010_v25, %v2962_v13 }
 0x5a7   : > { %v3422_v15 = vpop.f32.mrf.mxu1 }
 0x5a8   : > { %3075 = vst.msk [vmem:[%s6019_s20 + $0x90] sm:$0xff] %vm451_vm0, %v3043_v37  ;;  %v3041_v27 = vadd.f32 %v3734_v35, %v2963_v63  ;;  %v2974_v60 = vadd.f32 %v3422_v15, %v6010_v25 }
 0x5a9   : > { %v2965_v33 = vpop.f32.mrf.mxu1 }
 0x5aa   : > { %3073 = vst.msk [vmem:[%s6019_s20 + $0x80] sm:$0xff] %vm451_vm0, %v3041_v27  ;;  %v3044_v17 = vadd.f32 %v3735_v21, %v2974_v60  ;;  %v2966_v45 = vadd.f32 %v6010_v25, %v2965_v33 }
 0x5ab   : > { %v3425_v50 = vpop.f32.mrf.mxu1 }
 0x5ac   : > { %3076 = vst.msk [vmem:[%s6019_s20 + $0x98] sm:$0xff] %vm451_vm0, %v3044_v17  ;;  %v3042_v30 = vadd.f32 %v3736_v2, %v2966_v45  ;;  %v2987_v39 = vadd.f32 %v3425_v50, %v6010_v25 }
 0x5ad   : > { %v2978_v1 = vpop.f32.mrf.mxu1 }
 0x5ae   : > { %3074 = vst.msk [vmem:[%s6019_s20 + $0x88] sm:$0xff] %vm451_vm0, %v3042_v30  ;;  %v3047_v16 = vadd.f32 %v3737_v5, %v2987_v39  ;;  %v2979_v3 = vadd.f32 %v6010_v25, %v2978_v1 }
 0x5af   : > { %v3426_v42 = vpop.f32.mrf.mxu1 }
 0x5b0   : > { %3079 = vst.msk [vmem:[%s6019_s20 + $0xb0] sm:$0xff] %vm451_vm0, %v3047_v16  ;;  %v3045_v54 = vadd.f32 %v3738_v7, %v2979_v3  ;;  %v2990_v11 = vadd.f32 %v3426_v42, %v6010_v25 }
 0x5b1   : > { %v2981_v4 = vpop.f32.mrf.mxu1 }
 0x5b2   : > { %3077 = vst.msk [vmem:[%s6019_s20 + $0xa0] sm:$0xff] %vm451_vm0, %v3045_v54  ;;  %v3048_v36 = vadd.f32 %v3739_v57, %v2990_v11  ;;  %v2982_v22 = vadd.f32 %v6010_v25, %v2981_v4 }
 0x5b3   : > { %v3429_v31 = vpop.f32.mrf.mxu1 }
 0x5b4   : > { %3080 = vst.msk [vmem:[%s6019_s20 + $0xb8] sm:$0xff] %vm451_vm0, %v3048_v36  ;;  %v3046_v46 = vadd.f32 %v3740_v9, %v2982_v22  ;;  %v3003_v58 = vadd.f32 %v3429_v31, %v6010_v25 }
 0x5b5   : > { %v2994_v53 = vpop.f32.mrf.mxu1 }
 0x5b6   : > { %3078 = vst.msk [vmem:[%s6019_s20 + $0xa8] sm:$0xff] %vm451_vm0, %v3046_v46  ;;  %v3051_v40 = vadd.f32 %v3741_v59, %v3003_v58  ;;  %v2995_v52 = vadd.f32 %v6010_v25, %v2994_v53 }
 0x5b7   : > { %v3430_v32 = vpop.f32.mrf.mxu1 }
 0x5b8   : > { %3083 = vst.msk [vmem:[%s6019_s20 + $0xd0] sm:$0xff] %vm451_vm0, %v3051_v40  ;;  %v3049_v41 = vadd.f32 %v3742_v43, %v2995_v52  ;;  %v3006_v34 = vadd.f32 %v3430_v32, %v6010_v25 }
 0x5b9   : > { %v2997_v19 = vpop.f32.mrf.mxu1 }
 0x5ba   : > { %3081 = vst.msk [vmem:[%s6019_s20 + $0xc0] sm:$0xff] %vm451_vm0, %v3049_v41  ;;  %v3052_v51 = vadd.f32 %v3743_v38, %v3006_v34  ;;  %v2998_v18 = vadd.f32 %v6010_v25, %v2997_v19 }
 0x5bb   : > { %v3433_v23 = vpop.f32.mrf.mxu1 }
 0x5bc   : > { %3084 = vst.msk [vmem:[%s6019_s20 + $0xd8] sm:$0xff] %vm451_vm0, %v3052_v51  ;;  %v3050_v29 = vadd.f32 %v3744_v48, %v2998_v18  ;;  %v3019_v62 = vadd.f32 %v3433_v23, %v6010_v25 }
 0x5bd   : > { %v3010_v28 = vpop.f32.mrf.mxu1 }
 0x5be   : > { %3082 = vst.msk [vmem:[%s6019_s20 + $0xc8] sm:$0xff] %vm451_vm0, %v3050_v29  ;;  %v3055_v0 = vadd.f32 %v3745_v44, %v3019_v62  ;;  %v3011_v12 = vadd.f32 %v6010_v25, %v3010_v28 }
 0x5bf   : > { %v3434_v55 = vpop.f32.mrf.mxu1 }
 0x5c0   : > { %3087 = vst.msk [vmem:[%s6019_s20 + $0xf0] sm:$0xff] %vm451_vm0, %v3055_v0  ;;  %v3053_v24 = vadd.f32 %v3746_v61, %v3011_v12  ;;  %v3022_v20 = vadd.f32 %v3434_v55, %v6010_v25 }
 0x5c1   : > { %v3013_v10 = vpop.f32.mrf.mxu1 }
 0x5c2   : > { %3085 = vst.msk [vmem:[%s6019_s20 + $0xe0] sm:$0xff] %vm451_vm0, %v3053_v24  ;;  %v3056_v6 = vadd.f32 %v3747_v26, %v3022_v20  ;;  %v3014_v47 = vadd.f32 %v6010_v25, %v3013_v10 }
 0x5c4   : > { %3088 = vst.msk [vmem:[%s6019_s20 + $0xf8] sm:$0xff] %vm451_vm0, %v3056_v6  ;;  %v3054_v56 = vadd.f32 %v3748_v8, %v3014_v47 }
 0x5c6   : > { %3086 = vst.msk [vmem:[%s6019_s20 + $0xe8] sm:$0xff] %vm451_vm0, %v3054_v56 }
 0x5c7 PF: > { %s21_s17 = sadd.s32 1, %s3755_s17  }
 0x5c8   : > { %p18_p4 = scmp.ge.s32.totalorder %s21_s17, 4  }
 0x5ca   :  { %20 = sbr.rel (!%p18_p4) target bundleno = 1 (0x1), region = 94 }

</bundles_post_ra>
